<compile_context>
chip_gen: v5e
topology: v5e:2x2
jax: 0.10.0
libtpu: 0.0.40
codegen_flags: <defaults>
</compile_context>

<pallas_src>
import jax
import jax.numpy as jnp
from jax import lax
from jax.experimental import pallas as pl
from jax.experimental.pallas import tpu as pltpu


def _round_up(n, m):
    return ((n + m - 1) // m) * m


def _choose_tile_b(batch, feat, itemsize, max_tile_b, x_budget_bytes):
    """Rows per tile: multiple of 1024 (lane-dense tail), double-buffered x
    window kept inside x_budget_bytes (VMEM headroom on every generation)."""
    cap = x_budget_bytes // (2 * feat * itemsize)
    cap = max(1024, (cap // 1024) * 1024)
    req = max(1024, (max_tile_b // 1024) * 1024)
    tb = min(cap, req)
    # Never larger than the (padded) batch.
    tb = min(tb, _round_up(batch, 1024))
    return tb


def _oc_loss_kernel(x_ref, c0_ref, c1_ref, wn_ref, out_ref):
    # x tile is (R, 128, D); c0/c1 are (R, 128); w_n is (1, 1, D), unit norm.
    x = x_ref[...].astype(jnp.float32)                    # (R, 128, D)
    w_n = wn_ref[...]                                     # (1, 1, D)

    # Fused normalize-into-dot; both reductions land lane-dense as (R, 128).
    dot_xw = jnp.sum(x * w_n, axis=-1)                    # (R, 128)
    sumsq = jnp.sum(x * x, axis=-1)                       # (R, 128)

    s = jnp.maximum(sumsq, 1e-24)                         # == max(||x||,1e-12)^2
    inv = lax.rsqrt(s)
    inv = inv * (1.5 - 0.5 * s * inv * inv)               # one Newton step
    cos_theta = dot_xw * inv                              # (R, 128)

    # Hoisted label math: z = alpha*(m_y - cos)*sign == c0 - c1*cos.
    z = c0_ref[...] - c1_ref[...] * cos_theta             # (R, 128)
    # Stable softplus == log(1 + exp(z)); padded rows (c0=-1e30, c1=0) give 0.
    loss = jnp.maximum(z, 0.0) + jnp.log(1.0 + jnp.exp(-jnp.abs(z)))

    partial = jnp.sum(loss)                               # scalar tile sum
    # Lane-dense unmasked store; wrapper consumes element [0, 0] of each tile.
    out_ref[...] = jnp.full((1, 8, 128), partial, dtype=jnp.float32)


def oc_loss_pallas(x, labels, weight, *, alpha=20.0, m0=0.9, m1=0.2,
                   max_tile_b=8192, x_vmem_budget_bytes=8 * 1024 * 1024):
    """x: (B, D) float (f32 or bf16), labels: (B,) int, weight: (D, 1) f32."""
    B, D = x.shape

    # Normalize the weight direction once (only D elements), keep resident.
    w = weight.reshape(1, 1, D).astype(jnp.float32)
    w_norm = jnp.sqrt(jnp.sum(w * w))
    w_n = w / jnp.maximum(w_norm, 1e-12)

    tb = _choose_tile_b(B, D, x.dtype.itemsize, max_tile_b, x_vmem_budget_bytes)
    b_pad = _round_up(B, tb)
    num_tiles = b_pad // tb
    r = tb // 128

    # Hoisted label-dependent coefficients (B elements, negligible).
    labels_i = labels.astype(jnp.int32)
    m_y = jnp.where(labels_i == 0, jnp.float32(m0),
                    jnp.where(labels_i == 1, jnp.float32(m1), jnp.float32(1.0)))
    sign = jnp.where(labels_i % 2 == 0, jnp.float32(1.0), jnp.float32(-1.0))
    c0 = (alpha * m_y * sign).astype(jnp.float32)          # (B,)
    c1 = (alpha * sign).astype(jnp.float32)                # (B,)

    pad = b_pad - B
    if pad:
        x = jnp.pad(x, ((0, pad), (0, 0)))                 # zero features
        c0 = jnp.pad(c0, (0, pad), constant_values=-1e30)  # softplus -> exactly 0
        c1 = jnp.pad(c1, (0, pad), constant_values=0.0)

    # Lane-dense presentation: pure leading-dim reshapes (no data movement).
    x3 = x.reshape(b_pad // 128, 128, D)
    c0_2 = c0.reshape(b_pad // 128, 128)
    c1_2 = c1.reshape(b_pad // 128, 128)

    partials = pl.pallas_call(
        _oc_loss_kernel,
        out_shape=jax.ShapeDtypeStruct((num_tiles, 8, 128), jnp.float32),
        grid_spec=pltpu.PrefetchScalarGridSpec(
            num_scalar_prefetch=0,
            grid=(num_tiles,),
            in_specs=[
                pl.BlockSpec((r, 128, D), lambda i: (i, 0, 0)),   # x tile
                pl.BlockSpec((r, 128), lambda i: (i, 0)),         # c0 tile
                pl.BlockSpec((r, 128), lambda i: (i, 0)),         # c1 tile
                pl.BlockSpec((1, 1, D), lambda i: (0, 0, 0)),     # w_n resident
            ],
            out_specs=pl.BlockSpec((1, 8, 128), lambda i: (i, 0, 0)),
        ),
        compiler_params=pltpu.CompilerParams(
            dimension_semantics=("parallel",),   # shards tiles across TCs (v7x)
            vmem_limit_bytes=32 * 1024 * 1024,
        ),
    )(x3, c0_2, c1_2, w_n)

    # Tiny finish in JAX: one partial per tile, mean over the true batch size.
    return jnp.sum(partials[:, 0, 0]) / jnp.float32(B)


def oc_loss_ref(x, labels, weight, *, alpha=20.0, m0=0.9, m1=0.2):
    """Pure-JAX reference mirroring the PyTorch forward."""
    w = weight / jnp.maximum(jnp.linalg.norm(weight, axis=0, keepdims=True), 1e-12)
    xn = x / jnp.maximum(jnp.linalg.norm(x, axis=1, keepdims=True), 1e-12)
    cos_theta = (xn @ w)[:, 0]
    m_y = jnp.where(labels == 0, m0, jnp.where(labels == 1, m1, 1.0))
    sign = jnp.where(labels % 2 == 0, 1.0, -1.0)
    loss = jnp.log(1.0 + jnp.exp(alpha * (m_y - cos_theta) * sign))
    return jnp.mean(loss)


if __name__ == "__main__":
    feature_dim = 128
    alpha, m0, m1 = 20.0, 0.9, 0.2

    key = jax.random.PRNGKey(0)
    k_w, k_x, k_l, k_x2, k_l2 = jax.random.split(key, 5)

    # Deterministic Xavier-normal init for weight of shape (feature_dim, 1).
    xavier_std = (2.0 / (feature_dim + 1)) ** 0.5
    weight = xavier_std * jax.random.normal(k_w, (feature_dim, 1), dtype=jnp.float32)

    # Small case: single tile, heavy row padding (B=8 -> 1024).
    batch = 8
    x = jax.random.normal(k_x, (batch, feature_dim), dtype=jnp.float32)
    labels = jax.random.bernoulli(k_l, 0.5, (batch,)).astype(jnp.int32)
    loss = jax.block_until_ready(
        oc_loss_pallas(x, labels, weight, alpha=alpha, m0=m0, m1=m1))
    ref = oc_loss_ref(x, labels, weight, alpha=alpha, m0=m0, m1=m1)
    assert jnp.allclose(loss, ref, rtol=1e-4, atol=1e-5), (loss, ref)

    # Multi-tile case: forces TB=1024 -> 3 grid steps + padded last rows.
    batch2 = 2500
    x2 = jax.random.normal(k_x2, (batch2, feature_dim), dtype=jnp.float32)
    labels2 = jax.random.bernoulli(k_l2, 0.5, (batch2,)).astype(jnp.int32)
    loss2 = jax.block_until_ready(
        oc_loss_pallas(x2, labels2, weight, alpha=alpha, m0=m0, m1=m1,
                       max_tile_b=1024))
    ref2 = oc_loss_ref(x2, labels2, weight, alpha=alpha, m0=m0, m1=m1)
    assert jnp.allclose(loss2, ref2, rtol=1e-4, atol=1e-5), (loss2, ref2)

    print("KERNEL_OK")
</pallas_src>

<mosaic_0001>
module attributes {stable_mosaic.version = 11 : i64} {
  func.func @_oc_loss_kernel(%arg0: i32, %arg1: memref<8x128x128xf32, #tpu.memory_space<vmem>>, %arg2: memref<8x128xf32, #tpu.memory_space<vmem>>, %arg3: memref<8x128xf32, #tpu.memory_space<vmem>>, %arg4: memref<1x1x128xf32, #tpu.memory_space<vmem>>, %arg5: memref<1x8x128xf32, #tpu.memory_space<vmem>>) attributes {dimension_semantics = [#tpu.dimension_semantics<parallel>], iteration_bounds = array<i64: 1>, scalar_prefetch = 0 : i64, scratch_operands = 0 : i64, tpu.core_type = #tpu.core_type<tc>, window_params = [{transform_indices = @transform_0, window_bounds = array<i64: 8, 128, 128>}, {transform_indices = @transform_1, window_bounds = array<i64: 8, 128>}, {transform_indices = @transform_2, window_bounds = array<i64: 8, 128>}, {pipeline_mode = #tpu.pipeline_mode<synchronous>, transform_indices = @transform_3, window_bounds = array<i64: 1, 1, 128>}, {transform_indices = @transform_4, window_bounds = array<i64: 1, 8, 128>}]} {
    %c0 = arith.constant 0 : index
    %c0_0 = arith.constant 0 : index
    %c0_1 = arith.constant 0 : index
    %0 = vector.load %arg1[%c0, %c0_0, %c0_1] : memref<8x128x128xf32, #tpu.memory_space<vmem>>, vector<8x128x128xf32>
    %c0_2 = arith.constant 0 : index
    %c0_3 = arith.constant 0 : index
    %c0_4 = arith.constant 0 : index
    %1 = vector.load %arg4[%c0_2, %c0_3, %c0_4] : memref<1x1x128xf32, #tpu.memory_space<vmem>>, vector<1x1x128xf32>
    %2 = vector.broadcast %1 : vector<1x1x128xf32> to vector<8x128x128xf32>
    %3 = arith.mulf %0, %2 : vector<8x128x128xf32>
    %cst = arith.constant dense<0.000000e+00> : vector<8x128xf32>
    %4 = vector.multi_reduction <add>, %3, %cst [2] : vector<8x128x128xf32> to vector<8x128xf32>
    %5 = arith.mulf %0, %0 : vector<8x128x128xf32>
    %cst_5 = arith.constant dense<0.000000e+00> : vector<8x128xf32>
    %6 = vector.multi_reduction <add>, %5, %cst_5 [2] : vector<8x128x128xf32> to vector<8x128xf32>
    %cst_6 = arith.constant 1.000000e-24 : f32
    %7 = vector.broadcast %cst_6 : f32 to vector<8x128xf32>
    %8 = arith.maximumf %6, %7 : vector<8x128xf32>
    %9 = math.rsqrt %8 : vector<8x128xf32>
    %cst_7 = arith.constant 5.000000e-01 : f32
    %10 = vector.broadcast %cst_7 : f32 to vector<8x128xf32>
    %11 = arith.mulf %10, %8 : vector<8x128xf32>
    %12 = arith.mulf %11, %9 : vector<8x128xf32>
    %13 = arith.mulf %12, %9 : vector<8x128xf32>
    %cst_8 = arith.constant 1.500000e+00 : f32
    %14 = vector.broadcast %cst_8 : f32 to vector<8x128xf32>
    %15 = arith.subf %14, %13 : vector<8x128xf32>
    %16 = arith.mulf %9, %15 : vector<8x128xf32>
    %17 = arith.mulf %4, %16 : vector<8x128xf32>
    %c0_9 = arith.constant 0 : index
    %c0_10 = arith.constant 0 : index
    %18 = vector.load %arg2[%c0_9, %c0_10] : memref<8x128xf32, #tpu.memory_space<vmem>>, vector<8x128xf32>
    %c0_11 = arith.constant 0 : index
    %c0_12 = arith.constant 0 : index
    %19 = vector.load %arg3[%c0_11, %c0_12] : memref<8x128xf32, #tpu.memory_space<vmem>>, vector<8x128xf32>
    %20 = arith.mulf %19, %17 : vector<8x128xf32>
    %21 = arith.subf %18, %20 : vector<8x128xf32>
    %cst_13 = arith.constant 0.000000e+00 : f32
    %22 = vector.broadcast %cst_13 : f32 to vector<8x128xf32>
    %23 = arith.maximumf %21, %22 : vector<8x128xf32>
    %24 = math.absf %21 : vector<8x128xf32>
    %cst_14 = arith.constant 0.000000e+00 : f32
    %25 = vector.broadcast %cst_14 : f32 to vector<8x128xf32>
    %26 = arith.subf %25, %24 : vector<8x128xf32>
    %27 = math.exp %26 : vector<8x128xf32>
    %cst_15 = arith.constant 1.000000e+00 : f32
    %28 = vector.broadcast %cst_15 : f32 to vector<8x128xf32>
    %29 = arith.addf %28, %27 : vector<8x128xf32>
    %30 = math.log %29 : vector<8x128xf32>
    %31 = arith.addf %23, %30 : vector<8x128xf32>
    %32 = vector.shape_cast %31 : vector<8x128xf32> to vector<1x8x128xf32>
    %cst_16 = arith.constant dense<0.000000e+00> : vector<1xf32>
    %33 = vector.multi_reduction <add>, %32, %cst_16 [1, 2] : vector<1x8x128xf32> to vector<1xf32>
    %34 = vector.shape_cast %33 : vector<1xf32> to vector<1x1x1xf32>
    %35 = vector.extract %34[0, 0, 0] : f32 from vector<1x1x1xf32>
    %36 = vector.broadcast %35 : f32 to vector<1x8x128xf32>
    %c0_17 = arith.constant 0 : index
    %c0_18 = arith.constant 0 : index
    %c0_19 = arith.constant 0 : index
    %37 = vector.load %arg5[%c0_17, %c0_18, %c0_19] : memref<1x8x128xf32, #tpu.memory_space<vmem>>, vector<1x8x128xf32>
    tpu.vector_store %arg5[%c0_17, %c0_18, %c0_19], %36 {strides = array<i32>} : memref<1x8x128xf32, #tpu.memory_space<vmem>>, vector<1x8x128xf32>,
    return
  }
  func.func @transform_0(%arg0: i32) -> (i32, i32, i32) {
    %c0_i32 = arith.constant 0 : i32
    %c0_i32_0 = arith.constant 0 : i32
    %c0_i32_1 = arith.constant 0 : i32
    return %arg0, %c0_i32, %c0_i32_0 : i32, i32, i32
  }
  func.func @transform_1(%arg0: i32) -> (i32, i32) {
    %c0_i32 = arith.constant 0 : i32
    %c0_i32_0 = arith.constant 0 : i32
    return %arg0, %c0_i32 : i32, i32
  }
  func.func @transform_2(%arg0: i32) -> (i32, i32) {
    %c0_i32 = arith.constant 0 : i32
    %c0_i32_0 = arith.constant 0 : i32
    return %arg0, %c0_i32 : i32, i32
  }
  func.func @transform_3(%arg0: i32) -> (i32, i32, i32) {
    %c0_i32 = arith.constant 0 : i32
    %c0_i32_0 = arith.constant 0 : i32
    %c0_i32_1 = arith.constant 0 : i32
    %c0_i32_2 = arith.constant 0 : i32
    return %c0_i32, %c0_i32_0, %c0_i32_1 : i32, i32, i32
  }
  func.func @transform_4(%arg0: i32) -> (i32, i32, i32) {
    %c0_i32 = arith.constant 0 : i32
    %c0_i32_0 = arith.constant 0 : i32
    %c0_i32_1 = arith.constant 0 : i32
    return %arg0, %c0_i32, %c0_i32_0 : i32, i32, i32
  }
}

</mosaic_0001>

<bundles_post_ra>
// kernel: tpu_custom_call.1
= control target key start
LH: loop header
LB: loop body
LE: loop exit
PB: predicated region body
PF: predicated region fallthrough
CT: control target
= control target key end

     0   :  { %9 = vsyncpa [#allocation3], 0  ;;  %s7558_s0 = inlined_call_operand.hbm [shape: f32[8,128,128], index: 0, kind: input, shape index: {}]   ;;  %s7559_s1 = inlined_call_operand.hbm [shape: f32[8,128], index: 1, kind: input, shape index: {}]   ;;  %s7560_s2 = inlined_call_operand.hbm [shape: f32[8,128], index: 2, kind: input, shape index: {}]   ;;  %s7561_s3 = inlined_call_operand.vmem [shape: f32[1,1,128], index: 3, kind: input, shape index: {}]   ;;  %s7562_s4 = inlined_call_operand.hbm [shape: f32[1,8,128], index: 4, kind: output, shape index: {}]  }
   0x1   :  { %10 = vsyncpa [#allocation6], 0  ;;  %s30_s17 = sshll.u32 %s7559_s1, 4  ;;  %s31_s17 = int_to_ptr.hbm [resolvable:$true] %s30_s17 }
   0x2   :  { %11 = vsyncpa [#allocation4], 0  ;;  %s3981_s18 = smov [#allocation5]   ;;  %s16_s22 = sshll.u32 %s7558_s0, 4  ;;  %s17_s22 = int_to_ptr.hbm [resolvable:$true] %s16_s22 }
   0x3   :  { %s32_s19 = sshll.u32 %s3981_s18, 4  ;;  %s3982_s23 = smov [#allocation2]   ;;  %s33_s19 = int_to_ptr.vmem [resolvable:$true] %s32_s19 }
   0x4   :  { %35 = dma.hbm_to_vmem [thread:$0]  %s31_s17, 128, %s33_s19, [#allocation6]  }
   0x5   :  { %s18_s24 = sshll.u32 %s3982_s23, 4  ;;  %s3983_s25 = smov 128   ;;  %s19_s24 = int_to_ptr.vmem [resolvable:$true] %s18_s24 }
   0x6   :  { %s3984_s26 = smov 8   ;;  %s41_s1 = sshll.u32 %s7560_s2, 4  ;;  %s42_s1 = int_to_ptr.hbm [resolvable:$true] %s41_s1 }
   0x7   :  { %24 = dma.hbm_to_vmem [thread:$0]  %s17_s22, 16384, %s19_s24, [#allocation3], %s3983_s25, %s3983_s25, %s3984_s26  }
   0x8   :  { %s3985_s29 = smov [#allocation7]  }
   0x9   :  { %s43_s30 = sshll.u32 %s3985_s29, 4  ;;  %s44_s30 = int_to_ptr.vmem [resolvable:$true] %s43_s30 }
   0xa   :  { %46 = dma.hbm_to_vmem [thread:$0]  %s42_s1, 128, %s44_s30, [#allocation6]  }
   0xb   :  { %3975 = dma.done.wait [#allocation3], 16384  }
   0xc   :  { %3976 = vsyncadd [#allocation3], 4294950912 }
   0xd   :  { %3977 = dma.done.wait [#allocation6], 256  }
   0xe   :  { %3978 = vsyncadd [#allocation6], 4294967040  ;;  %v4021_v0 = vld [vmem:[#allocation2 + $0x20] sm:$0xff]  ;;  %v4028_v2 = vld [vmem:[#allocation2 + $0x10] sm:$0xff]  ;;  %vm3272_vm14 = vcmask 130112   ;;  %s3591_s6 = sshll.u32 %s7562_s4, 4  ;;  %s3592_s6 = int_to_ptr.hbm [resolvable:$true] %s3591_s6 }
   0xf   :  { %v4026_v1 = vld [vmem:[%s7561_s3] ss:$0 sm:$0xff]  ;;  %v4038_v7 = vld [vmem:[#allocation2 + $0x28] sm:$0xff]  ;;  %v4040_v8 = vld [vmem:[#allocation2 + $0x18] sm:$0xff]  ;;  %s3986_s7 = smov [#allocation8]  }
  0x10   :  { %v4030_v3 = vld [vmem:[#allocation2] sm:$0xff]  ;;  %v197_v4 = vmul.f32 %v4026_v1, %v4021_v0  ;;  %v195_v5 = vmul.f32 %v4026_v1, %v4028_v2  ;;  %v4042_v9 = vld [vmem:[#allocation2 + $0x8] sm:$0xff]  ;;  %v198_v10 = vmul.f32 %v4026_v1, %v4038_v7  ;;  %v196_v11 = vmul.f32 %v4026_v1, %v4040_v8  ;;  %v4052_v14 = vld [vmem:[#allocation2 + $0x38] sm:$0xff]  ;;  %s3589_s8 = sshll.u32 %s3986_s7, 4  ;;  %s3590_s8 = int_to_ptr.vmem [resolvable:$true] %s3589_s8 }
  0x11   :  { %v193_v6 = vmul.f32 %v4026_v1, %v4030_v3  ;;  %v194_v12 = vmul.f32 %v4026_v1, %v4042_v9  ;;  %v4050_v13 = vld [vmem:[#allocation2 + $0x40] sm:$0xff]  ;;  %v4054_v15 = vld [vmem:[#allocation2 + $0x30] sm:$0xff]  ;;  %v200_v17 = vmul.f32 %v4026_v1, %v4052_v14  ;;  %v4062_v19 = vld [vmem:[#allocation2 + $0x58] sm:$0xff] }
  0x12   :  { %329 = vadd.xlane.f32.xlu2 %v197_v4  ;;  %325 = vadd.xlane.f32.xlu1 %v195_v5  ;;  %v201_v16 = vmul.f32 %v4026_v1, %v4050_v13  ;;  %v199_v18 = vmul.f32 %v4026_v1, %v4054_v15  ;;  %v4064_v20 = vld [vmem:[#allocation2 + $0x50] sm:$0xff]  ;;  %v4066_v21 = vld [vmem:[#allocation2 + $0x48] sm:$0xff]  ;;  %v204_v22 = vmul.f32 %v4026_v1, %v4062_v19  ;;  %v4078_v27 = vld [vmem:[#allocation2 + $0x60] sm:$0xff] }
  0x13   :  { %321 = vadd.xlane.f32.xlu0 %v193_v6  ;;  %v203_v23 = vmul.f32 %v4026_v1, %v4064_v20  ;;  %v202_v24 = vmul.f32 %v4026_v1, %v4066_v21  ;;  %v4074_v25 = vld [vmem:[#allocation2 + $0x70] sm:$0xff]  ;;  %v4076_v26 = vld [vmem:[#allocation2 + $0x68] sm:$0xff]  ;;  %v205_v30 = vmul.f32 %v4026_v1, %v4078_v27  ;;  %v4088_v32 = vld [vmem:[#allocation2 + $0x80] sm:$0xff] }
  0x14   :  { %v207_v28 = vmul.f32 %v4026_v1, %v4074_v25  ;;  %v206_v29 = vmul.f32 %v4026_v1, %v4076_v26  ;;  %v4086_v31 = vld [vmem:[#allocation2 + $0x88] sm:$0xff]  ;;  %v4090_v33 = vld [vmem:[#allocation2 + $0x78] sm:$0xff]  ;;  %v209_v35 = vmul.f32 %v4026_v1, %v4088_v32  ;;  %v4098_v37 = vld [vmem:[#allocation2 + $0xa0] sm:$0xff] }
  0x15   :  { %v210_v34 = vmul.f32 %v4026_v1, %v4086_v31  ;;  %v208_v36 = vmul.f32 %v4026_v1, %v4090_v33  ;;  %v4100_v38 = vld [vmem:[#allocation2 + $0x98] sm:$0xff]  ;;  %v4102_v39 = vld [vmem:[#allocation2 + $0x90] sm:$0xff]  ;;  %v213_v40 = vmul.f32 %v4026_v1, %v4098_v37  ;;  %v4114_v45 = vld [vmem:[#allocation2 + $0xa8] sm:$0xff] }
  0x16   :  { %v212_v41 = vmul.f32 %v4026_v1, %v4100_v38  ;;  %v211_v42 = vmul.f32 %v4026_v1, %v4102_v39  ;;  %v4110_v43 = vld [vmem:[#allocation2 + $0xb8] sm:$0xff]  ;;  %v4112_v44 = vld [vmem:[#allocation2 + $0xb0] sm:$0xff]  ;;  %v214_v48 = vmul.f32 %v4026_v1, %v4114_v45  ;;  %v4124_v50 = vld [vmem:[#allocation2 + $0xc8] sm:$0xff] }
  0x17   :  { %v216_v46 = vmul.f32 %v4026_v1, %v4110_v43  ;;  %v215_v47 = vmul.f32 %v4026_v1, %v4112_v44  ;;  %v4122_v49 = vld [vmem:[#allocation2 + $0xd0] sm:$0xff]  ;;  %v4126_v51 = vld [vmem:[#allocation2 + $0xc0] sm:$0xff]  ;;  %v218_v53 = vmul.f32 %v4026_v1, %v4124_v50  ;;  %v4134_v55 = vld [vmem:[#allocation2 + $0xe8] sm:$0xff] }
  0x18   :  { %v219_v52 = vmul.f32 %v4026_v1, %v4122_v49  ;;  %v217_v54 = vmul.f32 %v4026_v1, %v4126_v51  ;;  %v4136_v56 = vld [vmem:[#allocation2 + $0xe0] sm:$0xff]  ;;  %v4138_v57 = vld [vmem:[#allocation2 + $0xd8] sm:$0xff]  ;;  %v222_v58 = vmul.f32 %v4026_v1, %v4134_v55  ;;  %v4150_v63 = vld [vmem:[#allocation2 + $0xf0] sm:$0xff] }
  0x19   :  { %v221_v59 = vmul.f32 %v4026_v1, %v4136_v56  ;;  %v220_v60 = vmul.f32 %v4026_v1, %v4138_v57  ;;  %v4146_v61 = vld [vmem:[#allocation2 + $0x100] sm:$0xff]  ;;  %v4148_v62 = vld [vmem:[#allocation2 + $0xf8] sm:$0xff]  ;;  %v223_v6 = vmul.f32 %v4026_v1, %v4150_v63 }
  0x1a   :  { %331 = vadd.xlane.f32.xlu2 %v198_v10  ;;  %327 = vadd.xlane.f32.xlu1 %v196_v11  ;;  %v225_v4 = vmul.f32 %v4026_v1, %v4146_v61  ;;  %v224_v5 = vmul.f32 %v4026_v1, %v4148_v62  ;;  %v4158_v10 = vld [vmem:[#allocation2 + $0x118] sm:$0xff]  ;;  %v4160_v11 = vld [vmem:[#allocation2 + $0x110] sm:$0xff] }
  0x1b   :  { %323 = vadd.xlane.f32.xlu0 %v194_v12  ;;  %v4162_v12 = vld [vmem:[#allocation2 + $0x108] sm:$0xff] }
  0x22   :  { %337 = vadd.xlane.f32.xlu2 %v201_v16  ;;  %335 = vadd.xlane.f32.xlu1 %v200_v17  ;;  %v228_v16 = vmul.f32 %v4026_v1, %v4158_v10  ;;  %v227_v17 = vmul.f32 %v4026_v1, %v4160_v11 }
  0x23   :  { %333 = vadd.xlane.f32.xlu0 %v199_v18  ;;  %v226_v18 = vmul.f32 %v4026_v1, %v4162_v12 }
  0x2a   :  { %343 = vadd.xlane.f32.xlu2 %v204_v22  ;;  %341 = vadd.xlane.f32.xlu1 %v203_v23  ;;  %v4170_v22 = vld [vmem:[#allocation2 + $0x130] sm:$0xff]  ;;  %v4172_v23 = vld [vmem:[#allocation2 + $0x128] sm:$0xff] }
  0x2b   :  { %339 = vadd.xlane.f32.xlu0 %v202_v24  ;;  %v4174_v24 = vld [vmem:[#allocation2 + $0x120] sm:$0xff] }
  0x32   :  { %349 = vadd.xlane.f32.xlu2 %v207_v28  ;;  %347 = vadd.xlane.f32.xlu1 %v206_v29  ;;  %v231_v28 = vmul.f32 %v4026_v1, %v4170_v22  ;;  %v230_v29 = vmul.f32 %v4026_v1, %v4172_v23 }
  0x33   :  { %345 = vadd.xlane.f32.xlu0 %v205_v30  ;;  %v229_v30 = vmul.f32 %v4026_v1, %v4174_v24 }
  0x3a   :  { %355 = vadd.xlane.f32.xlu2 %v210_v34  ;;  %353 = vadd.xlane.f32.xlu1 %v209_v35  ;;  %v4182_v34 = vld [vmem:[#allocation2 + $0x148] sm:$0xff]  ;;  %v4184_v35 = vld [vmem:[#allocation2 + $0x140] sm:$0xff] }
  0x3b   :  { %351 = vadd.xlane.f32.xlu0 %v208_v36  ;;  %v4186_v36 = vld [vmem:[#allocation2 + $0x138] sm:$0xff] }
  0x42   :  { %361 = vadd.xlane.f32.xlu2 %v213_v40  ;;  %359 = vadd.xlane.f32.xlu1 %v212_v41  ;;  %v234_v40 = vmul.f32 %v4026_v1, %v4182_v34  ;;  %v233_v41 = vmul.f32 %v4026_v1, %v4184_v35 }
  0x43   :  { %357 = vadd.xlane.f32.xlu0 %v211_v42  ;;  %v232_v42 = vmul.f32 %v4026_v1, %v4186_v36 }
  0x4a   :  { %367 = vadd.xlane.f32.xlu2 %v216_v46  ;;  %365 = vadd.xlane.f32.xlu1 %v215_v47  ;;  %v4194_v46 = vld [vmem:[#allocation2 + $0x160] sm:$0xff]  ;;  %v4196_v47 = vld [vmem:[#allocation2 + $0x158] sm:$0xff] }
  0x4b   :  { %363 = vadd.xlane.f32.xlu0 %v214_v48  ;;  %v4198_v48 = vld [vmem:[#allocation2 + $0x150] sm:$0xff] }
  0x52   :  { %373 = vadd.xlane.f32.xlu2 %v219_v52  ;;  %371 = vadd.xlane.f32.xlu1 %v218_v53  ;;  %v237_v52 = vmul.f32 %v4026_v1, %v4194_v46  ;;  %v236_v53 = vmul.f32 %v4026_v1, %v4196_v47 }
  0x53   :  { %369 = vadd.xlane.f32.xlu0 %v217_v54  ;;  %v235_v54 = vmul.f32 %v4026_v1, %v4198_v48 }
  0x5a   :  { %379 = vadd.xlane.f32.xlu2 %v222_v58  ;;  %377 = vadd.xlane.f32.xlu1 %v221_v59  ;;  %v4206_v58 = vld [vmem:[#allocation2 + $0x178] sm:$0xff]  ;;  %v4208_v59 = vld [vmem:[#allocation2 + $0x170] sm:$0xff] }
  0x5b   :  { %375 = vadd.xlane.f32.xlu0 %v220_v60  ;;  %v4210_v60 = vld [vmem:[#allocation2 + $0x168] sm:$0xff] }
  0x62   :  { %385 = vadd.xlane.f32.xlu2 %v225_v4  ;;  %383 = vadd.xlane.f32.xlu1 %v224_v5 }
  0x63   :  { %381 = vadd.xlane.f32.xlu0 %v223_v6 }
  0x6a   :  { %391 = vadd.xlane.f32.xlu2 %v228_v16  ;;  %389 = vadd.xlane.f32.xlu1 %v227_v17  ;;  %v240_v16 = vmul.f32 %v4026_v1, %v4206_v58  ;;  %v239_v17 = vmul.f32 %v4026_v1, %v4208_v59 }
  0x6b   :  { %387 = vadd.xlane.f32.xlu0 %v226_v18  ;;  %v238_v18 = vmul.f32 %v4026_v1, %v4210_v60 }
  0x72   :  { %397 = vadd.xlane.f32.xlu2 %v231_v28  ;;  %395 = vadd.xlane.f32.xlu1 %v230_v29  ;;  %v4224_v28 = vld [vmem:[#allocation2 + $0x190] sm:$0xff]  ;;  %v4226_v29 = vld [vmem:[#allocation2 + $0x188] sm:$0xff] }
  0x73   :  { %393 = vadd.xlane.f32.xlu0 %v229_v30  ;;  %7649 = vst [vmem:[#allocation15_spill] sm:$0xff] %v4226_v29  ;;  %v4228_v30 = vld [vmem:[#allocation2 + $0x180] sm:$0xff] }
  0x74   :  { %7650 = vst [vmem:[#allocation16_spill] sm:$0xff] %v4228_v30 }
  0x7a   :  { %403 = vadd.xlane.f32.xlu2 %v234_v40  ;;  %401 = vadd.xlane.f32.xlu1 %v233_v41 }
  0x7b   :  { %399 = vadd.xlane.f32.xlu0 %v232_v42 }
  0x82   :  { %409 = vadd.xlane.f32.xlu2 %v237_v52  ;;  %407 = vadd.xlane.f32.xlu1 %v236_v53  ;;  %v243_v52 = vmul.f32 %v4026_v1, %v4224_v28  ;;  %v242_v53 = vmul.f32 %v4026_v1, %v4226_v29 }
  0x83   :  { %405 = vadd.xlane.f32.xlu0 %v235_v54  ;;  %v241_v54 = vmul.f32 %v4026_v1, %v4228_v30 }
  0x85   :  { %v4212_v4 = vpop.xlane.xlu2 %329  ;;  %v4214_v5 = vpop.xlane.xlu1 %325 }
  0x86   :  { %7646 = vst [vmem:[#allocation12_spill] sm:$0xff] %v4212_v4  ;;  %v4216_v6 = vpop.xlane.xlu0 %321 }
  0x87   :  { %7647 = vst [vmem:[#allocation13_spill] sm:$0xff] %v4214_v5  ;;  %v4262_v5 = vld [vmem:[#allocation2 + $0x1b8] sm:$0xff] }
  0x88   :  { %7648 = vst [vmem:[#allocation14_spill] sm:$0xff] %v4216_v6 }
  0x89   :  { %7661 = vst [vmem:[#allocation27_spill] sm:$0xff] %v4262_v5 }
  0x8a   :  { %415 = vadd.xlane.f32.xlu2 %v240_v16  ;;  %413 = vadd.xlane.f32.xlu1 %v239_v17  ;;  %v4242_v16 = vld [vmem:[#allocation2 + $0x1a8] sm:$0xff]  ;;  %v4244_v17 = vld [vmem:[#allocation2 + $0x1a0] sm:$0xff] }
  0x8b   :  { %411 = vadd.xlane.f32.xlu0 %v238_v18  ;;  %7654 = vst [vmem:[#allocation20_spill] sm:$0xff] %v4242_v16  ;;  %v4246_v18 = vld [vmem:[#allocation2 + $0x198] sm:$0xff] }
  0x8c   :  { %7655 = vst [vmem:[#allocation21_spill] sm:$0xff] %v4244_v17 }
  0x8d   :  { %v4230_v40 = vpop.xlane.xlu2 %331  ;;  %v4232_v41 = vpop.xlane.xlu1 %327  ;;  %7656 = vst [vmem:[#allocation22_spill] sm:$0xff] %v4246_v18 }
  0x8e   :  { %7651 = vst [vmem:[#allocation17_spill] sm:$0xff] %v4230_v40  ;;  %v4234_v42 = vpop.xlane.xlu0 %323 }
  0x8f   :  { %7652 = vst [vmem:[#allocation18_spill] sm:$0xff] %v4232_v41  ;;  %v246_v41 = vmul.f32 %v4026_v1, %v4242_v16  ;;  %v181_v16 = vld [vmem:[#allocation2 + $0x3c0] sm:$0xff] }
  0x90   :  { %7653 = vst [vmem:[#allocation19_spill] sm:$0xff] %v4234_v42 }
  0x92   :  { %421 = vadd.xlane.f32.xlu2 %v243_v52  ;;  %419 = vadd.xlane.f32.xlu1 %v242_v53  ;;  %v245_v52 = vmul.f32 %v4026_v1, %v4244_v17  ;;  %v244_v53 = vmul.f32 %v4026_v1, %v4246_v18  ;;  %v4280_v18 = vld [vmem:[#allocation2 + $0x1d0] sm:$0xff] }
  0x93   :  { %417 = vadd.xlane.f32.xlu0 %v241_v54  ;;  %v4260_v54 = vld [vmem:[#allocation2 + $0x1c0] sm:$0xff]  ;;  %7667 = vst [vmem:[#allocation33_spill] sm:$0xff] %v4280_v18 }
  0x94   :  { %7660 = vst [vmem:[#allocation26_spill] sm:$0xff] %v4260_v54  ;;  %v249_v17 = vmul.f32 %v4026_v1, %v4260_v54 }
  0x95   :  { %v4248_v4 = vpop.xlane.xlu2 %337  ;;  %v4250_v40 = vpop.xlane.xlu1 %335 }
  0x96   :  { %7657 = vst [vmem:[#allocation23_spill] sm:$0xff] %v4248_v4  ;;  %v4252_v42 = vpop.xlane.xlu0 %333  ;;  %v4264_v4 = vld [vmem:[#allocation2 + $0x1b0] sm:$0xff] }
  0x97   :  { %7658 = vst [vmem:[#allocation24_spill] sm:$0xff] %v4250_v40 }
  0x98   :  { %7659 = vst [vmem:[#allocation25_spill] sm:$0xff] %v4252_v42 }
  0x99   :  { %7662 = vst [vmem:[#allocation28_spill] sm:$0xff] %v4264_v4 }
  0x9a   :  { %427 = vadd.xlane.f32.xlu2 %v246_v41  ;;  %425 = vadd.xlane.f32.xlu1 %v245_v52  ;;  %v248_v41 = vmul.f32 %v4026_v1, %v4262_v5  ;;  %v247_v52 = vmul.f32 %v4026_v1, %v4264_v4  ;;  %v4298_v4 = vld [vmem:[#allocation2 + $0x1e8] sm:$0xff] }
  0x9b   :  { %423 = vadd.xlane.f32.xlu0 %v244_v53  ;;  %v4278_v53 = vld [vmem:[#allocation2 + $0x1d8] sm:$0xff]  ;;  %7673 = vst [vmem:[#allocation39_spill] sm:$0xff] %v4298_v4 }
  0x9c   :  { %7666 = vst [vmem:[#allocation32_spill] sm:$0xff] %v4278_v53  ;;  %v252_v5 = vmul.f32 %v4026_v1, %v4278_v53 }
  0x9d   :  { %v4266_v40 = vpop.xlane.xlu2 %343  ;;  %v4268_v42 = vpop.xlane.xlu1 %341 }
  0x9e   :  { %7663 = vst [vmem:[#allocation29_spill] sm:$0xff] %v4266_v40  ;;  %v4270_v6 = vpop.xlane.xlu0 %339  ;;  %v4282_v40 = vld [vmem:[#allocation2 + $0x1c8] sm:$0xff] }
  0x9f   :  { %7664 = vst [vmem:[#allocation30_spill] sm:$0xff] %v4268_v42 }
  0xa0   :  { %7665 = vst [vmem:[#allocation31_spill] sm:$0xff] %v4270_v6 }
  0xa1   :  { %7668 = vst [vmem:[#allocation34_spill] sm:$0xff] %v4282_v40 }
  0xa2   :  { %433 = vadd.xlane.f32.xlu2 %v249_v17  ;;  %431 = vadd.xlane.f32.xlu1 %v248_v41  ;;  %v251_v17 = vmul.f32 %v4026_v1, %v4280_v18  ;;  %v250_v41 = vmul.f32 %v4026_v1, %v4282_v40  ;;  %v4316_v40 = vld [vmem:[#allocation2 + $0x200] sm:$0xff] }
  0xa3   :  { %429 = vadd.xlane.f32.xlu0 %v247_v52  ;;  %v4296_v52 = vld [vmem:[#allocation2 + $0x1f0] sm:$0xff]  ;;  %7679 = vst [vmem:[#allocation45_spill] sm:$0xff] %v4316_v40 }
  0xa4   :  { %7672 = vst [vmem:[#allocation38_spill] sm:$0xff] %v4296_v52  ;;  %v255_v18 = vmul.f32 %v4026_v1, %v4296_v52 }
  0xa5   :  { %v4284_v42 = vpop.xlane.xlu2 %349  ;;  %v4286_v6 = vpop.xlane.xlu1 %347 }
  0xa6   :  { %7669 = vst [vmem:[#allocation35_spill] sm:$0xff] %v4284_v42  ;;  %v4288_v54 = vpop.xlane.xlu0 %345  ;;  %v4300_v42 = vld [vmem:[#allocation2 + $0x1e0] sm:$0xff] }
  0xa7   :  { %7670 = vst [vmem:[#allocation36_spill] sm:$0xff] %v4286_v6 }
  0xa8   :  { %7671 = vst [vmem:[#allocation37_spill] sm:$0xff] %v4288_v54 }
  0xa9   :  { %7674 = vst [vmem:[#allocation40_spill] sm:$0xff] %v4300_v42 }
  0xaa   :  { %439 = vadd.xlane.f32.xlu2 %v252_v5  ;;  %437 = vadd.xlane.f32.xlu1 %v251_v17  ;;  %v254_v5 = vmul.f32 %v4026_v1, %v4298_v4  ;;  %v253_v17 = vmul.f32 %v4026_v1, %v4300_v42  ;;  %v4334_v42 = vld [vmem:[#allocation2 + $0x218] sm:$0xff] }
  0xab   :  { %435 = vadd.xlane.f32.xlu0 %v250_v41  ;;  %v4314_v41 = vld [vmem:[#allocation2 + $0x208] sm:$0xff]  ;;  %7685 = vst [vmem:[#allocation51_spill] sm:$0xff] %v4334_v42 }
  0xac   :  { %7678 = vst [vmem:[#allocation44_spill] sm:$0xff] %v4314_v41  ;;  %v258_v4 = vmul.f32 %v4026_v1, %v4314_v41 }
  0xad   :  { %v4302_v6 = vpop.xlane.xlu2 %355  ;;  %v4304_v54 = vpop.xlane.xlu1 %353 }
  0xae   :  { %7675 = vst [vmem:[#allocation41_spill] sm:$0xff] %v4302_v6  ;;  %v4306_v53 = vpop.xlane.xlu0 %351  ;;  %v4318_v6 = vld [vmem:[#allocation2 + $0x1f8] sm:$0xff] }
  0xaf   :  { %7676 = vst [vmem:[#allocation42_spill] sm:$0xff] %v4304_v54 }
  0xb0   :  { %7677 = vst [vmem:[#allocation43_spill] sm:$0xff] %v4306_v53 }
  0xb1   :  { %7680 = vst [vmem:[#allocation46_spill] sm:$0xff] %v4318_v6 }
  0xb2   :  { %445 = vadd.xlane.f32.xlu2 %v255_v18  ;;  %443 = vadd.xlane.f32.xlu1 %v254_v5  ;;  %v257_v18 = vmul.f32 %v4026_v1, %v4316_v40  ;;  %v256_v5 = vmul.f32 %v4026_v1, %v4318_v6  ;;  %v4352_v6 = vld [vmem:[#allocation2 + $0x230] sm:$0xff] }
  0xb3   :  { %441 = vadd.xlane.f32.xlu0 %v253_v17  ;;  %v4332_v17 = vld [vmem:[#allocation2 + $0x220] sm:$0xff]  ;;  %7691 = vst [vmem:[#allocation57_spill] sm:$0xff] %v4352_v6 }
  0xb4   :  { %7684 = vst [vmem:[#allocation50_spill] sm:$0xff] %v4332_v17  ;;  %v261_v40 = vmul.f32 %v4026_v1, %v4332_v17 }
  0xb5   :  { %v4320_v54 = vpop.xlane.xlu2 %361  ;;  %v4322_v53 = vpop.xlane.xlu1 %359 }
  0xb6   :  { %7681 = vst [vmem:[#allocation47_spill] sm:$0xff] %v4320_v54  ;;  %v4324_v52 = vpop.xlane.xlu0 %357  ;;  %v4336_v54 = vld [vmem:[#allocation2 + $0x210] sm:$0xff] }
  0xb7   :  { %7682 = vst [vmem:[#allocation48_spill] sm:$0xff] %v4322_v53 }
  0xb8   :  { %7683 = vst [vmem:[#allocation49_spill] sm:$0xff] %v4324_v52 }
  0xb9   :  { %7686 = vst [vmem:[#allocation52_spill] sm:$0xff] %v4336_v54 }
  0xba   :  { %451 = vadd.xlane.f32.xlu2 %v258_v4  ;;  %449 = vadd.xlane.f32.xlu1 %v257_v18  ;;  %v260_v4 = vmul.f32 %v4026_v1, %v4334_v42  ;;  %v259_v18 = vmul.f32 %v4026_v1, %v4336_v54  ;;  %v4370_v54 = vld [vmem:[#allocation2 + $0x248] sm:$0xff] }
  0xbb   :  { %447 = vadd.xlane.f32.xlu0 %v256_v5  ;;  %v4350_v5 = vld [vmem:[#allocation2 + $0x238] sm:$0xff]  ;;  %7697 = vst [vmem:[#allocation63_spill] sm:$0xff] %v4370_v54 }
  0xbc   :  { %7690 = vst [vmem:[#allocation56_spill] sm:$0xff] %v4350_v5  ;;  %v264_v42 = vmul.f32 %v4026_v1, %v4350_v5 }
  0xbd   :  { %v4338_v53 = vpop.xlane.xlu2 %367  ;;  %v4340_v52 = vpop.xlane.xlu1 %365 }
  0xbe   :  { %7687 = vst [vmem:[#allocation53_spill] sm:$0xff] %v4338_v53  ;;  %v4342_v41 = vpop.xlane.xlu0 %363  ;;  %v4354_v53 = vld [vmem:[#allocation2 + $0x228] sm:$0xff] }
  0xbf   :  { %7688 = vst [vmem:[#allocation54_spill] sm:$0xff] %v4340_v52 }
  0xc0   :  { %7689 = vst [vmem:[#allocation55_spill] sm:$0xff] %v4342_v41 }
  0xc1   :  { %7692 = vst [vmem:[#allocation58_spill] sm:$0xff] %v4354_v53 }
  0xc2   :  { %457 = vadd.xlane.f32.xlu2 %v261_v40  ;;  %455 = vadd.xlane.f32.xlu1 %v260_v4  ;;  %v263_v40 = vmul.f32 %v4026_v1, %v4352_v6  ;;  %v262_v4 = vmul.f32 %v4026_v1, %v4354_v53  ;;  %v4388_v53 = vld [vmem:[#allocation2 + $0x260] sm:$0xff] }
  0xc3   :  { %453 = vadd.xlane.f32.xlu0 %v259_v18  ;;  %v4368_v18 = vld [vmem:[#allocation2 + $0x250] sm:$0xff]  ;;  %7703 = vst [vmem:[#allocation69_spill] sm:$0xff] %v4388_v53 }
  0xc4   :  { %7696 = vst [vmem:[#allocation62_spill] sm:$0xff] %v4368_v18  ;;  %v267_v6 = vmul.f32 %v4026_v1, %v4368_v18 }
  0xc5   :  { %v4356_v52 = vpop.xlane.xlu2 %373  ;;  %v4358_v41 = vpop.xlane.xlu1 %371 }
  0xc6   :  { %7693 = vst [vmem:[#allocation59_spill] sm:$0xff] %v4356_v52  ;;  %v4360_v17 = vpop.xlane.xlu0 %369  ;;  %v4372_v52 = vld [vmem:[#allocation2 + $0x240] sm:$0xff] }
  0xc7   :  { %7694 = vst [vmem:[#allocation60_spill] sm:$0xff] %v4358_v41 }
  0xc8   :  { %7695 = vst [vmem:[#allocation61_spill] sm:$0xff] %v4360_v17 }
  0xc9   :  { %7698 = vst [vmem:[#allocation64_spill] sm:$0xff] %v4372_v52 }
  0xca   :  { %463 = vadd.xlane.f32.xlu2 %v264_v42  ;;  %461 = vadd.xlane.f32.xlu1 %v263_v40  ;;  %v266_v42 = vmul.f32 %v4026_v1, %v4370_v54  ;;  %v265_v40 = vmul.f32 %v4026_v1, %v4372_v52  ;;  %v4406_v52 = vld [vmem:[#allocation2 + $0x278] sm:$0xff] }
  0xcb   :  { %459 = vadd.xlane.f32.xlu0 %v262_v4  ;;  %v4386_v4 = vld [vmem:[#allocation2 + $0x268] sm:$0xff]  ;;  %7709 = vst [vmem:[#allocation75_spill] sm:$0xff] %v4406_v52 }
  0xcc   :  { %7702 = vst [vmem:[#allocation68_spill] sm:$0xff] %v4386_v4  ;;  %v270_v54 = vmul.f32 %v4026_v1, %v4386_v4 }
  0xcd   :  { %v4374_v41 = vpop.xlane.xlu2 %379  ;;  %v4376_v17 = vpop.xlane.xlu1 %377 }
  0xce   :  { %7699 = vst [vmem:[#allocation65_spill] sm:$0xff] %v4374_v41  ;;  %v4378_v5 = vpop.xlane.xlu0 %375  ;;  %v4390_v41 = vld [vmem:[#allocation2 + $0x258] sm:$0xff] }
  0xcf   :  { %7700 = vst [vmem:[#allocation66_spill] sm:$0xff] %v4376_v17 }
  0xd0   :  { %7701 = vst [vmem:[#allocation67_spill] sm:$0xff] %v4378_v5 }
  0xd1   :  { %7704 = vst [vmem:[#allocation70_spill] sm:$0xff] %v4390_v41 }
  0xd2   :  { %469 = vadd.xlane.f32.xlu2 %v267_v6  ;;  %467 = vadd.xlane.f32.xlu1 %v266_v42  ;;  %v269_v6 = vmul.f32 %v4026_v1, %v4388_v53  ;;  %v268_v42 = vmul.f32 %v4026_v1, %v4390_v41  ;;  %v4424_v41 = vld [vmem:[#allocation2 + $0x290] sm:$0xff] }
  0xd3   :  { %465 = vadd.xlane.f32.xlu0 %v265_v40  ;;  %v4404_v40 = vld [vmem:[#allocation2 + $0x280] sm:$0xff]  ;;  %7715 = vst [vmem:[#allocation81_spill] sm:$0xff] %v4424_v41 }
  0xd4   :  { %7708 = vst [vmem:[#allocation74_spill] sm:$0xff] %v4404_v40  ;;  %v273_v53 = vmul.f32 %v4026_v1, %v4404_v40 }
  0xd5   :  { %v4392_v17 = vpop.xlane.xlu2 %385  ;;  %v4394_v5 = vpop.xlane.xlu1 %383 }
  0xd6   :  { %7705 = vst [vmem:[#allocation71_spill] sm:$0xff] %v4392_v17  ;;  %v4396_v18 = vpop.xlane.xlu0 %381  ;;  %v4408_v17 = vld [vmem:[#allocation2 + $0x270] sm:$0xff] }
  0xd7   :  { %7706 = vst [vmem:[#allocation72_spill] sm:$0xff] %v4394_v5 }
  0xd8   :  { %7707 = vst [vmem:[#allocation73_spill] sm:$0xff] %v4396_v18 }
  0xd9   :  { %7710 = vst [vmem:[#allocation76_spill] sm:$0xff] %v4408_v17 }
  0xda   :  { %475 = vadd.xlane.f32.xlu2 %v270_v54  ;;  %473 = vadd.xlane.f32.xlu1 %v269_v6  ;;  %v272_v54 = vmul.f32 %v4026_v1, %v4406_v52  ;;  %v271_v6 = vmul.f32 %v4026_v1, %v4408_v17  ;;  %v4442_v17 = vld [vmem:[#allocation2 + $0x2a8] sm:$0xff] }
  0xdb   :  { %471 = vadd.xlane.f32.xlu0 %v268_v42  ;;  %v4422_v42 = vld [vmem:[#allocation2 + $0x298] sm:$0xff]  ;;  %7721 = vst [vmem:[#allocation87_spill] sm:$0xff] %v4442_v17 }
  0xdc   :  { %7714 = vst [vmem:[#allocation80_spill] sm:$0xff] %v4422_v42  ;;  %v276_v52 = vmul.f32 %v4026_v1, %v4422_v42 }
  0xdd   :  { %v4410_v5 = vpop.xlane.xlu2 %391  ;;  %v4412_v18 = vpop.xlane.xlu1 %389 }
  0xde   :  { %7711 = vst [vmem:[#allocation77_spill] sm:$0xff] %v4410_v5  ;;  %v4414_v4 = vpop.xlane.xlu0 %387  ;;  %v4426_v5 = vld [vmem:[#allocation2 + $0x288] sm:$0xff] }
  0xdf   :  { %7712 = vst [vmem:[#allocation78_spill] sm:$0xff] %v4412_v18 }
  0xe0   :  { %7713 = vst [vmem:[#allocation79_spill] sm:$0xff] %v4414_v4 }
  0xe1   :  { %7716 = vst [vmem:[#allocation82_spill] sm:$0xff] %v4426_v5 }
  0xe2   :  { %481 = vadd.xlane.f32.xlu2 %v273_v53  ;;  %479 = vadd.xlane.f32.xlu1 %v272_v54  ;;  %v275_v53 = vmul.f32 %v4026_v1, %v4424_v41  ;;  %v274_v54 = vmul.f32 %v4026_v1, %v4426_v5  ;;  %v4460_v5 = vld [vmem:[#allocation2 + $0x2c0] sm:$0xff] }
  0xe3   :  { %477 = vadd.xlane.f32.xlu0 %v271_v6  ;;  %v4440_v6 = vld [vmem:[#allocation2 + $0x2b0] sm:$0xff]  ;;  %7727 = vst [vmem:[#allocation93_spill] sm:$0xff] %v4460_v5 }
  0xe4   :  { %7720 = vst [vmem:[#allocation86_spill] sm:$0xff] %v4440_v6  ;;  %v279_v41 = vmul.f32 %v4026_v1, %v4440_v6 }
  0xe5   :  { %v4428_v18 = vpop.xlane.xlu2 %397  ;;  %v4430_v4 = vpop.xlane.xlu1 %395 }
  0xe6   :  { %7717 = vst [vmem:[#allocation83_spill] sm:$0xff] %v4428_v18  ;;  %v4432_v40 = vpop.xlane.xlu0 %393  ;;  %v4444_v18 = vld [vmem:[#allocation2 + $0x2a0] sm:$0xff] }
  0xe7   :  { %7718 = vst [vmem:[#allocation84_spill] sm:$0xff] %v4430_v4 }
  0xe8   :  { %7719 = vst [vmem:[#allocation85_spill] sm:$0xff] %v4432_v40 }
  0xe9   :  { %7722 = vst [vmem:[#allocation88_spill] sm:$0xff] %v4444_v18 }
  0xea   :  { %487 = vadd.xlane.f32.xlu2 %v276_v52  ;;  %485 = vadd.xlane.f32.xlu1 %v275_v53  ;;  %v278_v52 = vmul.f32 %v4026_v1, %v4442_v17  ;;  %v277_v53 = vmul.f32 %v4026_v1, %v4444_v18  ;;  %v4478_v18 = vld [vmem:[#allocation2 + $0x2d8] sm:$0xff] }
  0xeb   :  { %483 = vadd.xlane.f32.xlu0 %v274_v54  ;;  %v4458_v54 = vld [vmem:[#allocation2 + $0x2c8] sm:$0xff]  ;;  %7733 = vst [vmem:[#allocation99_spill] sm:$0xff] %v4478_v18 }
  0xec   :  { %7726 = vst [vmem:[#allocation92_spill] sm:$0xff] %v4458_v54  ;;  %v282_v17 = vmul.f32 %v4026_v1, %v4458_v54 }
  0xed   :  { %v4446_v4 = vpop.xlane.xlu2 %403  ;;  %v4448_v40 = vpop.xlane.xlu1 %401 }
  0xee   :  { %7723 = vst [vmem:[#allocation89_spill] sm:$0xff] %v4446_v4  ;;  %v4450_v42 = vpop.xlane.xlu0 %399  ;;  %v4462_v4 = vld [vmem:[#allocation2 + $0x2b8] sm:$0xff] }
  0xef   :  { %7724 = vst [vmem:[#allocation90_spill] sm:$0xff] %v4448_v40 }
  0xf0   :  { %7725 = vst [vmem:[#allocation91_spill] sm:$0xff] %v4450_v42 }
  0xf1   :  { %7728 = vst [vmem:[#allocation94_spill] sm:$0xff] %v4462_v4 }
  0xf2   :  { %493 = vadd.xlane.f32.xlu2 %v279_v41  ;;  %491 = vadd.xlane.f32.xlu1 %v278_v52  ;;  %v281_v41 = vmul.f32 %v4026_v1, %v4460_v5  ;;  %v280_v52 = vmul.f32 %v4026_v1, %v4462_v4  ;;  %v4496_v4 = vld [vmem:[#allocation2 + $0x2f0] sm:$0xff] }
  0xf3   :  { %489 = vadd.xlane.f32.xlu0 %v277_v53  ;;  %v4476_v53 = vld [vmem:[#allocation2 + $0x2e0] sm:$0xff]  ;;  %7739 = vst [vmem:[#allocation105_spill] sm:$0xff] %v4496_v4 }
  0xf4   :  { %7732 = vst [vmem:[#allocation98_spill] sm:$0xff] %v4476_v53  ;;  %v285_v5 = vmul.f32 %v4026_v1, %v4476_v53 }
  0xf5   :  { %v4464_v40 = vpop.xlane.xlu2 %409  ;;  %v4466_v42 = vpop.xlane.xlu1 %407 }
  0xf6   :  { %7729 = vst [vmem:[#allocation95_spill] sm:$0xff] %v4464_v40  ;;  %v4468_v6 = vpop.xlane.xlu0 %405  ;;  %v4480_v40 = vld [vmem:[#allocation2 + $0x2d0] sm:$0xff] }
  0xf7   :  { %7730 = vst [vmem:[#allocation96_spill] sm:$0xff] %v4466_v42 }
  0xf8   :  { %7731 = vst [vmem:[#allocation97_spill] sm:$0xff] %v4468_v6 }
  0xf9   :  { %7734 = vst [vmem:[#allocation100_spill] sm:$0xff] %v4480_v40 }
  0xfa   :  { %499 = vadd.xlane.f32.xlu2 %v282_v17  ;;  %497 = vadd.xlane.f32.xlu1 %v281_v41  ;;  %v284_v17 = vmul.f32 %v4026_v1, %v4478_v18  ;;  %v283_v41 = vmul.f32 %v4026_v1, %v4480_v40  ;;  %v4514_v40 = vld [vmem:[#allocation2 + $0x308] sm:$0xff] }
  0xfb   :  { %495 = vadd.xlane.f32.xlu0 %v280_v52  ;;  %v4494_v52 = vld [vmem:[#allocation2 + $0x2f8] sm:$0xff]  ;;  %7745 = vst [vmem:[#allocation111_spill] sm:$0xff] %v4514_v40 }
  0xfc   :  { %7738 = vst [vmem:[#allocation104_spill] sm:$0xff] %v4494_v52  ;;  %v288_v18 = vmul.f32 %v4026_v1, %v4494_v52 }
  0xfd   :  { %v4482_v42 = vpop.xlane.xlu2 %415  ;;  %v4484_v6 = vpop.xlane.xlu1 %413 }
  0xfe   :  { %7735 = vst [vmem:[#allocation101_spill] sm:$0xff] %v4482_v42  ;;  %v4486_v54 = vpop.xlane.xlu0 %411  ;;  %v4498_v42 = vld [vmem:[#allocation2 + $0x2e8] sm:$0xff] }
  0xff   :  { %7736 = vst [vmem:[#allocation102_spill] sm:$0xff] %v4484_v6 }
 0x100   :  { %7737 = vst [vmem:[#allocation103_spill] sm:$0xff] %v4486_v54 }
 0x101   :  { %7740 = vst [vmem:[#allocation106_spill] sm:$0xff] %v4498_v42 }
 0x102   :  { %505 = vadd.xlane.f32.xlu2 %v285_v5  ;;  %503 = vadd.xlane.f32.xlu1 %v284_v17  ;;  %v287_v5 = vmul.f32 %v4026_v1, %v4496_v4  ;;  %v286_v17 = vmul.f32 %v4026_v1, %v4498_v42  ;;  %v4532_v42 = vld [vmem:[#allocation2 + $0x320] sm:$0xff] }
 0x103   :  { %501 = vadd.xlane.f32.xlu0 %v283_v41  ;;  %v4512_v41 = vld [vmem:[#allocation2 + $0x310] sm:$0xff]  ;;  %7751 = vst [vmem:[#allocation117_spill] sm:$0xff] %v4532_v42 }
 0x104   :  { %7744 = vst [vmem:[#allocation110_spill] sm:$0xff] %v4512_v41  ;;  %v291_v4 = vmul.f32 %v4026_v1, %v4512_v41 }
 0x105   :  { %v4500_v6 = vpop.xlane.xlu2 %421  ;;  %v4502_v54 = vpop.xlane.xlu1 %419 }
 0x106   :  { %7741 = vst [vmem:[#allocation107_spill] sm:$0xff] %v4500_v6  ;;  %v4504_v53 = vpop.xlane.xlu0 %417  ;;  %v4516_v6 = vld [vmem:[#allocation2 + $0x300] sm:$0xff] }
 0x107   :  { %7742 = vst [vmem:[#allocation108_spill] sm:$0xff] %v4502_v54 }
 0x108   :  { %7743 = vst [vmem:[#allocation109_spill] sm:$0xff] %v4504_v53 }
 0x109   :  { %7746 = vst [vmem:[#allocation112_spill] sm:$0xff] %v4516_v6 }
 0x10a   :  { %511 = vadd.xlane.f32.xlu2 %v288_v18  ;;  %509 = vadd.xlane.f32.xlu1 %v287_v5  ;;  %v290_v18 = vmul.f32 %v4026_v1, %v4514_v40  ;;  %v289_v5 = vmul.f32 %v4026_v1, %v4516_v6  ;;  %v4550_v6 = vld [vmem:[#allocation2 + $0x338] sm:$0xff] }
 0x10b   :  { %507 = vadd.xlane.f32.xlu0 %v286_v17  ;;  %v4530_v17 = vld [vmem:[#allocation2 + $0x328] sm:$0xff]  ;;  %7757 = vst [vmem:[#allocation123_spill] sm:$0xff] %v4550_v6 }
 0x10c   :  { %7750 = vst [vmem:[#allocation116_spill] sm:$0xff] %v4530_v17  ;;  %v294_v40 = vmul.f32 %v4026_v1, %v4530_v17 }
 0x10d   :  { %v4518_v54 = vpop.xlane.xlu2 %427  ;;  %v4520_v53 = vpop.xlane.xlu1 %425 }
 0x10e   :  { %7747 = vst [vmem:[#allocation113_spill] sm:$0xff] %v4518_v54  ;;  %v4522_v52 = vpop.xlane.xlu0 %423  ;;  %v4534_v54 = vld [vmem:[#allocation2 + $0x318] sm:$0xff] }
 0x10f   :  { %7748 = vst [vmem:[#allocation114_spill] sm:$0xff] %v4520_v53 }
 0x110   :  { %7749 = vst [vmem:[#allocation115_spill] sm:$0xff] %v4522_v52 }
 0x111   :  { %7752 = vst [vmem:[#allocation118_spill] sm:$0xff] %v4534_v54 }
 0x112   :  { %517 = vadd.xlane.f32.xlu2 %v291_v4  ;;  %515 = vadd.xlane.f32.xlu1 %v290_v18  ;;  %v293_v4 = vmul.f32 %v4026_v1, %v4532_v42  ;;  %v292_v18 = vmul.f32 %v4026_v1, %v4534_v54  ;;  %v4568_v54 = vld [vmem:[#allocation2 + $0x350] sm:$0xff] }
 0x113   :  { %513 = vadd.xlane.f32.xlu0 %v289_v5  ;;  %v4548_v5 = vld [vmem:[#allocation2 + $0x340] sm:$0xff]  ;;  %7763 = vst [vmem:[#allocation129_spill] sm:$0xff] %v4568_v54 }
 0x114   :  { %7756 = vst [vmem:[#allocation122_spill] sm:$0xff] %v4548_v5  ;;  %v297_v42 = vmul.f32 %v4026_v1, %v4548_v5 }
 0x115   :  { %v4536_v53 = vpop.xlane.xlu2 %433  ;;  %v4538_v52 = vpop.xlane.xlu1 %431 }
 0x116   :  { %7753 = vst [vmem:[#allocation119_spill] sm:$0xff] %v4536_v53  ;;  %v4540_v41 = vpop.xlane.xlu0 %429  ;;  %v4552_v53 = vld [vmem:[#allocation2 + $0x330] sm:$0xff] }
 0x117   :  { %7754 = vst [vmem:[#allocation120_spill] sm:$0xff] %v4538_v52 }
 0x118   :  { %7755 = vst [vmem:[#allocation121_spill] sm:$0xff] %v4540_v41 }
 0x119   :  { %7758 = vst [vmem:[#allocation124_spill] sm:$0xff] %v4552_v53 }
 0x11a   :  { %523 = vadd.xlane.f32.xlu2 %v294_v40  ;;  %521 = vadd.xlane.f32.xlu1 %v293_v4  ;;  %v296_v40 = vmul.f32 %v4026_v1, %v4550_v6  ;;  %v295_v4 = vmul.f32 %v4026_v1, %v4552_v53  ;;  %v4586_v53 = vld [vmem:[#allocation2 + $0x368] sm:$0xff] }
 0x11b   :  { %519 = vadd.xlane.f32.xlu0 %v292_v18  ;;  %v4566_v18 = vld [vmem:[#allocation2 + $0x358] sm:$0xff]  ;;  %7769 = vst [vmem:[#allocation135_spill] sm:$0xff] %v4586_v53 }
 0x11c   :  { %7762 = vst [vmem:[#allocation128_spill] sm:$0xff] %v4566_v18  ;;  %v300_v6 = vmul.f32 %v4026_v1, %v4566_v18 }
 0x11d   :  { %v4554_v52 = vpop.xlane.xlu2 %439  ;;  %v4556_v41 = vpop.xlane.xlu1 %437 }
 0x11e   :  { %7759 = vst [vmem:[#allocation125_spill] sm:$0xff] %v4554_v52  ;;  %v4558_v17 = vpop.xlane.xlu0 %435  ;;  %v4570_v52 = vld [vmem:[#allocation2 + $0x348] sm:$0xff] }
 0x11f   :  { %7760 = vst [vmem:[#allocation126_spill] sm:$0xff] %v4556_v41 }
 0x120   :  { %7761 = vst [vmem:[#allocation127_spill] sm:$0xff] %v4558_v17 }
 0x121   :  { %7764 = vst [vmem:[#allocation130_spill] sm:$0xff] %v4570_v52 }
 0x122   :  { %529 = vadd.xlane.f32.xlu2 %v297_v42  ;;  %527 = vadd.xlane.f32.xlu1 %v296_v40  ;;  %v299_v42 = vmul.f32 %v4026_v1, %v4568_v54  ;;  %v298_v40 = vmul.f32 %v4026_v1, %v4570_v52  ;;  %v4604_v52 = vld [vmem:[#allocation2 + $0x380] sm:$0xff] }
 0x123   :  { %525 = vadd.xlane.f32.xlu0 %v295_v4  ;;  %v4584_v4 = vld [vmem:[#allocation2 + $0x370] sm:$0xff]  ;;  %7775 = vst [vmem:[#allocation141_spill] sm:$0xff] %v4604_v52 }
 0x124   :  { %7768 = vst [vmem:[#allocation134_spill] sm:$0xff] %v4584_v4  ;;  %v303_v54 = vmul.f32 %v4026_v1, %v4584_v4 }
 0x125   :  { %v4572_v41 = vpop.xlane.xlu2 %445  ;;  %v4574_v17 = vpop.xlane.xlu1 %443 }
 0x126   :  { %7765 = vst [vmem:[#allocation131_spill] sm:$0xff] %v4572_v41  ;;  %v4576_v5 = vpop.xlane.xlu0 %441  ;;  %v4588_v41 = vld [vmem:[#allocation2 + $0x360] sm:$0xff] }
 0x127   :  { %7766 = vst [vmem:[#allocation132_spill] sm:$0xff] %v4574_v17 }
 0x128   :  { %7767 = vst [vmem:[#allocation133_spill] sm:$0xff] %v4576_v5 }
 0x129   :  { %7770 = vst [vmem:[#allocation136_spill] sm:$0xff] %v4588_v41 }
 0x12a   :  { %535 = vadd.xlane.f32.xlu2 %v300_v6  ;;  %533 = vadd.xlane.f32.xlu1 %v299_v42  ;;  %v302_v6 = vmul.f32 %v4026_v1, %v4586_v53  ;;  %v301_v42 = vmul.f32 %v4026_v1, %v4588_v41  ;;  %v4622_v41 = vld [vmem:[#allocation2 + $0x398] sm:$0xff] }
 0x12b   :  { %531 = vadd.xlane.f32.xlu0 %v298_v40  ;;  %v4602_v40 = vld [vmem:[#allocation2 + $0x388] sm:$0xff]  ;;  %7781 = vst [vmem:[#allocation147_spill] sm:$0xff] %v4622_v41 }
 0x12c   :  { %7774 = vst [vmem:[#allocation140_spill] sm:$0xff] %v4602_v40  ;;  %v306_v53 = vmul.f32 %v4026_v1, %v4602_v40 }
 0x12d   :  { %v4590_v17 = vpop.xlane.xlu2 %451  ;;  %v4592_v5 = vpop.xlane.xlu1 %449 }
 0x12e   :  { %7771 = vst [vmem:[#allocation137_spill] sm:$0xff] %v4590_v17  ;;  %v4594_v18 = vpop.xlane.xlu0 %447  ;;  %v4606_v17 = vld [vmem:[#allocation2 + $0x378] sm:$0xff] }
 0x12f   :  { %7772 = vst [vmem:[#allocation138_spill] sm:$0xff] %v4592_v5 }
 0x130   :  { %7773 = vst [vmem:[#allocation139_spill] sm:$0xff] %v4594_v18 }
 0x131   :  { %7776 = vst [vmem:[#allocation142_spill] sm:$0xff] %v4606_v17 }
 0x132   :  { %541 = vadd.xlane.f32.xlu2 %v303_v54  ;;  %539 = vadd.xlane.f32.xlu1 %v302_v6  ;;  %v305_v54 = vmul.f32 %v4026_v1, %v4604_v52  ;;  %v304_v6 = vmul.f32 %v4026_v1, %v4606_v17  ;;  %v4640_v17 = vld [vmem:[#allocation2 + $0x3b0] sm:$0xff] }
 0x133   :  { %537 = vadd.xlane.f32.xlu0 %v301_v42  ;;  %v4620_v42 = vld [vmem:[#allocation2 + $0x3a0] sm:$0xff]  ;;  %7787 = vst [vmem:[#allocation153_spill] sm:$0xff] %v4640_v17 }
 0x134   :  { %7780 = vst [vmem:[#allocation146_spill] sm:$0xff] %v4620_v42  ;;  %v309_v52 = vmul.f32 %v4026_v1, %v4620_v42 }
 0x135   :  { %v4608_v5 = vpop.xlane.xlu2 %457  ;;  %v4610_v18 = vpop.xlane.xlu1 %455 }
 0x136   :  { %7777 = vst [vmem:[#allocation143_spill] sm:$0xff] %v4608_v5  ;;  %v4612_v4 = vpop.xlane.xlu0 %453  ;;  %v4624_v5 = vld [vmem:[#allocation2 + $0x390] sm:$0xff] }
 0x137   :  { %7778 = vst [vmem:[#allocation144_spill] sm:$0xff] %v4610_v18 }
 0x138   :  { %7779 = vst [vmem:[#allocation145_spill] sm:$0xff] %v4612_v4 }
 0x139   :  { %7782 = vst [vmem:[#allocation148_spill] sm:$0xff] %v4624_v5 }
 0x13a   :  { %547 = vadd.xlane.f32.xlu2 %v306_v53  ;;  %545 = vadd.xlane.f32.xlu1 %v305_v54  ;;  %v308_v53 = vmul.f32 %v4026_v1, %v4622_v41  ;;  %v307_v54 = vmul.f32 %v4026_v1, %v4624_v5  ;;  %v182_v5 = vld [vmem:[#allocation2 + $0x3c8] sm:$0xff] }
 0x13b   :  { %543 = vadd.xlane.f32.xlu0 %v304_v6  ;;  %v4638_v6 = vld [vmem:[#allocation2 + $0x3b8] sm:$0xff]  ;;  %v314_v30 = vmul.f32 %v4026_v1, %v182_v5 }
 0x13c   :  { %7786 = vst [vmem:[#allocation152_spill] sm:$0xff] %v4638_v6  ;;  %v312_v41 = vmul.f32 %v4026_v1, %v4638_v6 }
 0x13d   :  { %v4626_v18 = vpop.xlane.xlu2 %463  ;;  %v4628_v4 = vpop.xlane.xlu1 %461 }
 0x13e   :  { %7783 = vst [vmem:[#allocation149_spill] sm:$0xff] %v4626_v18  ;;  %v4630_v40 = vpop.xlane.xlu0 %459  ;;  %v4642_v18 = vld [vmem:[#allocation2 + $0x3a8] sm:$0xff] }
 0x13f   :  { %7784 = vst [vmem:[#allocation150_spill] sm:$0xff] %v4628_v4 }
 0x140   :  { %7785 = vst [vmem:[#allocation151_spill] sm:$0xff] %v4630_v40 }
 0x141   :  { %7788 = vst [vmem:[#allocation154_spill] sm:$0xff] %v4642_v18 }
 0x142   :  { %553 = vadd.xlane.f32.xlu2 %v309_v52  ;;  %551 = vadd.xlane.f32.xlu1 %v308_v53  ;;  %v311_v52 = vmul.f32 %v4026_v1, %v4640_v17  ;;  %v310_v53 = vmul.f32 %v4026_v1, %v4642_v18  ;;  %v313_v17 = vmul.f32 %v4026_v1, %v181_v16  ;;  %v187_v16 = vld [vmem:[#allocation2 + $0x3f0] sm:$0xff] }
 0x143   :  { %549 = vadd.xlane.f32.xlu0 %v307_v54  ;;  %v183_v54 = vld [vmem:[#allocation2 + $0x3d0] sm:$0xff] }
 0x144   :  { %v315_v6 = vmul.f32 %v4026_v1, %v183_v54 }
 0x145   :  { %v4644_v4 = vpop.xlane.xlu2 %469  ;;  %v4646_v40 = vpop.xlane.xlu1 %467 }
 0x146   :  { %7789 = vst [vmem:[#allocation155_spill] sm:$0xff] %v4644_v4  ;;  %v4648_v42 = vpop.xlane.xlu0 %465 }
 0x147   :  { %7790 = vst [vmem:[#allocation156_spill] sm:$0xff] %v4646_v40 }
 0x148   :  { %7791 = vst [vmem:[#allocation157_spill] sm:$0xff] %v4648_v42 }
 0x14a   :  { %559 = vadd.xlane.f32.xlu2 %v312_v41  ;;  %557 = vadd.xlane.f32.xlu1 %v311_v52  ;;  %v186_v41 = vld [vmem:[#allocation2 + $0x3e8] sm:$0xff]  ;;  %v185_v52 = vld [vmem:[#allocation2 + $0x3e0] sm:$0xff] }
 0x14b   :  { %555 = vadd.xlane.f32.xlu0 %v310_v53  ;;  %v184_v53 = vld [vmem:[#allocation2 + $0x3d8] sm:$0xff]  ;;  %v317_v54 = vmul.f32 %v4026_v1, %v185_v52  ;;  %v319_v52 = vmul.f32 %v4026_v1, %v187_v16 }
 0x14c   :  { %v316_v5 = vmul.f32 %v4026_v1, %v184_v53 }
 0x14d   :  { %v4656_v4 = vpop.xlane.xlu2 %475  ;;  %v4658_v40 = vpop.xlane.xlu1 %473 }
 0x14e   :  { %7792 = vst [vmem:[#allocation158_spill] sm:$0xff] %v4656_v4  ;;  %v4660_v42 = vpop.xlane.xlu0 %471 }
 0x14f   :  { %7793 = vst [vmem:[#allocation159_spill] sm:$0xff] %v4658_v40  ;;  %v318_v40 = vmul.f32 %v4026_v1, %v186_v41  ;;  %v577_v41 = vmul.f32 %v4030_v3, %v4030_v3  ;;  %v578_v3 = vmul.f32 %v4042_v9, %v4042_v9 }
 0x150   :  { %7794 = vst [vmem:[#allocation160_spill] sm:$0xff] %v4660_v42 }
 0x152   :  { %565 = vadd.xlane.f32.xlu2 %v315_v6  ;;  %563 = vadd.xlane.f32.xlu1 %v314_v30  ;;  %v188_v30 = vld [vmem:[#allocation2 + $0x3f8] sm:$0xff] }
 0x153   :  { %561 = vadd.xlane.f32.xlu0 %v313_v17 }
 0x155   :  { %v4665_v18 = vpop.xlane.xlu2 %481  ;;  %v4667_v29 = vpop.xlane.xlu1 %479 }
 0x156   :  { %7795 = vst [vmem:[#allocation161_spill] sm:$0xff] %v4665_v18  ;;  %v4669_v4 = vpop.xlane.xlu0 %477  ;;  %v7915_v18 = vld [vmem:[#allocation111_spill] sm:$0xff] }
 0x157   :  { %7796 = vst [vmem:[#allocation162_spill] sm:$0xff] %v4667_v29  ;;  %v320_v29 = vmul.f32 %v4026_v1, %v188_v30  ;;  %v580_v30 = vmul.f32 %v4040_v8, %v4040_v8  ;;  %v581_v8 = vmul.f32 %v4021_v0, %v4021_v0 }
 0x158   :  { %7797 = vst [vmem:[#allocation163_spill] sm:$0xff] %v4669_v4  ;;  %v7865_v4 = vld [vmem:[#allocation45_spill] sm:$0xff] }
 0x15a   :  { %571 = vadd.xlane.f32.xlu2 %v318_v40  ;;  %569 = vadd.xlane.f32.xlu1 %v317_v54 }
 0x15b   :  { %567 = vadd.xlane.f32.xlu0 %v316_v5  ;;  %v579_v5 = vmul.f32 %v4028_v2, %v4028_v2  ;;  %v583_v2 = vmul.f32 %v4054_v15, %v4054_v15  ;;  %v584_v15 = vmul.f32 %v4052_v14, %v4052_v14 }
 0x15d   :  { %v4674_v17 = vpop.xlane.xlu2 %487  ;;  %v4676_v6 = vpop.xlane.xlu1 %485 }
 0x15e   :  { %7798 = vst [vmem:[#allocation164_spill] sm:$0xff] %v4674_v17  ;;  %v4678_v42 = vpop.xlane.xlu0 %483 }
 0x15f   :  { %7799 = vst [vmem:[#allocation165_spill] sm:$0xff] %v4676_v6  ;;  %v7914_v6 = vld [vmem:[#allocation110_spill] sm:$0xff] }
 0x160   :  { %7800 = vst [vmem:[#allocation166_spill] sm:$0xff] %v4678_v42 }
 0x162   :  { %575 = vadd.xlane.f32.xlu1 %v320_v29  ;;  %705 = vadd.xlane.f32.xlu2 %v577_v41  ;;  %v582_v41 = vmul.f32 %v4038_v7, %v4038_v7  ;;  %v586_v7 = vmul.f32 %v4066_v21, %v4066_v21  ;;  %v587_v21 = vmul.f32 %v4064_v20, %v4064_v20 }
 0x163   :  { %573 = vadd.xlane.f32.xlu0 %v319_v52 }
 0x165   :  { %v4684_v40 = vpop.xlane.xlu2 %493  ;;  %v4686_v53 = vpop.xlane.xlu1 %491 }
 0x166   :  { %7801 = vst [vmem:[#allocation167_spill] sm:$0xff] %v4684_v40  ;;  %v4688_v54 = vpop.xlane.xlu0 %489 }
 0x167   :  { %7802 = vst [vmem:[#allocation168_spill] sm:$0xff] %v4686_v53 }
 0x168   :  { %7803 = vst [vmem:[#allocation169_spill] sm:$0xff] %v4688_v54 }
 0x16a   :  { %709 = vadd.xlane.f32.xlu1 %v579_v5  ;;  %711 = vadd.xlane.f32.xlu2 %v580_v30  ;;  %v585_v30 = vmul.f32 %v4050_v13, %v4050_v13  ;;  %v589_v13 = vmul.f32 %v4078_v27, %v4078_v27  ;;  %v590_v27 = vmul.f32 %v4076_v26, %v4076_v26 }
 0x16b   :  { %707 = vadd.xlane.f32.xlu0 %v578_v3 }
 0x16d   :  { %v4696_v1 = vpop.xlane.xlu2 %499  ;;  %v4698_v29 = vpop.xlane.xlu1 %497 }
 0x16e   :  { %7804 = vst [vmem:[#allocation170_spill] sm:$0xff] %v4696_v1  ;;  %v4700_v16 = vpop.xlane.xlu0 %495 }
 0x16f   :  { %7805 = vst [vmem:[#allocation171_spill] sm:$0xff] %v4698_v29 }
 0x170   :  { %7806 = vst [vmem:[#allocation172_spill] sm:$0xff] %v4700_v16  ;;  %v7891_v16 = vld [vmem:[#allocation81_spill] sm:$0xff] }
 0x172   :  { %715 = vadd.xlane.f32.xlu1 %v582_v41  ;;  %717 = vadd.xlane.f32.xlu2 %v583_v2  ;;  %v588_v2 = vmul.f32 %v4062_v19, %v4062_v19  ;;  %v592_v19 = vmul.f32 %v4090_v33, %v4090_v33  ;;  %v593_v33 = vmul.f32 %v4088_v32, %v4088_v32 }
 0x173   :  { %713 = vadd.xlane.f32.xlu0 %v581_v8 }
 0x175   :  { %v4708_v9 = vpop.xlane.xlu2 %505  ;;  %v4710_v52 = vpop.xlane.xlu1 %503 }
 0x176   :  { %7807 = vst [vmem:[#allocation173_spill] sm:$0xff] %v4708_v9  ;;  %v4712_v5 = vpop.xlane.xlu0 %501 }
 0x177   :  { %7808 = vst [vmem:[#allocation174_spill] sm:$0xff] %v4710_v52 }
 0x178   :  { %7809 = vst [vmem:[#allocation175_spill] sm:$0xff] %v4712_v5 }
 0x17a   :  { %721 = vadd.xlane.f32.xlu1 %v585_v30  ;;  %723 = vadd.xlane.f32.xlu2 %v586_v7  ;;  %v591_v7 = vmul.f32 %v4074_v25, %v4074_v25  ;;  %v595_v25 = vmul.f32 %v4102_v39, %v4102_v39  ;;  %v596_v39 = vmul.f32 %v4100_v38, %v4100_v38 }
 0x17b   :  { %719 = vadd.xlane.f32.xlu0 %v584_v15 }
 0x17d   :  { %v4720_v0 = vpop.xlane.xlu2 %511  ;;  %v4722_v3 = vpop.xlane.xlu1 %509 }
 0x17e   :  { %7810 = vst [vmem:[#allocation176_spill] sm:$0xff] %v4720_v0  ;;  %v4724_v41 = vpop.xlane.xlu0 %507 }
 0x17f   :  { %7811 = vst [vmem:[#allocation177_spill] sm:$0xff] %v4722_v3 }
 0x180   :  { %7812 = vst [vmem:[#allocation178_spill] sm:$0xff] %v4724_v41 }
 0x182   :  { %727 = vadd.xlane.f32.xlu1 %v588_v2  ;;  %729 = vadd.xlane.f32.xlu2 %v589_v13  ;;  %v594_v13 = vmul.f32 %v4086_v31, %v4086_v31 }
 0x183   :  { %725 = vadd.xlane.f32.xlu0 %v587_v21 }
 0x185   :  { %v4732_v14 = vpop.xlane.xlu2 %517  ;;  %v4734_v8 = vpop.xlane.xlu1 %515 }
 0x186   :  { %7813 = vst [vmem:[#allocation179_spill] sm:$0xff] %v4732_v14  ;;  %v4736_v30 = vpop.xlane.xlu0 %513 }
 0x187   :  { %7814 = vst [vmem:[#allocation180_spill] sm:$0xff] %v4734_v8 }
 0x188   :  { %7815 = vst [vmem:[#allocation181_spill] sm:$0xff] %v4736_v30 }
 0x18a   :  { %733 = vadd.xlane.f32.xlu1 %v591_v7  ;;  %735 = vadd.xlane.f32.xlu2 %v592_v19  ;;  %v597_v7 = vmul.f32 %v4098_v37, %v4098_v37  ;;  %v598_v19 = vmul.f32 %v4114_v45, %v4114_v45  ;;  %v601_v37 = vmul.f32 %v4126_v51, %v4126_v51 }
 0x18b   :  { %731 = vadd.xlane.f32.xlu0 %v590_v27  ;;  %v599_v45 = vmul.f32 %v4112_v44, %v4112_v44  ;;  %v602_v51 = vmul.f32 %v4124_v50, %v4124_v50 }
 0x18d   :  { %v4744_v20 = vpop.xlane.xlu2 %523  ;;  %v4746_v15 = vpop.xlane.xlu1 %521 }
 0x18e   :  { %7816 = vst [vmem:[#allocation182_spill] sm:$0xff] %v4744_v20  ;;  %v4748_v2 = vpop.xlane.xlu0 %519  ;;  %v7896_v20 = vld [vmem:[#allocation92_spill] sm:$0xff] }
 0x18f   :  { %7817 = vst [vmem:[#allocation183_spill] sm:$0xff] %v4746_v15 }
 0x190   :  { %7818 = vst [vmem:[#allocation184_spill] sm:$0xff] %v4748_v2  ;;  %v7902_v2 = vld [vmem:[#allocation98_spill] sm:$0xff] }
 0x192   :  { %739 = vadd.xlane.f32.xlu1 %v594_v13  ;;  %741 = vadd.xlane.f32.xlu2 %v595_v25  ;;  %v600_v13 = vmul.f32 %v4110_v43, %v4110_v43  ;;  %v604_v43 = vmul.f32 %v4138_v57, %v4138_v57  ;;  %v605_v57 = vmul.f32 %v4136_v56, %v4136_v56 }
 0x193   :  { %737 = vadd.xlane.f32.xlu0 %v593_v33 }
 0x195   :  { %v4756_v26 = vpop.xlane.xlu2 %529  ;;  %v4758_v21 = vpop.xlane.xlu1 %527 }
 0x196   :  { %7819 = vst [vmem:[#allocation185_spill] sm:$0xff] %v4756_v26  ;;  %v4764_v31 = vpop.xlane.xlu0 %525  ;;  %v7879_v26 = vld [vmem:[#allocation68_spill] sm:$0xff] }
 0x197   :  { %7820 = vst [vmem:[#allocation186_spill] sm:$0xff] %v4758_v21 }
 0x198   :  { %7821 = vst [vmem:[#allocation187_spill] sm:$0xff] %v4764_v31  ;;  %v7893_v31 = vld [vmem:[#allocation86_spill] sm:$0xff] }
 0x19a   :  { %745 = vadd.xlane.f32.xlu1 %v597_v7  ;;  %747 = vadd.xlane.f32.xlu2 %v598_v19  ;;  %v603_v7 = vmul.f32 %v4122_v49, %v4122_v49  ;;  %v607_v49 = vmul.f32 %v4150_v63, %v4150_v63  ;;  %v608_v63 = vmul.f32 %v4148_v62, %v4148_v62 }
 0x19b   :  { %743 = vadd.xlane.f32.xlu0 %v596_v39 }
 0x19d   :  { %v4768_v32 = vpop.xlane.xlu2 %535  ;;  %v4770_v27 = vpop.xlane.xlu1 %533 }
 0x19e   :  { %7822 = vst [vmem:[#allocation188_spill] sm:$0xff] %v4768_v32  ;;  %v4776_v25 = vpop.xlane.xlu0 %531  ;;  %v7866_v32 = vld [vmem:[#allocation46_spill] sm:$0xff] }
 0x19f   :  { %7823 = vst [vmem:[#allocation189_spill] sm:$0xff] %v4770_v27  ;;  %v7870_v27 = vld [vmem:[#allocation52_spill] sm:$0xff] }
 0x1a0   :  { %7824 = vst [vmem:[#allocation190_spill] sm:$0xff] %v4776_v25 }
 0x1a2   :  { %751 = vadd.xlane.f32.xlu1 %v600_v13  ;;  %753 = vadd.xlane.f32.xlu2 %v601_v37  ;;  %v606_v13 = vmul.f32 %v4134_v55, %v4134_v55  ;;  %v610_v55 = vmul.f32 %v4162_v12, %v4162_v12  ;;  %v611_v12 = vmul.f32 %v4160_v11, %v4160_v11 }
 0x1a3   :  { %749 = vadd.xlane.f32.xlu0 %v599_v45 }
 0x1a5   :  { %v4780_v38 = vpop.xlane.xlu2 %541  ;;  %v4782_v33 = vpop.xlane.xlu1 %539 }
 0x1a6   :  { %7825 = vst [vmem:[#allocation191_spill] sm:$0xff] %v4780_v38  ;;  %v4788_v19 = vpop.xlane.xlu0 %537  ;;  %v7853_v38 = vld [vmem:[#allocation33_spill] sm:$0xff] }
 0x1a7   :  { %7826 = vst [vmem:[#allocation192_spill] sm:$0xff] %v4782_v33  ;;  %v7856_v33 = vld [vmem:[#allocation34_spill] sm:$0xff] }
 0x1a8   :  { %7827 = vst [vmem:[#allocation193_spill] sm:$0xff] %v4788_v19  ;;  %v4914_v3 = vmul.f32 %v7856_v33, %v7856_v33 }
 0x1aa   :  { %757 = vadd.xlane.f32.xlu1 %v603_v7  ;;  %759 = vadd.xlane.f32.xlu2 %v604_v43  ;;  %v609_v7 = vmul.f32 %v4146_v61, %v4146_v61  ;;  %v613_v61 = vmul.f32 %v4174_v24, %v4174_v24  ;;  %v614_v24 = vmul.f32 %v4172_v23, %v4172_v23 }
 0x1ab   :  { %755 = vadd.xlane.f32.xlu0 %v602_v51  ;;  %v621_v23 = vmul.f32 %v4194_v46, %v4194_v46  ;;  %v7843_v46 = vld [vmem:[#allocation15_spill] sm:$0xff] }
 0x1ad   :  { %v4792_v44 = vpop.xlane.xlu2 %547  ;;  %v4794_v39 = vpop.xlane.xlu1 %545 }
 0x1ae   :  { %7828 = vst [vmem:[#allocation194_spill] sm:$0xff] %v4792_v44  ;;  %v4800_v37 = vpop.xlane.xlu0 %543  ;;  %v3267_v44 = vlaneseq }
 0x1af   :  { %7829 = vst [vmem:[#allocation195_spill] sm:$0xff] %v4794_v39 }
 0x1b0   :  { %7830 = vst [vmem:[#allocation196_spill] sm:$0xff] %v4800_v37  ;;  %v7849_v37 = vld [vmem:[#allocation27_spill] sm:$0xff] }
 0x1b2   :  { %763 = vadd.xlane.f32.xlu1 %v606_v13  ;;  %765 = vadd.xlane.f32.xlu2 %v607_v49  ;;  %v612_v13 = vmul.f32 %v4158_v10, %v4158_v10  ;;  %v616_v10 = vmul.f32 %v4186_v36, %v4186_v36  ;;  %v617_v36 = vmul.f32 %v4184_v35, %v4184_v35 }
 0x1b3   :  { %761 = vadd.xlane.f32.xlu0 %v605_v57  ;;  %v4868_v35 = vmul.f32 %v4224_v28, %v4224_v28 }
 0x1b5   :  { %v4804_v50 = vpop.xlane.xlu2 %553  ;;  %v4806_v45 = vpop.xlane.xlu1 %551 }
 0x1b6   :  { %7831 = vst [vmem:[#allocation197_spill] sm:$0xff] %v4804_v50  ;;  %v4812_v43 = vpop.xlane.xlu0 %549  ;;  %v7895_v50 = vld [vmem:[#allocation88_spill] sm:$0xff] }
 0x1b7   :  { %7832 = vst [vmem:[#allocation198_spill] sm:$0xff] %v4806_v45  ;;  %v7898_v45 = vld [vmem:[#allocation93_spill] sm:$0xff] }
 0x1b8   :  { %7833 = vst [vmem:[#allocation199_spill] sm:$0xff] %v4812_v43  ;;  %v5035_v53 = vmul.f32 %v7898_v45, %v7898_v45  ;;  %v7904_v45 = vld [vmem:[#allocation99_spill] sm:$0xff] }
 0x1b9   :  { %v5054_v14 = vmul.f32 %v7904_v45, %v7904_v45 }
 0x1ba   :  { %769 = vadd.xlane.f32.xlu1 %v609_v7  ;;  %771 = vadd.xlane.f32.xlu2 %v610_v55  ;;  %v615_v7 = vmul.f32 %v4170_v22, %v4170_v22  ;;  %v619_v22 = vmul.f32 %v4198_v48, %v4198_v48  ;;  %v622_v48 = vmul.f32 %v4210_v60, %v4210_v60 }
 0x1bb   :  { %767 = vadd.xlane.f32.xlu0 %v608_v63  ;;  %7899 = vst [vmem:[#allocation46_spill] sm:$0xff] %v5035_v53 }
 0x1bc   :  { %7905 = vst [vmem:[#allocation52_spill] sm:$0xff] %v5054_v14 }
 0x1bd   :  { %v4816_v56 = vpop.xlane.xlu2 %559  ;;  %v4818_v51 = vpop.xlane.xlu1 %557 }
 0x1be   :  { %7834 = vst [vmem:[#allocation200_spill] sm:$0xff] %v4816_v56  ;;  %v4824_v49 = vpop.xlane.xlu0 %555  ;;  %v7878_v56 = vld [vmem:[#allocation64_spill] sm:$0xff] }
 0x1bf   :  { %7835 = vst [vmem:[#allocation201_spill] sm:$0xff] %v4818_v51 }
 0x1c0   :  { %7836 = vst [vmem:[#allocation202_spill] sm:$0xff] %v4824_v49  ;;  %v7892_v49 = vld [vmem:[#allocation82_spill] sm:$0xff] }
 0x1c2   :  { %775 = vadd.xlane.f32.xlu1 %v612_v13  ;;  %777 = vadd.xlane.f32.xlu2 %v613_v61  ;;  %v618_v13 = vmul.f32 %v4182_v34, %v4182_v34  ;;  %v4862_v34 = vmul.f32 %v4208_v59, %v4208_v59  ;;  %v7845_v59 = vld [vmem:[#allocation20_spill] sm:$0xff] }
 0x1c3   :  { %773 = vadd.xlane.f32.xlu0 %v611_v12  ;;  %v620_v12 = vmul.f32 %v4196_v47, %v4196_v47  ;;  %v4872_v47 = vmul.f32 %v7843_v46, %v7843_v46 }
 0x1c5   :  { %v4828_v62 = vpop.xlane.xlu2 %565  ;;  %v4830_v57 = vpop.xlane.xlu1 %563 }
 0x1c6   :  { %7837 = vst [vmem:[#allocation203_spill] sm:$0xff] %v4828_v62  ;;  %v4836_v55 = vpop.xlane.xlu0 %561  ;;  %v7864_v62 = vld [vmem:[#allocation44_spill] sm:$0xff] }
 0x1c7   :  { %7838 = vst [vmem:[#allocation204_spill] sm:$0xff] %v4830_v57  ;;  %v4934_v33 = vmul.f32 %v7864_v62, %v7864_v62  ;;  %v4954_v62 = vmul.f32 %v7870_v27, %v7870_v27  ;;  %v7876_v27 = vld [vmem:[#allocation63_spill] sm:$0xff] }
 0x1c8   :  { %7839 = vst [vmem:[#allocation205_spill] sm:$0xff] %v4836_v55  ;;  %v4975_v5 = vmul.f32 %v7876_v27, %v7876_v27  ;;  %v7885_v27 = vld [vmem:[#allocation74_spill] sm:$0xff] }
 0x1c9   :  { %v4995_v51 = vmul.f32 %v7885_v27, %v7885_v27  ;;  %v5015_v27 = vmul.f32 %v7892_v49, %v7892_v49 }
 0x1ca   :  { %781 = vadd.xlane.f32.xlu1 %v615_v7  ;;  %783 = vadd.xlane.f32.xlu2 %v616_v10  ;;  %v4858_v7 = vmul.f32 %v4206_v58, %v4206_v58  ;;  %v7844_v10 = vld [vmem:[#allocation16_spill] sm:$0xff]  ;;  %7877 = vst [vmem:[#allocation33_spill] sm:$0xff] %v4975_v5 }
 0x1cb   :  { %779 = vadd.xlane.f32.xlu0 %v614_v24  ;;  %v4876_v58 = vmul.f32 %v7844_v10, %v7844_v10  ;;  %v4880_v24 = vmul.f32 %v7845_v59, %v7845_v59  ;;  %v4896_v10 = vmul.f32 %v7849_v37, %v7849_v37  ;;  %v7857_v37 = vld [vmem:[#allocation38_spill] sm:$0xff] }
 0x1cc   :  { %v4918_v41 = vmul.f32 %v7857_v37, %v7857_v37  ;;  %v4938_v37 = vmul.f32 %v7865_v4, %v7865_v4  ;;  %v7871_v4 = vld [vmem:[#allocation56_spill] sm:$0xff] }
 0x1cd   :  { %v4840_v11 = vpop.xlane.xlu2 %571  ;;  %v4842_v63 = vpop.xlane.xlu1 %569  ;;  %v4959_v57 = vmul.f32 %v7871_v4, %v7871_v4  ;;  %v4979_v4 = vmul.f32 %v7878_v56, %v7878_v56  ;;  %v7886_v56 = vld [vmem:[#allocation75_spill] sm:$0xff] }
 0x1ce   :  { %7840 = vst [vmem:[#allocation206_spill] sm:$0xff] %v4840_v11  ;;  %v4848_v61 = vpop.xlane.xlu0 %567  ;;  %v7848_v11 = vld [vmem:[#allocation26_spill] sm:$0xff]  ;;  %v4999_v29 = vmul.f32 %v7886_v56, %v7886_v56  ;;  %v5019_v56 = vmul.f32 %v7893_v31, %v7893_v31 }
 0x1cf   :  { %7841 = vst [vmem:[#allocation207_spill] sm:$0xff] %v4842_v63  ;;  %v4892_v46 = vmul.f32 %v7848_v11, %v7848_v11  ;;  %v7851_v63 = vld [vmem:[#allocation32_spill] sm:$0xff]  ;;  %v7900_v31 = vld [vmem:[#allocation94_spill] sm:$0xff] }
 0x1d0   :  { %7842 = vst [vmem:[#allocation208_spill] sm:$0xff] %v4848_v61  ;;  %v5039_v54 = vmul.f32 %v7900_v31, %v7900_v31  ;;  %v7906_v31 = vld [vmem:[#allocation100_spill] sm:$0xff] }
 0x1d2   :  { %787 = vadd.xlane.f32.xlu1 %v618_v13  ;;  %789 = vadd.xlane.f32.xlu2 %v619_v22  ;;  %v7846_v13 = vld [vmem:[#allocation21_spill] sm:$0xff]  ;;  %v7847_v22 = vld [vmem:[#allocation22_spill] sm:$0xff] }
 0x1d3   :  { %785 = vadd.xlane.f32.xlu0 %v617_v36  ;;  %v4884_v60 = vmul.f32 %v7846_v13, %v7846_v13  ;;  %v4888_v28 = vmul.f32 %v7847_v22, %v7847_v22  ;;  %v7850_v36 = vld [vmem:[#allocation28_spill] sm:$0xff]  ;;  %v4904_v13 = vmul.f32 %v7851_v63, %v7851_v63  ;;  %v4908_v22 = vmul.f32 %v7853_v38, %v7853_v38 }
 0x1d4   :  { %v4900_v59 = vmul.f32 %v7850_v36, %v7850_v36  ;;  %7858 = vst [vmem:[#allocation21_spill] sm:$0xff] %v4918_v41  ;;  %v7859_v36 = vld [vmem:[#allocation39_spill] sm:$0xff]  ;;  %v7862_v38 = vld [vmem:[#allocation40_spill] sm:$0xff] }
 0x1d5   :  { %7852 = vst [vmem:[#allocation15_spill] sm:$0xff] %v4904_v13  ;;  %v4910_v0 = vpop.xlane.xlu1 %575  ;;  %v706_v11 = vpop.xlane.xlu2 %705  ;;  %v4922_v61 = vmul.f32 %v7859_v36, %v7859_v36  ;;  %v4942_v36 = vmul.f32 %v7866_v32, %v7866_v32  ;;  %v7872_v32 = vld [vmem:[#allocation57_spill] sm:$0xff] }
 0x1d6   :  { %7854 = vst [vmem:[#allocation16_spill] sm:$0xff] %v4908_v22  ;;  %v4924_v63 = vmax.f32 %v706_v11, 1e-24  ;;  %v4926_v19 = vpop.xlane.xlu0 %573  ;;  %v7868_v11 = vld [vmem:[#allocation50_spill] sm:$0xff]  ;;  %v4963_v52 = vmul.f32 %v7872_v32, %v7872_v32  ;;  %v4983_v32 = vmul.f32 %v7879_v26, %v7879_v26  ;;  %v7888_v26 = vld [vmem:[#allocation76_spill] sm:$0xff] }
 0x1d7   :  { %7855 = vst [vmem:[#allocation20_spill] sm:$0xff] %v4910_v0  ;;  %v4930_v0 = vmul.f32 %v7862_v38, %v7862_v38  ;;  %v4946_v9 = vmul.f32 %v7868_v11, %v7868_v11  ;;  %v7873_v11 = vld [vmem:[#allocation58_spill] sm:$0xff] }
 0x1d8   :  { %7860 = vst [vmem:[#allocation22_spill] sm:$0xff] %v4922_v61  ;;  %3611 = vrsqrt.f32 %v4924_v63  ;;  %v4967_v55 = vmul.f32 %v7873_v11, %v7873_v11  ;;  %v7881_v11 = vld [vmem:[#allocation69_spill] sm:$0xff]  ;;  %vm1095_vm0 = vweird.f32 %v4924_v63 }
 0x1d9   :  { %7861 = vst [vmem:[#allocation26_spill] sm:$0xff] %v4926_v19  ;;  %v7869_v19 = vld [vmem:[#allocation51_spill] sm:$0xff]  ;;  %v4987_v1 = vmul.f32 %v7881_v11, %v7881_v11 }
 0x1da   :  { %7863 = vst [vmem:[#allocation27_spill] sm:$0xff] %v4930_v0  ;;  %v4950_v38 = vmul.f32 %v7869_v19, %v7869_v19  ;;  %v7874_v19 = vld [vmem:[#allocation62_spill] sm:$0xff]  ;;  %793 = vadd.xlane.f32.xlu1 %v621_v23  ;;  %795 = vadd.xlane.f32.xlu2 %v622_v48  ;;  %v5003_v23 = vmul.f32 %v7888_v26, %v7888_v26  ;;  %v7890_v48 = vld [vmem:[#allocation80_spill] sm:$0xff] }
 0x1db   :  { %7867 = vst [vmem:[#allocation28_spill] sm:$0xff] %v4942_v36  ;;  %v4971_v25 = vmul.f32 %v7874_v19, %v7874_v19  ;;  %v7883_v19 = vld [vmem:[#allocation70_spill] sm:$0xff]  ;;  %791 = vadd.xlane.f32.xlu0 %v620_v12  ;;  %v5007_v11 = vmul.f32 %v7890_v48, %v7890_v48  ;;  %v7894_v12 = vld [vmem:[#allocation87_spill] sm:$0xff]  ;;  %v5027_v48 = vmul.f32 %v7895_v50, %v7895_v50  ;;  %v7924_v36 = vld [vmem:[#allocation124_spill] sm:$0xff] }
 0x1dc   :  { %7880 = vst [vmem:[#allocation34_spill] sm:$0xff] %v4983_v32  ;;  %v4991_v21 = vmul.f32 %v7883_v19, %v7883_v19  ;;  %v5011_v19 = vmul.f32 %v7891_v16, %v7891_v16  ;;  %v5023_v26 = vmul.f32 %v7894_v12, %v7894_v12  ;;  %v5031_v16 = vmul.f32 %v7896_v20, %v7896_v20 }
 0x1dd   :  { %7875 = vst [vmem:[#allocation32_spill] sm:$0xff] %v4971_v25  ;;  %v710_v40 = vpop.xlane.xlu1 %709  ;;  %v712_v15 = vpop.xlane.xlu2 %711  ;;  %v5047_v20 = vmul.f32 %v7902_v2, %v7902_v2  ;;  %v7910_v2 = vld [vmem:[#allocation105_spill] sm:$0xff] }
 0x1de   :  { %7882 = vst [vmem:[#allocation38_spill] sm:$0xff] %v4987_v1  ;;  %v3612_v49 = vpop.eup %3611  ;;  %v5041_v12 = vmax.f32 %v710_v40, 1e-24  ;;  %v5043_v43 = vmax.f32 %v712_v15, 1e-24  ;;  %v708_v50 = vpop.xlane.xlu0 %707  ;;  %v5058_v40 = vmul.f32 %v7906_v31, %v7906_v31  ;;  %v7908_v15 = vld [vmem:[#allocation104_spill] sm:$0xff]  ;;  %v5067_v8 = vmul.f32 %v7910_v2, %v7910_v2 }
 0x1df   :  { %7884 = vst [vmem:[#allocation39_spill] sm:$0xff] %v4991_v21  ;;  %v1090_v17 = vmul.f32 %v3612_v49, %v4924_v63  ;;  %v5050_v39 = vmax.f32 %v708_v50, 1e-24  ;;  %v5062_v30 = vmul.f32 %v7908_v15, %v7908_v15  ;;  %v7912_v50 = vld [vmem:[#allocation106_spill] sm:$0xff]  ;;  %v5076_v31 = vmul.f32 %v7914_v6, %v7914_v6  ;;  %v7918_v6 = vld [vmem:[#allocation117_spill] sm:$0xff] }
 0x1e0   :  { %7887 = vst [vmem:[#allocation40_spill] sm:$0xff] %v4999_v29  ;;  %3613 = vrsqrt.f32 %v5041_v12  ;;  %v5071_v42 = vmul.f32 %v7912_v50, %v7912_v50  ;;  %v5080_v15 = vmul.f32 %v7915_v18, %v7915_v18  ;;  %v5095_v50 = vmul.f32 %v7918_v6, %v7918_v6 }
 0x1e1   :  { %7889 = vst [vmem:[#allocation44_spill] sm:$0xff] %v5003_v23  ;;  %v1091_v45 = vmul.f32 %v3612_v49, %v1090_v17  ;;  %3615 = vrsqrt.f32 %v5043_v43  ;;  %v7917_v17 = vld [vmem:[#allocation116_spill] sm:$0xff]  ;;  %v5097_v18 = vand.u32 127, %v3267_v44  ;;  %v7922_v23 = vld [vmem:[#allocation123_spill] sm:$0xff]  ;;  %v5114_v6 = vmul.f32 %v7924_v36, %v7924_v36 }
 0x1e2   :  { %7897 = vst [vmem:[#allocation45_spill] sm:$0xff] %v5031_v16  ;;  %3617 = vrsqrt.f32 %v5050_v39  ;;  %799 = vadd.xlane.f32.xlu1 %v4858_v7  ;;  %801 = vadd.xlane.f32.xlu2 %v4876_v58  ;;  %v5091_v2 = vmul.f32 %v7917_v17, %v7917_v17  ;;  %v7920_v7 = vld [vmem:[#allocation122_spill] sm:$0xff]  ;;  %v5110_v17 = vmul.f32 %v7922_v23, %v7922_v23  ;;  %vm1096_vm1 = vweird.f32 %v3612_v49 }
 0x1e3   :  { %7901 = vst [vmem:[#allocation50_spill] sm:$0xff] %v5039_v54  ;;  %797 = vadd.xlane.f32.xlu0 %v4862_v34  ;;  %v5106_v58 = vmul.f32 %v7920_v7, %v7920_v7  ;;  %v5118_v34 = vadd.s32 4294967280, %v5097_v18  ;;  %v2369_v7 = vmul.f32 0.5, %v4924_v63  ;;  %vm1115_vm2 = vweird.f32 %v5041_v12  ;;  %vm1097_vm3 = vmor %vm1095_vm0, %vm1096_vm1 }
 0x1e4   :  { %7903 = vst [vmem:[#allocation51_spill] sm:$0xff] %v5047_v20  ;;  %v5122_v20 = vadd.s32 4294967272, %v5097_v18  ;;  %v5131_v1 = vadd.s32 4294967288, %v5097_v18  ;;  %vm1125_vm4 = vweird.f32 %v5043_v43  ;;  %vm1105_vm5 = vweird.f32 %v5050_v39 }
 0x1e5   :  { %7907 = vst [vmem:[#allocation56_spill] sm:$0xff] %v5058_v40  ;;  %vm3276_vm1 = vcmask 195712  }
 0x1e6   :  { %7909 = vst [vmem:[#allocation57_spill] sm:$0xff] %v5062_v30  ;;  %v7916_v30 = vld [vmem:[#allocation112_spill] sm:$0xff]  ;;  %v3614_v32 = vpop.eup %3613  ;;  %v714_v36 = vpop.xlane.xlu0 %713 }
 0x1e7   :  { %7911 = vst [vmem:[#allocation58_spill] sm:$0xff] %v5067_v8  ;;  %v5084_v29 = vmul.f32 %v7916_v30, %v7916_v30  ;;  %v1092_v8 = vmul.f32 0.5, %v1091_v45  ;;  %v7919_v30 = vld [vmem:[#allocation118_spill] sm:$0xff]  ;;  %v716_v45 = vpop.xlane.xlu1 %715  ;;  %v1110_v14 = vmul.f32 %v3614_v32, %v5041_v12  ;;  %v5139_v21 = vmax.f32 %v714_v36, 1e-24 }
 0x1e8   :  { %7913 = vst [vmem:[#allocation62_spill] sm:$0xff] %v5071_v42  ;;  %v5102_v42 = vmul.f32 %v7919_v30, %v7919_v30  ;;  %v718_v30 = vpop.xlane.xlu2 %717  ;;  %v5124_v23 = vmax.f32 %v716_v45, 1e-24  ;;  %v2371_v45 = vmul.f32 0.5, %v5041_v12  ;;  %vm1116_vm6 = vweird.f32 %v3614_v32 }
 0x1e9   :  { %7921 = vst [vmem:[#allocation63_spill] sm:$0xff] %v5106_v58  ;;  %v1093_v44 = vsub.f32 1.5, %v1092_v8  ;;  %v5126_v41 = vmax.f32 %v718_v30, 1e-24  ;;  %v3616_v8 = vpop.eup %3615  ;;  %v1111_v0 = vmul.f32 %v3614_v32, %v1110_v14  ;;  %v2370_v14 = vmul.f32 0.5, %v5050_v39  ;;  %vm1117_vm10 = vmor %vm1115_vm2, %vm1116_vm6 }
 0x1ea   :  { %7923 = vst [vmem:[#allocation64_spill] sm:$0xff] %v5110_v17  ;;  %v3618_v40 = vpop.eup %3617  ;;  %v1120_v30 = vmul.f32 %v3616_v8, %v5043_v43  ;;  %3619 = vrsqrt.f32 %v5124_v23  ;;  %v2372_v17 = vmul.f32 0.5, %v5043_v43  ;;  %805 = vadd.xlane.f32.xlu1 %v4868_v35  ;;  %807 = vadd.xlane.f32.xlu2 %v4888_v28  ;;  %vm1126_vm7 = vweird.f32 %v3616_v8 }
 0x1eb   :  { %7925 = vst [vmem:[#allocation68_spill] sm:$0xff] %v5114_v6  ;;  %v1094_v61 = vmul.f32 %v3612_v49, %v1093_v44  ;;  %v1100_v25 = vmul.f32 %v3618_v40, %v5050_v39  ;;  %3621 = vrsqrt.f32 %v5126_v41  ;;  %v1112_v63 = vmul.f32 0.5, %v1111_v0  ;;  %803 = vadd.xlane.f32.xlu0 %v4872_v47  ;;  %vm1127_vm12 = vmor %vm1125_vm4, %vm1126_vm7 }
 0x1ec   :  { %v1121_v16 = vmul.f32 %v3616_v8, %v1120_v30  ;;  %3623 = vrsqrt.f32 %v5139_v21  ;;  %vm1145_vm8 = vweird.f32 %v5124_v23  ;;  %vm1106_vm9 = vweird.f32 %v3618_v40 }
 0x1ed   :  { %v1098_v44 = vsel %vm1097_vm3, %v3612_v49, %v1094_v61  ;;  %v1101_v13 = vmul.f32 %v3618_v40, %v1100_v25  ;;  %vm1155_vm11 = vweird.f32 %v5126_v41  ;;  %vm1107_vm13 = vmor %vm1105_vm5, %vm1106_vm9  ;;  %vm1135_vm0 = vweird.f32 %v5139_v21 }
 0x1ee   :  { %v2497_v58 = vmul.f32 %v2369_v7, %v1098_v44  ;;  %v1122_v49 = vmul.f32 0.5, %v1121_v16  ;;  %v1113_v7 = vsub.f32 1.5, %v1112_v63  ;;  %v2374_v16 = vmul.f32 0.5, %v5124_v23 }
 0x1ef   :  { %v1102_v36 = vmul.f32 0.5, %v1101_v13  ;;  %v722_v35 = vpop.xlane.xlu1 %721  ;;  %vm3280_vm9 = vcmask 261312  }
 0x1f0   :  { %v2625_v61 = vmul.f32 %v2497_v58, %v1098_v44  ;;  %v3620_v28 = vpop.eup %3619  ;;  %v1123_v25 = vsub.f32 1.5, %v1122_v49  ;;  %v5152_v30 = vmax.f32 %v722_v35, 1e-24  ;;  %v1114_v22 = vmul.f32 %v3614_v32, %v1113_v7 }
 0x1f1   :  { %v1103_v53 = vsub.f32 1.5, %v1102_v36  ;;  %v1140_v47 = vmul.f32 %v3620_v28, %v5124_v23  ;;  %v5156_v58 = vpop.eup %3621  ;;  %vm1146_vm15 = vweird.f32 %v3620_v28 }
 0x1f2   :  { %v2753_v0 = vsub.f32 1.5, %v2625_v61  ;;  %v1124_v13 = vmul.f32 %v3616_v8, %v1123_v25  ;;  %3625 = vrsqrt.f32 %v5152_v30  ;;  %v1118_v61 = vsel %vm1117_vm10, %v3614_v32, %v1114_v22  ;;  %811 = vadd.xlane.f32.xlu1 %v4880_v24  ;;  %833 = vadd.xlane.f32.xlu2 %v4938_v37  ;;  %vm1147_vm4 = vmor %vm1145_vm8, %vm1146_vm15 }
 0x1f3   :  { %v1104_v49 = vmul.f32 %v3618_v40, %v1103_v53  ;;  %v1141_v7 = vmul.f32 %v3620_v28, %v1140_v47  ;;  %v1150_v36 = vmul.f32 %v5156_v58, %v5126_v41  ;;  %v2499_v35 = vmul.f32 %v2371_v45, %v1118_v61  ;;  %809 = vadd.xlane.f32.xlu0 %v4884_v60 }
 0x1f4   :  { %v2881_v63 = vmul.f32 %v2753_v0, %v1098_v44  ;;  %v5168_v44 = vpop.eup %3623  ;;  %v1128_v12 = vsel %vm1127_vm12, %v3616_v8, %v1124_v13  ;;  %v2375_v0 = vmul.f32 0.5, %v5126_v41  ;;  %v5175_v22 = vmul.f32 0.5, %v5139_v21  ;;  %v7926_v8 = vld [vmem:[#allocation14_spill] sm:$0xff] }
 0x1f5   :  { %v2500_v53 = vmul.f32 %v2372_v17, %v1128_v12  ;;  %v1108_v43 = vsel %vm1107_vm13, %v3618_v40, %v1104_v49  ;;  %v1142_v32 = vmul.f32 0.5, %v1141_v7  ;;  %v1151_v25 = vmul.f32 %v5156_v58, %v1150_v36 }
 0x1f6   :  { %v5182_v45 = vmul.f32 %v2881_v63, %v7926_v8  ;;  %v2627_v39 = vmul.f32 %v2499_v35, %v1118_v61  ;;  %v2498_v47 = vmul.f32 %v2370_v14, %v1108_v43  ;;  %v1130_v13 = vmul.f32 %v5168_v44, %v5139_v21  ;;  %v724_v8 = vpop.xlane.xlu2 %723  ;;  %v720_v21 = vpop.xlane.xlu0 %719 }
 0x1f7   :  { %v2628_v5 = vmul.f32 %v2500_v53, %v1128_v12  ;;  %v1143_v24 = vsub.f32 1.5, %v1142_v32  ;;  %v1152_v37 = vmul.f32 0.5, %v1151_v25  ;;  %vm1156_vm2 = vweird.f32 %v5156_v58 }
 0x1f8   :  { %v5187_v40 = vpop.eup %3625  ;;  %v2755_v17 = vsub.f32 1.5, %v2627_v39  ;;  %v2626_v60 = vmul.f32 %v2498_v47, %v1108_v43  ;;  %v1131_v63 = vmul.f32 %v5168_v44, %v1130_v13  ;;  %vm1175_vm3 = vweird.f32 %v5152_v30  ;;  %vm1157_vm5 = vmor %vm1155_vm11, %vm1156_vm2 }
 0x1f9   :  { %v2756_v14 = vsub.f32 1.5, %v2628_v5  ;;  %v1144_v49 = vmul.f32 %v3620_v28, %v1143_v24  ;;  %v1153_v7 = vsub.f32 1.5, %v1152_v37  ;;  %v1170_v36 = vmul.f32 %v5187_v40, %v5152_v30  ;;  %v7927_v24 = vld [vmem:[#allocation13_spill] sm:$0xff] }
 0x1fa   :  { %v3269_v35 = vperm.slane %v5182_v45, %v5097_v18  ;;  %v2883_v53 = vmul.f32 %v2755_v17, %v1118_v61  ;;  %v2754_v32 = vsub.f32 1.5, %v2626_v60  ;;  %v1132_v25 = vmul.f32 0.5, %v1131_v63  ;;  %837 = vadd.xlane.f32.xlu1 %v4954_v62  ;;  %865 = vadd.xlane.f32.xlu2 %v4995_v51  ;;  %v7929_v45 = vld [vmem:[#allocation19_spill] sm:$0xff] }
 0x1fb   :  { %v2884_v39 = vmul.f32 %v2756_v14, %v1128_v12  ;;  %v1148_v47 = vsel %vm1147_vm4, %v3620_v28, %v1144_v49  ;;  %v1154_v5 = vmul.f32 %v5156_v58, %v1153_v7  ;;  %v1171_v13 = vmul.f32 %v5187_v40, %v1170_v36  ;;  %835 = vadd.xlane.f32.xlu0 %v4934_v33 }
 0x1fc   :  { %v3011_v37 = vmul.f32 %v2883_v53, %v7927_v24  ;;  %v2882_v54 = vmul.f32 %v2754_v32, %v1108_v43  ;;  %v2502_v6 = vmul.f32 %v2374_v16, %v1148_v47  ;;  %v1133_v61 = vsub.f32 1.5, %v1132_v25  ;;  %v7928_v16 = vld [vmem:[#allocation18_spill] sm:$0xff]  ;;  %v728_v25 = vpop.xlane.xlu1 %727 }
 0x1fd   :  { %v1158_v23 = vsel %vm1157_vm5, %v5156_v58, %v1154_v5  ;;  %vm1136_vm6 = vweird.f32 %v5168_v44  ;;  %v1172_v28 = vmul.f32 0.5, %v1171_v13  ;;  %v5210_v12 = vmax.f32 %v724_v8, 1e-24  ;;  %v7932_v8 = vld [vmem:[#allocation129_spill] sm:$0xff]  ;;  %v7933_v5 = vld [vmem:[#allocation130_spill] sm:$0xff] }
 0x1fe   :  { %v3012_v43 = vmul.f32 %v2884_v39, %v7928_v16  ;;  %v3010_v17 = vmul.f32 %v2882_v54, %v7929_v45  ;;  %v2630_v41 = vmul.f32 %v2502_v6, %v1148_v47  ;;  %v2503_v60 = vmul.f32 %v2375_v0, %v1158_v23  ;;  %vm1137_vm7 = vmor %vm1135_vm0, %vm1136_vm6  ;;  %v7930_v54 = vld [vmem:[#allocation128_spill] sm:$0xff] }
 0x1ff   :  { %v3275_v63 = vperm.slane %v3011_v37, %v5118_v34  ;;  %v1134_v62 = vmul.f32 %v5168_v44, %v1133_v61  ;;  %v1173_v51 = vsub.f32 1.5, %v1172_v28  ;;  %3627 = vrsqrt.f32 %v5210_v12 }
 0x200   :  { %v3271_v58 = vperm.slane %v3010_v17, %v5131_v1  ;;  %v2758_v14 = vsub.f32 1.5, %v2630_v41  ;;  %v2631_v49 = vmul.f32 %v2503_v60, %v1158_v23  ;;  %vm1176_vm8 = vweird.f32 %v5187_v40  ;;  %v7938_v60 = vld [vmem:[#allocation136_spill] sm:$0xff] }
 0x201   :  { %v5226_v33 = vmul.f32 %v7930_v54, %v7930_v54  ;;  %v1138_v6 = vsel %vm1137_vm7, %v5168_v44, %v1134_v62  ;;  %v1174_v0 = vmul.f32 %v5187_v40, %v1173_v51  ;;  %v3279_v7 = vperm.slane %v3012_v43, %v5122_v20  ;;  %vm1177_vm10 = vmor %vm1175_vm3, %vm1176_vm8  ;;  %v7936_v43 = vld [vmem:[#allocation135_spill] sm:$0xff] }
 0x202   :  { %v3273_v36 = vsel %vm3272_vm14, %v3271_v58, %v3269_v35  ;;  %v2759_v53 = vsub.f32 1.5, %v2631_v49  ;;  %v2501_v32 = vmul.f32 %v5175_v22, %v1138_v6  ;;  %v5235_v39 = vmul.f32 %v7932_v8, %v7932_v8  ;;  %v7934_v35 = vld [vmem:[#allocation134_spill] sm:$0xff]  ;;  %839 = vadd.xlane.f32.xlu1 %v4950_v38  ;;  %869 = vadd.xlane.f32.xlu2 %v5011_v19  ;;  %v7941_v19 = vld [vmem:[#allocation140_spill] sm:$0xff] }
 0x203   :  { %7931 = vst [vmem:[#allocation69_spill] sm:$0xff] %v5226_v33  ;;  %v5239_v13 = vmul.f32 %v7933_v5, %v7933_v5  ;;  %v3277_v44 = vsel %vm3276_vm1, %v3275_v63, %v3273_v36  ;;  %v2886_v24 = vmul.f32 %v2758_v14, %v1148_v47  ;;  %v5248_v22 = vmul.f32 %v7934_v35, %v7934_v35  ;;  %v7946_v5 = vld [vmem:[#allocation12_spill] sm:$0xff] }
 0x204   :  { %v3281_v37 = vsel %vm3280_vm9, %v3279_v7, %v3277_v44  ;;  %v2629_v61 = vmul.f32 %v2501_v32, %v1138_v6  ;;  %v5252_v28 = vsel %vm1177_vm10, %v5187_v40, %v1174_v0  ;;  %v5257_v47 = vmul.f32 %v7936_v43, %v7936_v43  ;;  %867 = vadd.xlane.f32.xlu0 %v5015_v27  ;;  %v730_v0 = vpop.xlane.xlu2 %729  ;;  %v7942_v7 = vld [vmem:[#allocation141_spill] sm:$0xff] }
 0x205   :  { %7935 = vst [vmem:[#allocation70_spill] sm:$0xff] %v5248_v22  ;;  %v3628_v16 = vpop.eup %3627  ;;  %v2377_v45 = vmul.f32 0.5, %v5152_v30  ;;  %v5260_v17 = vmax.f32 %v720_v21, 1e-24  ;;  %v5262_v41 = vmax.f32 %v728_v25, 1e-24  ;;  %v5268_v40 = vmul.f32 %v7938_v60, %v7938_v60  ;;  %v726_v60 = vpop.xlane.xlu0 %725 }
 0x206   :  { %7937 = vst [vmem:[#allocation74_spill] sm:$0xff] %v5257_v47  ;;  %v2887_v38 = vmul.f32 %v2759_v53, %v1158_v23  ;;  %v2757_v63 = vsub.f32 1.5, %v2629_v61  ;;  %v1180_v62 = vmul.f32 %v3628_v16, %v5210_v12  ;;  %v5272_v51 = vadd.s32 4294967256, %v5097_v18  ;;  %v7940_v30 = vld [vmem:[#allocation17_spill] sm:$0xff]  ;;  %v7943_v53 = vld [vmem:[#allocation142_spill] sm:$0xff] }
 0x207   :  { %7939 = vst [vmem:[#allocation75_spill] sm:$0xff] %v5268_v40  ;;  %v3014_v58 = vmul.f32 %v2886_v24, %v7940_v30  ;;  %v2505_v14 = vmul.f32 %v2377_v45, %v5252_v28  ;;  %3629 = vrsqrt.f32 %v5260_v17  ;;  %v5279_v27 = vmul.f32 %v7941_v19, %v7941_v19  ;;  %v7945_v25 = vld [vmem:[#allocation25_spill] sm:$0xff] }
 0x208   :  { %v5282_v49 = vadd.s32 4294967264, %v5097_v18  ;;  %v2885_v23 = vmul.f32 %v2757_v63, %v1138_v6  ;;  %v1181_v54 = vmul.f32 %v3628_v16, %v1180_v62  ;;  %v689_v36 = vmul.f32 %v7942_v7, %v7942_v7  ;;  %v734_v63 = vpop.xlane.xlu1 %733  ;;  %v7947_v62 = vld [vmem:[#allocation146_spill] sm:$0xff] }
 0x209   :  { %v5288_v32 = vmul.f32 %v7943_v53, %v7943_v53  ;;  %v5291_v21 = vadd.s32 4294967248, %v5097_v18  ;;  %3631 = vrsqrt.f32 %v5262_v41  ;;  %v3015_v8 = vmul.f32 %v2887_v38, %v7945_v25 }
 0x20a   :  { %vm7645_vm11 = vcmask 326912   ;;  %v3013_v44 = vmul.f32 %v2885_v23, %v7946_v5  ;;  %v1182_v6 = vmul.f32 0.5, %v1181_v54  ;;  %v3287_v24 = vperm.slane %v3014_v58, %v5272_v51  ;;  %899 = vadd.xlane.f32.xlu1 %v5080_v15  ;;  %841 = vadd.xlane.f32.xlu2 %v4946_v9  ;;  %v7948_v5 = vld [vmem:[#allocation147_spill] sm:$0xff] }
 0x20b   :  { %7944 = vst [vmem:[#allocation76_spill] sm:$0xff] %v5288_v32  ;;  %vm7640_vm12 = vcmask 392512   ;;  %v2633_v35 = vmul.f32 %v2505_v14, %v5252_v28  ;;  %v5298_v61 = vmax.f32 %v730_v0, 1e-24  ;;  %vm1185_vm13 = vweird.f32 %v5210_v12 }
 0x20c   :  { %v3283_v43 = vperm.slane %v3013_v44, %v5282_v49  ;;  %v1183_v45 = vsub.f32 1.5, %v1182_v6  ;;  %vm1186_vm15 = vweird.f32 %v3628_v16  ;;  %v5305_v30 = vmul.f32 %v7947_v62, %v7947_v62  ;;  %897 = vadd.xlane.f32.xlu0 %v5084_v29  ;;  %v7949_v6 = vld [vmem:[#allocation148_spill] sm:$0xff] }
 0x20d   :  { %v3630_v38 = vpop.eup %3629  ;;  %v2378_v58 = vmul.f32 0.5, %v5210_v12  ;;  %vm7644_vm0 = vcmask 458112   ;;  %3633 = vrsqrt.f32 %v5298_v61  ;;  %v3291_v14 = vperm.slane %v3015_v8, %v5291_v21  ;;  %vm1187_vm2 = vmor %vm1185_vm13, %vm1186_vm15 }
 0x20e   :  { %v3285_v19 = vsel %vm7645_vm11, %v3283_v43, %v3281_v37  ;;  %v1184_v23 = vmul.f32 %v3628_v16, %v1183_v45  ;;  %v1160_v15 = vmul.f32 %v3630_v38, %v5260_v17  ;;  %v2761_v7 = vsub.f32 1.5, %v2633_v35  ;;  %v7951_v43 = vld [vmem:[#allocation153_spill] sm:$0xff] }
 0x20f   :  { %v3632_v54 = vpop.eup %3631  ;;  %v3289_v0 = vsel %vm7640_vm12, %v3287_v24, %v3285_v19  ;;  %v5318_v53 = vmax.f32 %v726_v60, 1e-24  ;;  %v5320_v9 = vmax.f32 %v734_v63, 1e-24  ;;  %v5330_v44 = vmul.f32 %v7948_v5, %v7948_v5 }
 0x210   :  { %v5322_v29 = vsel %vm1187_vm2, %v3628_v16, %v1184_v23  ;;  %v5325_v25 = vsel %vm7644_vm0, %v3291_v14, %v3289_v0  ;;  %v1161_v37 = vmul.f32 %v3630_v38, %v1160_v15  ;;  %v1200_v8 = vmul.f32 %v3632_v54, %v5262_v41  ;;  %v7950_v16 = vld [vmem:[#allocation152_spill] sm:$0xff]  ;;  %v7952_v14 = vld [vmem:[#allocation154_spill] sm:$0xff]  ;;  %v740_v40 = vpop.xlane.xlu1 %739 }
 0x211   :  { %v5334_v12 = vmul.f32 %v7949_v6, %v7949_v6  ;;  %v2506_v24 = vmul.f32 %v2378_v58, %v5322_v29  ;;  %3635 = vrsqrt.f32 %v5318_v53  ;;  %v5340_v35 = vmul.f32 %v7950_v16, %v7950_v16 }
 0x212   :  { %v5344_v45 = vmul.f32 %v7951_v43, %v7951_v43  ;;  %v1162_v60 = vmul.f32 0.5, %v1161_v37  ;;  %v1201_v63 = vmul.f32 %v3632_v54, %v1200_v8  ;;  %v5348_v19 = vmul.f32 %v7952_v14, %v7952_v14  ;;  %901 = vadd.xlane.f32.xlu1 %v5076_v31  ;;  %929 = vadd.xlane.f32.xlu2 %v689_v36  ;;  %v7953_v43 = vld [vmem:[#allocation23_spill] sm:$0xff] }
 0x213   :  { %v3634_v62 = vpop.eup %3633  ;;  %v5351_v23 = vadd.s32 4294967232, %v5097_v18  ;;  %v2889_v58 = vmul.f32 %v2761_v7, %v5252_v28  ;;  %3637 = vrsqrt.f32 %v5320_v9  ;;  %vm1166_vm3 = vweird.f32 %v3630_v38 }
 0x214   :  { %v1163_v15 = vsub.f32 1.5, %v1162_v60  ;;  %v1202_v0 = vmul.f32 0.5, %v1201_v63  ;;  %v1210_v5 = vmul.f32 %v3634_v62, %v5298_v61  ;;  %v5358_v37 = vadd.s32 4294967224, %v5097_v18  ;;  %871 = vadd.xlane.f32.xlu0 %v5007_v11 }
 0x215   :  { %v2634_v8 = vmul.f32 %v2506_v24, %v5322_v29  ;;  %vm1165_vm4 = vweird.f32 %v5260_v17  ;;  %vm1205_vm5 = vweird.f32 %v5262_v41  ;;  %vm1206_vm6 = vweird.f32 %v3632_v54 }
 0x216   :  { %v1164_v28 = vmul.f32 %v3630_v38, %v1163_v15  ;;  %v1203_v7 = vsub.f32 1.5, %v1202_v0  ;;  %v1211_v6 = vmul.f32 %v3634_v62, %v1210_v5  ;;  %v5365_v60 = vmul.f32 %v2889_v58, %v7953_v43  ;;  %vm1167_vm7 = vmor %vm1165_vm4, %vm1166_vm3  ;;  %v5374_v0 = vpop.xlane.xlu2 %735 }
 0x217   :  { %v3636_v16 = vpop.eup %3635  ;;  %v5368_v31 = vadd.s32 4294967240, %v5097_v18  ;;  %v2376_v24 = vmul.f32 0.5, %v5260_v17  ;;  %v2380_v63 = vmul.f32 0.5, %v5262_v41  ;;  %v2762_v32 = vsub.f32 1.5, %v2634_v8  ;;  %vm1207_vm8 = vmor %vm1205_vm5, %vm1206_vm6 }
 0x218   :  { %v1168_v36 = vsel %vm1167_vm7, %v3630_v38, %v1164_v28  ;;  %v1204_v14 = vmul.f32 %v3632_v54, %v1203_v7  ;;  %v1212_v11 = vmul.f32 0.5, %v1211_v6  ;;  %v1190_v15 = vmul.f32 %v3636_v16, %v5318_v53  ;;  %v732_v7 = vpop.xlane.xlu0 %731 }
 0x219   :  { %v3638_v5 = vpop.eup %3637  ;;  %v2504_v58 = vmul.f32 %v2376_v24, %v1168_v36  ;;  %vm1215_vm10 = vweird.f32 %v5298_v61  ;;  %vm1216_vm13 = vweird.f32 %v3634_v62  ;;  %vm7639_vm15 = vcmask 523712  }
 0x21a   :  { %v1208_v17 = vsel %vm1207_vm8, %v3632_v54, %v1204_v14  ;;  %v1213_v43 = vsub.f32 1.5, %v1212_v11  ;;  %v1191_v38 = vmul.f32 %v3636_v16, %v1190_v15  ;;  %v1230_v28 = vmul.f32 %v3638_v5, %v5320_v9  ;;  %813 = vadd.xlane.f32.xlu1 %v4900_v59  ;;  %vm1217_vm5 = vmor %vm1215_vm10, %vm1216_vm13  ;;  %843 = vadd.xlane.f32.xlu2 %v4967_v55 }
 0x21b   :  { %vm7638_vm2 = vcmask 589312   ;;  %v2632_v6 = vmul.f32 %v2504_v58, %v1168_v36  ;;  %v2508_v22 = vmul.f32 %v2380_v63, %v1208_v17  ;;  %v2381_v8 = vmul.f32 0.5, %v5298_v61  ;;  %v7954_v61 = vld [vmem:[#allocation31_spill] sm:$0xff] }
 0x21c   :  { %vm1195_vm3 = vweird.f32 %v5318_v53  ;;  %v1214_v24 = vmul.f32 %v3634_v62, %v1213_v43  ;;  %v1192_v41 = vmul.f32 0.5, %v1191_v38  ;;  %v1231_v47 = vmul.f32 %v3638_v5, %v1230_v28  ;;  %931 = vadd.xlane.f32.xlu0 %v5279_v27 }
 0x21d   :  { %vm1235_vm4 = vweird.f32 %v5320_v9  ;;  %v2890_v54 = vmul.f32 %v2762_v32, %v5322_v29  ;;  %v2760_v14 = vsub.f32 1.5, %v2632_v6  ;;  %v2636_v11 = vmul.f32 %v2508_v22, %v1208_v17  ;;  %v7955_v6 = vld [vmem:[#allocation24_spill] sm:$0xff] }
 0x21e   :  { %v5389_v63 = vmax.f32 %v732_v7, 1e-24  ;;  %v1218_v15 = vsel %vm1217_vm5, %v3634_v62, %v1214_v24  ;;  %v1193_v58 = vsub.f32 1.5, %v1192_v41  ;;  %vm1196_vm6 = vweird.f32 %v3636_v16 }
 0x21f   :  { %v1232_v43 = vmul.f32 0.5, %v1231_v47  ;;  %v2888_v38 = vmul.f32 %v2760_v14, %v1168_v36  ;;  %v2509_v59 = vmul.f32 %v2381_v8, %v1218_v15  ;;  %vm1236_vm7 = vweird.f32 %v3638_v5  ;;  %vm1197_vm8 = vmor %vm1195_vm3, %vm1196_vm6  ;;  %v742_v8 = vpop.xlane.xlu2 %741 }
 0x220   :  { %v5393_v32 = vmax.f32 %v740_v40, 1e-24  ;;  %v2764_v22 = vsub.f32 1.5, %v2636_v11  ;;  %v1194_v29 = vmul.f32 %v3636_v16, %v1193_v58  ;;  %3639 = vrsqrt.f32 %v5389_v63  ;;  %vm1237_vm13 = vmor %vm1235_vm4, %vm1236_vm7 }
 0x221   :  { %v1233_v28 = vsub.f32 1.5, %v1232_v43  ;;  %v3018_v7 = vmul.f32 %v2890_v54, %v7954_v61  ;;  %v3016_v55 = vmul.f32 %v2888_v38, %v7955_v6  ;;  %v2637_v33 = vmul.f32 %v2509_v59, %v1218_v15 }
 0x222   :  { %v2379_v47 = vmul.f32 0.5, %v5318_v53  ;;  %v3299_v27 = vperm.slane %v5365_v60, %v5351_v23  ;;  %v5404_v40 = vadd.s32 4294967208, %v5097_v18  ;;  %v1198_v62 = vsel %vm1197_vm8, %v3636_v16, %v1194_v29  ;;  %903 = vadd.xlane.f32.xlu1 %v5102_v42  ;;  %933 = vadd.xlane.f32.xlu2 %v5334_v12  ;;  %v7956_v12 = vld [vmem:[#allocation29_spill] sm:$0xff] }
 0x223   :  { %v1234_v36 = vmul.f32 %v3638_v5, %v1233_v28  ;;  %v3295_v24 = vperm.slane %v3016_v55, %v5368_v31  ;;  %v2765_v41 = vsub.f32 1.5, %v2637_v33  ;;  %vm7637_vm10 = vcmask 654912   ;;  %v746_v55 = vpop.xlane.xlu1 %745 }
 0x224   :  { %v2507_v54 = vmul.f32 %v2379_v47, %v1198_v62  ;;  %v2892_v14 = vmul.f32 %v2764_v22, %v1208_v17  ;;  %v2383_v11 = vmul.f32 0.5, %v5320_v9  ;;  %3641 = vrsqrt.f32 %v5393_v32  ;;  %873 = vadd.xlane.f32.xlu0 %v5027_v48  ;;  %v738_v22 = vpop.xlane.xlu0 %737 }
 0x225   :  { %v1238_v53 = vsel %vm1237_vm13, %v3638_v5, %v1234_v36  ;;  %v3303_v16 = vperm.slane %v3018_v7, %v5358_v37  ;;  %v3297_v60 = vsel %vm7639_vm15, %v3295_v24, %v5325_v25  ;;  %v5417_v58 = vmax.f32 %v5374_v0, 1e-24  ;;  %v7958_v24 = vld [vmem:[#allocation30_spill] sm:$0xff] }
 0x226   :  { %v2635_v33 = vmul.f32 %v2507_v54, %v1198_v62  ;;  %v3640_v43 = vpop.eup %3639  ;;  %v3301_v5 = vsel %vm7638_vm2, %v3299_v27, %v3297_v60  ;;  %v5422_v9 = vadd.s32 4294967200, %v5097_v18  ;;  %v5425_v17 = vadd.s32 4294967216, %v5097_v18  ;;  %v7957_v27 = vld [vmem:[#allocation37_spill] sm:$0xff] }
 0x227   :  { %v2511_v42 = vmul.f32 %v2383_v11, %v1238_v53  ;;  %v2893_v38 = vmul.f32 %v2765_v41, %v1218_v15  ;;  %v3305_v25 = vsel %vm7637_vm10, %v3303_v16, %v3301_v5  ;;  %v1220_v0 = vmul.f32 %v3640_v43, %v5389_v63  ;;  %v748_v60 = vpop.xlane.xlu2 %747 }
 0x228   :  { %v2763_v59 = vsub.f32 1.5, %v2635_v33  ;;  %v3020_v29 = vmul.f32 %v2892_v14, %v7956_v12  ;;  %vm7634_vm3 = vcmask 720512   ;;  %v5431_v61 = vmax.f32 %v742_v8, 1e-24 }
 0x229   :  { %v2639_v28 = vmul.f32 %v2511_v42, %v1238_v53  ;;  %vm7635_vm4 = vcmask 786112   ;;  %3643 = vrsqrt.f32 %v5417_v58  ;;  %v1221_v6 = vmul.f32 %v3640_v43, %v1220_v0 }
 0x22a   :  { %v2891_v7 = vmul.f32 %v2763_v59, %v1198_v62  ;;  %v3642_v48 = vpop.eup %3641  ;;  %v5435_v15 = vadd.s32 4294967184, %v5097_v18  ;;  %vm7636_vm5 = vcmask 851712   ;;  %3645 = vrsqrt.f32 %v5431_v61  ;;  %845 = vadd.xlane.f32.xlu1 %v4963_v52  ;;  %875 = vadd.xlane.f32.xlu2 %v5023_v26 }
 0x22b   :  { %v2767_v47 = vsub.f32 1.5, %v2639_v28  ;;  %v3021_v36 = vmul.f32 %v2893_v38, %v7957_v27  ;;  %v1222_v8 = vmul.f32 0.5, %v1221_v6  ;;  %v1260_v54 = vmul.f32 %v3642_v48, %v5393_v32  ;;  %v7959_v28 = vld [vmem:[#allocation35_spill] sm:$0xff] }
 0x22c   :  { %v3019_v41 = vmul.f32 %v2891_v7, %v7958_v24  ;;  %v3311_v62 = vperm.slane %v3020_v29, %v5404_v40  ;;  %v5442_v11 = vmax.f32 %v738_v22, 1e-24  ;;  %v5444_v16 = vmax.f32 %v746_v55, 1e-24  ;;  %815 = vadd.xlane.f32.xlu0 %v4896_v10  ;;  %v744_v6 = vpop.xlane.xlu0 %743 }
 0x22d   :  { %v2895_v14 = vmul.f32 %v2767_v47, %v1238_v53  ;;  %v1223_v5 = vsub.f32 1.5, %v1222_v8  ;;  %vm1226_vm6 = vweird.f32 %v3640_v43  ;;  %v1261_v42 = vmul.f32 %v3642_v48, %v1260_v54 }
 0x22e   :  { %v3307_v33 = vperm.slane %v3019_v41, %v5425_v17  ;;  %v5450_v38 = vadd.s32 4294967192, %v5097_v18  ;;  %vm1225_vm7 = vweird.f32 %v5389_v63  ;;  %v2382_v53 = vmul.f32 0.5, %v5389_v63 }
 0x22f   :  { %3647 = vrsqrt.f32 %v5442_v11  ;;  %v5456_v59 = vpop.eup %3643  ;;  %v3315_v52 = vperm.slane %v3021_v36, %v5422_v9  ;;  %v1224_v22 = vmul.f32 %v3640_v43, %v1223_v5  ;;  %v1262_v12 = vmul.f32 0.5, %v1261_v42  ;;  %vm1227_vm8 = vmor %vm1225_vm7, %vm1226_vm6 }
 0x230   :  { %v3309_v0 = vsel %vm7634_vm3, %v3307_v33, %v3305_v25  ;;  %v5460_v26 = vpop.eup %3645  ;;  %v5464_v7 = vmul.f32 %v2895_v14, %v7959_v28  ;;  %vm1265_vm13 = vweird.f32 %v5393_v32  ;;  %3649 = vrsqrt.f32 %v5444_v16 }
 0x231   :  { %v3313_v29 = vsel %vm7635_vm4, %v3311_v62, %v3309_v0  ;;  %v1228_v63 = vsel %vm1227_vm8, %v3640_v43, %v1224_v22  ;;  %v1263_v25 = vsub.f32 1.5, %v1262_v12  ;;  %vm1266_vm3 = vweird.f32 %v3642_v48  ;;  %v752_v43 = vpop.xlane.xlu1 %751  ;;  %v754_v12 = vpop.xlane.xlu2 %753 }
 0x232   :  { %v5470_v10 = vsel %vm7636_vm5, %v3315_v52, %v3313_v29  ;;  %v2510_v55 = vmul.f32 %v2382_v53, %v1228_v63  ;;  %v2386_v47 = vmul.f32 0.5, %v5393_v32  ;;  %v1270_v27 = vmul.f32 %v5460_v26, %v5431_v61  ;;  %vm1267_vm8 = vmor %vm1265_vm13, %vm1266_vm3  ;;  %935 = vadd.xlane.f32.xlu1 %v5330_v44  ;;  %817 = vadd.xlane.f32.xlu2 %v4892_v46 }
 0x233   :  { %vm1275_vm4 = vweird.f32 %v5431_v61  ;;  %vm7642_vm6 = vcmask 917312   ;;  %v1264_v36 = vmul.f32 %v3642_v48, %v1263_v25  ;;  %v2387_v24 = vmul.f32 0.5, %v5431_v61 }
 0x234   :  { %v5478_v41 = vmul.f32 0.5, %v5442_v11  ;;  %v5480_v8 = vmax.f32 %v748_v60, 1e-24  ;;  %v3323_v62 = vperm.slane %v5464_v7, %v5435_v15  ;;  %vm7641_vm7 = vcmask 982912   ;;  %905 = vadd.xlane.f32.xlu0 %v5095_v50  ;;  %v7960_v50 = vld [vmem:[#allocation36_spill] sm:$0xff] }
 0x235   :  { %v5482_v54 = vpop.eup %3647  ;;  %v2638_v14 = vmul.f32 %v2510_v55, %v1228_v63  ;;  %v1271_v33 = vmul.f32 %v5460_v26, %v1270_v27  ;;  %v5490_v5 = vmax.f32 %v744_v6, 1e-24  ;;  %v1268_v60 = vsel %vm1267_vm8, %v3642_v48, %v1264_v36 }
 0x236   :  { %v1250_v42 = vmul.f32 %v5482_v54, %v5442_v11  ;;  %vm1255_vm5 = vweird.f32 %v5442_v11  ;;  %vm1295_vm10 = vweird.f32 %v5444_v16  ;;  %3651 = vrsqrt.f32 %v5480_v8  ;;  %v3650_v32 = vpop.eup %3649 }
 0x237   :  { %v2766_v53 = vsub.f32 1.5, %v2638_v14  ;;  %v2514_v52 = vmul.f32 %v2386_v47, %v1268_v60  ;;  %v1272_v0 = vmul.f32 0.5, %v1271_v33  ;;  %v5499_v22 = vmax.f32 %v752_v43, 1e-24 }
 0x238   :  { %vm1276_vm3 = vweird.f32 %v5460_v26  ;;  %v1251_v44 = vmul.f32 %v5482_v54, %v1250_v42  ;;  %v1290_v48 = vmul.f32 %v3650_v32, %v5444_v16  ;;  %v2389_v29 = vmul.f32 0.5, %v5444_v16 }
 0x239   :  { %v2894_v28 = vmul.f32 %v2766_v53, %v1228_v63  ;;  %v2642_v7 = vmul.f32 %v2514_v52, %v1268_v60  ;;  %v1273_v46 = vsub.f32 1.5, %v1272_v0  ;;  %3653 = vrsqrt.f32 %v5490_v5  ;;  %vm1277_vm2 = vmor %vm1275_vm4, %vm1276_vm3 }
 0x23a   :  { %v1252_v25 = vmul.f32 0.5, %v1251_v44  ;;  %vm1256_vm13 = vweird.f32 %v5482_v54  ;;  %v1291_v6 = vmul.f32 %v3650_v32, %v1290_v48  ;;  %v5508_v55 = vmax.f32 %v754_v12, 1e-24  ;;  %877 = vadd.xlane.f32.xlu1 %v5019_v56  ;;  %907 = vadd.xlane.f32.xlu2 %v5091_v2 }
 0x23b   :  { %v3022_v47 = vmul.f32 %v2894_v28, %v7960_v50  ;;  %v2770_v27 = vsub.f32 1.5, %v2642_v7  ;;  %v1274_v36 = vmul.f32 %v5460_v26, %v1273_v46  ;;  %vm1305_vm8 = vweird.f32 %v5480_v8 }
 0x23c   :  { %3655 = vrsqrt.f32 %v5499_v22  ;;  %v5514_v63 = vpop.eup %3651  ;;  %v1253_v43 = vsub.f32 1.5, %v1252_v25  ;;  %v1292_v14 = vmul.f32 0.5, %v1291_v6  ;;  %vm1296_vm15 = vweird.f32 %v3650_v32  ;;  %847 = vadd.xlane.f32.xlu0 %v4959_v57 }
 0x23d   :  { %v2390_v33 = vmul.f32 0.5, %v5480_v8  ;;  %v3319_v42 = vperm.slane %v3022_v47, %v5450_v38  ;;  %v2898_v53 = vmul.f32 %v2770_v27, %v1268_v60  ;;  %v1278_v52 = vsel %vm1277_vm2, %v5460_v26, %v1274_v36  ;;  %v7961_v26 = vld [vmem:[#allocation41_spill] sm:$0xff]  ;;  %vm1257_vm2 = vmor %vm1255_vm5, %vm1256_vm13 }
 0x23e   :  { %v1300_v0 = vmul.f32 %v5514_v63, %v5480_v8  ;;  %v2515_v12 = vmul.f32 %v2387_v24, %v1278_v52  ;;  %v1254_v44 = vmul.f32 %v5482_v54, %v1253_v43  ;;  %v1293_v61 = vsub.f32 1.5, %v1292_v14  ;;  %vm1297_vm5 = vmor %vm1295_vm10, %vm1296_vm15 }
 0x23f   :  { %v5528_v48 = vmul.f32 0.5, %v5490_v5  ;;  %v5531_v28 = vpop.eup %3653  ;;  %v3321_v60 = vsel %vm7642_vm6, %v3319_v42, %v5470_v10  ;;  %v5536_v7 = vmul.f32 %v2898_v53, %v7961_v26  ;;  %3657 = vrsqrt.f32 %v5508_v55 }
 0x240   :  { %v1301_v56 = vmul.f32 %v5514_v63, %v1300_v0  ;;  %v5546_v2 = vsel %vm7641_vm7, %v3323_v62, %v3321_v60  ;;  %v2643_v24 = vmul.f32 %v2515_v12, %v1278_v52  ;;  %v1258_v10 = vsel %vm1257_vm2, %v5482_v54, %v1254_v44 }
 0x241   :  { %v1294_v46 = vmul.f32 %v3650_v32, %v1293_v61  ;;  %vm1325_vm4 = vweird.f32 %v5499_v22  ;;  %v2513_v6 = vmul.f32 %v5478_v41, %v1258_v10  ;;  %v1280_v57 = vmul.f32 %v5531_v28, %v5490_v5  ;;  %v750_v61 = vpop.xlane.xlu0 %749 }
 0x242   :  { %v3656_v25 = vpop.eup %3655  ;;  %v1302_v11 = vmul.f32 0.5, %v1301_v56  ;;  %vm1285_vm3 = vweird.f32 %v5490_v5  ;;  %v2392_v62 = vmul.f32 0.5, %v5499_v22  ;;  %v2771_v50 = vsub.f32 1.5, %v2643_v24  ;;  %819 = vadd.xlane.f32.xlu1 %v4914_v3  ;;  %849 = vadd.xlane.f32.xlu2 %v4979_v4 }
 0x243   :  { %v1298_v54 = vsel %vm1297_vm5, %v3650_v32, %v1294_v46  ;;  %vm1306_vm13 = vweird.f32 %v5514_v63  ;;  %v1320_v47 = vmul.f32 %v3656_v25, %v5499_v22  ;;  %v2641_v27 = vmul.f32 %v2513_v6, %v1258_v10 }
 0x244   :  { %v2517_v41 = vmul.f32 %v2389_v29, %v1298_v54  ;;  %v1303_v36 = vsub.f32 1.5, %v1302_v11  ;;  %v1281_v16 = vmul.f32 %v5531_v28, %v1280_v57  ;;  %v3331_v43 = vperm.slane %v5536_v7, %v5131_v1  ;;  %v7962_v29 = vld [vmem:[#allocation49_spill] sm:$0xff]  ;;  %vm1307_vm10 = vmor %vm1305_vm8, %vm1306_vm13  ;;  %v758_v7 = vpop.xlane.xlu1 %757  ;;  %937 = vadd.xlane.f32.xlu0 %v5305_v30 }
 0x245   :  { %v2899_v14 = vmul.f32 %v2771_v50, %v1278_v52  ;;  %vm1286_vm15 = vweird.f32 %v5531_v28  ;;  %v1321_v42 = vmul.f32 %v3656_v25, %v1320_v47  ;;  %v5564_v53 = vpop.eup %3657  ;;  %v2769_v0 = vsub.f32 1.5, %v2641_v27  ;;  %v7963_v50 = vld [vmem:[#allocation42_spill] sm:$0xff] }
 0x246   :  { %v2645_v32 = vmul.f32 %v2517_v41, %v1298_v54  ;;  %v1304_v12 = vmul.f32 %v5514_v63, %v1303_v36  ;;  %v1282_v44 = vmul.f32 0.5, %v1281_v16  ;;  %vm1326_vm2 = vweird.f32 %v3656_v25  ;;  %vm1287_vm13 = vmor %vm1285_vm3, %vm1286_vm15 }
 0x247   :  { %v3027_v60 = vmul.f32 %v2899_v14, %v7962_v29  ;;  %v1322_v52 = vmul.f32 0.5, %v1321_v42  ;;  %v1330_v26 = vmul.f32 %v5564_v53, %v5508_v55  ;;  %v2897_v56 = vmul.f32 %v2769_v0, %v1258_v10 }
 0x248   :  { %v2773_v24 = vsub.f32 1.5, %v2645_v32  ;;  %v1308_v46 = vsel %vm1307_vm10, %v5514_v63, %v1304_v12  ;;  %v1283_v3 = vsub.f32 1.5, %v1282_v44  ;;  %vm1335_vm8 = vweird.f32 %v5508_v55  ;;  %vm1327_vm10 = vmor %vm1325_vm4, %vm1326_vm2  ;;  %v760_v32 = vpop.xlane.xlu2 %759 }
 0x249   :  { %v2518_v6 = vmul.f32 %v2390_v33, %v1308_v46  ;;  %v1323_v11 = vsub.f32 1.5, %v1322_v52  ;;  %v1331_v8 = vmul.f32 %v5564_v53, %v1330_v26  ;;  %v3333_v57 = vperm.slane %v3027_v60, %v5118_v34  ;;  %v7965_v26 = vld [vmem:[#allocation50_spill] sm:$0xff] }
 0x24a   :  { %v3025_v47 = vmul.f32 %v2897_v56, %v7963_v50  ;;  %v1284_v27 = vmul.f32 %v5531_v28, %v1283_v3  ;;  %vm1336_vm5 = vweird.f32 %v5564_v53  ;;  %v5588_v33 = vmax.f32 %v750_v61, 1e-24  ;;  %939 = vadd.xlane.f32.xlu2 %v5348_v19  ;;  %v7966_v19 = vld [vmem:[#allocation47_spill] sm:$0xff] }
 0x24b   :  { %v2646_v4 = vmul.f32 %v2518_v6, %v1308_v46  ;;  %v1324_v30 = vmul.f32 %v3656_v25, %v1323_v11  ;;  %v1332_v63 = vmul.f32 0.5, %v1331_v8  ;;  %v2901_v41 = vmul.f32 %v2773_v24, %v1298_v54  ;;  %vm1337_vm4 = vmor %vm1335_vm8, %vm1336_vm5  ;;  %v3873_v11 = vld [vmem:[#allocation2 + $0x3c0] sm:$0xff] }
 0x24c   :  { %v3330_v10 = vperm.slane %v3025_v47, %v5097_v18  ;;  %v1288_v36 = vsel %vm1287_vm13, %v5531_v28, %v1284_v27  ;;  %v5595_v16 = vmax.f32 %v758_v7, 1e-24  ;;  %v1240_v12 = vmul.f32 %v5456_v59, %v5417_v58  ;;  %v7964_v28 = vld [vmem:[#allocation68_spill] sm:$0xff]  ;;  %879 = vadd.xlane.f32.xlu0 %v7965_v26  ;;  %v3872_v7 = vld [vmem:[#allocation2 + $0x3c8] sm:$0xff]  ;;  %v764_v6 = vpop.xlane.xlu1 %763  ;;  %v7967_v27 = vld [vmem:[#allocation55_spill] sm:$0xff] }
 0x24d   :  { %v2774_v14 = vsub.f32 1.5, %v2646_v4  ;;  %v2516_v42 = vmul.f32 %v5528_v48, %v1288_v36  ;;  %v1328_v5 = vsel %vm1327_vm10, %v3656_v25, %v1324_v30  ;;  %v1333_v0 = vsub.f32 1.5, %v1332_v63  ;;  %909 = vadd.xlane.f32.xlu1 %v7964_v28  ;;  %v3871_v48 = vld [vmem:[#allocation2 + $0x3d0] sm:$0xff] }
 0x24e   :  { %v3332_v44 = vsel %vm3272_vm14, %v3331_v43, %v3330_v10  ;;  %v2520_v54 = vmul.f32 %v2392_v62, %v1328_v5  ;;  %3659 = vrsqrt.f32 %v5588_v33  ;;  %v5606_v25 = vmul.f32 %v3871_v48, %v3871_v48  ;;  %v756_v43 = vpop.xlane.xlu0 %755 }
 0x24f   :  { %v2902_v22 = vmul.f32 %v2774_v14, %v1308_v46  ;;  %v3334_v61 = vsel %vm3276_vm1, %v3333_v57, %v3332_v44  ;;  %v2644_v29 = vmul.f32 %v2516_v42, %v1288_v36  ;;  %v1334_v60 = vmul.f32 %v5564_v53, %v1333_v0  ;;  %v7968_v0 = vld [vmem:[#allocation48_spill] sm:$0xff] }
 0x250   :  { %v2648_v52 = vmul.f32 %v2520_v54, %v1328_v5  ;;  %v2393_v62 = vmul.f32 0.5, %v5508_v55  ;;  %3661 = vrsqrt.f32 %v5595_v16  ;;  %v5615_v56 = vmul.f32 %v3872_v7, %v3872_v7  ;;  %v766_v48 = vpop.xlane.xlu2 %765 }
 0x251   :  { %v3029_v24 = vmul.f32 %v2901_v41, %v7966_v19  ;;  %v2772_v46 = vsub.f32 1.5, %v2644_v29  ;;  %v1338_v3 = vsel %vm1337_vm4, %v5564_v53, %v1334_v60  ;;  %v5619_v8 = vmul.f32 %v3873_v11, %v3873_v11  ;;  %v7972_v19 = vld [vmem:[#allocation16_spill] sm:$0xff] }
 0x252   :  { %v2776_v57 = vsub.f32 1.5, %v2648_v52  ;;  %v2521_v50 = vmul.f32 %v2393_v62, %v1338_v3  ;;  %v5621_v55 = vmax.f32 %v760_v32, 1e-24  ;;  %v5624_v47 = vmul.f32 %v5456_v59, %v1240_v12  ;;  %v7970_v52 = vld [vmem:[#allocation46_spill] sm:$0xff] }
 0x253   :  { %v3030_v4 = vmul.f32 %v2902_v22, %v7967_v27  ;;  %v2900_v30 = vmul.f32 %v2772_v46, %v1288_v36  ;;  %v5627_v63 = vmax.f32 %v756_v43, 1e-24  ;;  %v5630_v53 = vmax.f32 %v764_v6, 1e-24  ;;  %881 = vadd.xlane.f32.xlu2 %v7970_v52  ;;  %v7971_v43 = vld [vmem:[#allocation53_spill] sm:$0xff] }
 0x254   :  { %v3660_v10 = vpop.eup %3659  ;;  %v2904_v41 = vmul.f32 %v2776_v57, %v1328_v5  ;;  %v2649_v14 = vmul.f32 %v2521_v50, %v1338_v3  ;;  %3663 = vrsqrt.f32 %v5621_v55  ;;  %v3337_v42 = vperm.slane %v3029_v24, %v5282_v49  ;;  %v7969_v5 = vld [vmem:[#allocation33_spill] sm:$0xff]  ;;  %821 = vadd.xlane.f32.xlu0 %v7972_v19 }
 0x255   :  { %v3028_v32 = vmul.f32 %v2900_v30, %v7968_v0  ;;  %v1310_v44 = vmul.f32 %v3660_v10, %v5588_v33  ;;  %vm1315_vm3 = vweird.f32 %v5588_v33  ;;  %v2391_v54 = vmul.f32 0.5, %v5588_v33  ;;  %851 = vadd.xlane.f32.xlu1 %v7969_v5  ;;  %v7973_v50 = vld [vmem:[#allocation61_spill] sm:$0xff] }
 0x256   :  { %v5636_v12 = vpop.eup %3661  ;;  %v2777_v36 = vsub.f32 1.5, %v2649_v14  ;;  %vm1355_vm15 = vweird.f32 %v5595_v16  ;;  %3665 = vrsqrt.f32 %v5627_v63  ;;  %v2395_v60 = vmul.f32 0.5, %v5595_v16  ;;  %v762_v0 = vpop.xlane.xlu0 %761 }
 0x257   :  { %v3335_v28 = vperm.slane %v3028_v32, %v5122_v20  ;;  %v1311_v22 = vmul.f32 %v3660_v10, %v1310_v44  ;;  %v1350_v29 = vmul.f32 %v5636_v12, %v5595_v16  ;;  %v3339_v62 = vperm.slane %v3030_v4, %v5272_v51 }
 0x258   :  { %v5649_v26 = vmul.f32 %v2904_v41, %v7971_v43  ;;  %v2905_v7 = vmul.f32 %v2777_v36, %v1338_v3  ;;  %3667 = vrsqrt.f32 %v5630_v53  ;;  %vm1316_vm2 = vweird.f32 %v3660_v10 }
 0x259   :  { %v3336_v24 = vsel %vm3280_vm9, %v3335_v28, %v3334_v61  ;;  %v1312_v46 = vmul.f32 0.5, %v1311_v22  ;;  %v1351_v6 = vmul.f32 %v5636_v12, %v1350_v29  ;;  %vm1365_vm8 = vweird.f32 %v5621_v55  ;;  %v770_v29 = vpop.xlane.xlu1 %769  ;;  %vm1317_vm10 = vmor %vm1315_vm3, %vm1316_vm2 }
 0x25a   :  { %v3664_v11 = vpop.eup %3663  ;;  %v3338_v57 = vsel %vm7645_vm11, %v3337_v42, %v3336_v24  ;;  %v5658_v27 = vmul.f32 %v2905_v7, %v7973_v50  ;;  %v2396_v3 = vmul.f32 0.5, %v5621_v55  ;;  %v5661_v4 = vmax.f32 %v766_v48, 1e-24 }
 0x25b   :  { %v5664_v30 = vsel %vm7640_vm12, %v3339_v62, %v3338_v57  ;;  %v1313_v61 = vsub.f32 1.5, %v1312_v46  ;;  %v1352_v41 = vmul.f32 0.5, %v1351_v6  ;;  %v1360_v14 = vmul.f32 %v3664_v11, %v5621_v55  ;;  %v7974_v6 = vld [vmem:[#allocation15_spill] sm:$0xff] }
 0x25c   :  { %v3666_v32 = vpop.eup %3665  ;;  %v3343_v44 = vperm.slane %v5649_v26, %v5368_v31  ;;  %vm1356_vm5 = vweird.f32 %v5636_v12  ;;  %v5671_v42 = vmul.f32 0.5, %v5627_v63  ;;  %3669 = vrsqrt.f32 %v5661_v4  ;;  %823 = vadd.xlane.f32.xlu2 %v7974_v6 }
 0x25d   :  { %v1314_v36 = vmul.f32 %v3660_v10, %v1313_v61  ;;  %v1353_v5 = vsub.f32 1.5, %v1352_v41  ;;  %v1361_v28 = vmul.f32 %v3664_v11, %v1360_v14  ;;  %v1340_v22 = vmul.f32 %v3666_v32, %v5627_v63  ;;  %941 = vadd.xlane.f32.xlu1 %v5344_v45  ;;  %vm1357_vm3 = vmor %vm1355_vm15, %vm1356_vm5 }
 0x25e   :  { %vm1345_vm13 = vweird.f32 %v5627_v63  ;;  %v5676_v48 = vpop.eup %3667  ;;  %v3345_v52 = vperm.slane %v5658_v27, %v5351_v23  ;;  %vm1366_vm4 = vweird.f32 %v3664_v11  ;;  %v5684_v62 = vmul.f32 0.5, %v5630_v53  ;;  %v7979_v63 = vld [vmem:[#allocation32_spill] sm:$0xff] }
 0x25f   :  { %v5686_v43 = vmax.f32 %v762_v0, 1e-24  ;;  %v1318_v7 = vsel %vm1317_vm10, %v3660_v10, %v1314_v36  ;;  %v1354_v19 = vmul.f32 %v5636_v12, %v1353_v5  ;;  %v1362_v24 = vmul.f32 0.5, %v1361_v28  ;;  %v7975_v10 = vld [vmem:[#allocation64_spill] sm:$0xff]  ;;  %vm1367_vm15 = vmor %vm1365_vm8, %vm1366_vm4 }
 0x260   :  { %v1341_v46 = vmul.f32 %v3666_v32, %v1340_v22  ;;  %vm1385_vm12 = vweird.f32 %v5630_v53  ;;  %v2519_v57 = vmul.f32 %v2391_v54, %v1318_v7  ;;  %v1380_v33 = vmul.f32 %v5676_v48, %v5630_v53  ;;  %911 = vadd.xlane.f32.xlu0 %v7975_v10 }
 0x261   :  { %3671 = vrsqrt.f32 %v5686_v43  ;;  %v5699_v45 = vmax.f32 %v770_v29, 1e-24  ;;  %v1358_v50 = vsel %vm1357_vm3, %v5636_v12, %v1354_v19  ;;  %v1363_v61 = vsub.f32 1.5, %v1362_v24 }
 0x262   :  { %v1342_v41 = vmul.f32 0.5, %v1341_v46  ;;  %vm1395_vm2 = vweird.f32 %v5661_v4  ;;  %v3670_v54 = vpop.eup %3669  ;;  %v2647_v14 = vmul.f32 %v2519_v57, %v1318_v7  ;;  %v2523_v0 = vmul.f32 %v2395_v60, %v1358_v50 }
 0x263   :  { %vm1346_vm10 = vweird.f32 %v3666_v32  ;;  %v1381_v16 = vmul.f32 %v5676_v48, %v1380_v33  ;;  %v1364_v36 = vmul.f32 %v3664_v11, %v1363_v61  ;;  %v1390_v28 = vmul.f32 %v3670_v54, %v5661_v4 }
 0x264   :  { %v1343_v5 = vsub.f32 1.5, %v1342_v41  ;;  %v2399_v22 = vmul.f32 0.5, %v5661_v4  ;;  %v2775_v29 = vsub.f32 1.5, %v2647_v14  ;;  %v2651_v6 = vmul.f32 %v2523_v0, %v1358_v50  ;;  %vm1347_vm3 = vmor %vm1345_vm13, %vm1346_vm10  ;;  %v7976_v41 = vld [vmem:[#allocation45_spill] sm:$0xff]  ;;  %v7983_v4 = vld [vmem:[#allocation27_spill] sm:$0xff] }
 0x265   :  { %v1382_v12 = vmul.f32 0.5, %v1381_v16  ;;  %3673 = vrsqrt.f32 %v5699_v45  ;;  %v1368_v19 = vsel %vm1367_vm15, %v3664_v11, %v1364_v36  ;;  %vm1386_vm5 = vweird.f32 %v5676_v48  ;;  %883 = vadd.xlane.f32.xlu1 %v7976_v41  ;;  %v772_v11 = vpop.xlane.xlu2 %771  ;;  %v7977_v16 = vld [vmem:[#allocation63_spill] sm:$0xff]  ;;  %v7978_v36 = vld [vmem:[#allocation54_spill] sm:$0xff] }
 0x266   :  { %v1344_v60 = vmul.f32 %v3666_v32, %v1343_v5  ;;  %v1391_v24 = vmul.f32 %v3670_v54, %v1390_v28  ;;  %v2903_v57 = vmul.f32 %v2775_v29, %v1318_v7  ;;  %v2779_v33 = vsub.f32 1.5, %v2651_v6  ;;  %913 = vadd.xlane.f32.xlu2 %v7977_v16  ;;  %vm1387_vm4 = vmor %vm1385_vm12, %vm1386_vm5 }
 0x267   :  { %v3672_v46 = vpop.eup %3671  ;;  %v2524_v10 = vmul.f32 %v2396_v3, %v1368_v19  ;;  %v1383_v61 = vsub.f32 1.5, %v1382_v12  ;;  %vm1375_vm8 = vweird.f32 %v5686_v43  ;;  %vm1396_vm13 = vweird.f32 %v3670_v54  ;;  %v768_v12 = vpop.xlane.xlu0 %767 }
 0x268   :  { %v1348_v55 = vsel %vm1347_vm3, %v3666_v32, %v1344_v60  ;;  %v1392_v14 = vmul.f32 0.5, %v1391_v24  ;;  %v1370_v0 = vmul.f32 %v3672_v46, %v5686_v43  ;;  %v3031_v7 = vmul.f32 %v2903_v57, %v7978_v36  ;;  %853 = vadd.xlane.f32.xlu0 %v7979_v63  ;;  %vm1397_vm15 = vmor %vm1395_vm2, %vm1396_vm13  ;;  %v7984_v63 = vld [vmem:[#allocation67_spill] sm:$0xff] }
 0x269   :  { %v2907_v5 = vmul.f32 %v2779_v33, %v1358_v50  ;;  %v2652_v3 = vmul.f32 %v2524_v10, %v1368_v19  ;;  %v2522_v28 = vmul.f32 %v5671_v42, %v1348_v55  ;;  %v1384_v29 = vmul.f32 %v5676_v48, %v1383_v61  ;;  %v7980_v61 = vld [vmem:[#allocation59_spill] sm:$0xff] }
 0x26a   :  { %v1393_v6 = vsub.f32 1.5, %v1392_v14  ;;  %v1371_v32 = vmul.f32 %v3672_v46, %v1370_v0  ;;  %v3341_v24 = vperm.slane %v3031_v7, %v5291_v21  ;;  %vm1376_vm10 = vweird.f32 %v3672_v46 }
 0x26b   :  { %v5723_v60 = vpop.eup %3673  ;;  %v2780_v41 = vsub.f32 1.5, %v2652_v3  ;;  %v2650_v16 = vmul.f32 %v2522_v28, %v1348_v55  ;;  %v1388_v42 = vsel %vm1387_vm4, %v5676_v48, %v1384_v29  ;;  %v3035_v14 = vmul.f32 %v2907_v5, %v7980_v61  ;;  %vm1377_vm2 = vmor %vm1375_vm8, %vm1376_vm10 }
 0x26c   :  { %v1394_v50 = vmul.f32 %v3670_v54, %v1393_v6  ;;  %v1372_v57 = vmul.f32 0.5, %v1371_v32  ;;  %v1410_v33 = vmul.f32 %v5723_v60, %v5699_v45  ;;  %v3342_v10 = vsel %vm7644_vm0, %v3341_v24, %v5664_v30 }
 0x26d   :  { %v2908_v0 = vmul.f32 %v2780_v41, %v1368_v19  ;;  %v2778_v36 = vsub.f32 1.5, %v2650_v16  ;;  %vm7981_vm12 = vcmask 523712   ;;  %v2526_v48 = vmul.f32 %v5684_v62, %v1388_v42  ;;  %825 = vadd.xlane.f32.xlu1 %v7983_v4  ;;  %v7985_v62 = vld [vmem:[#allocation39_spill] sm:$0xff]  ;;  %v7991_v4 = vld [vmem:[#allocation73_spill] sm:$0xff] }
 0x26e   :  { %v3344_v53 = vsel %vm7981_vm12, %v3343_v44, %v3342_v10  ;;  %v1398_v7 = vsel %vm1397_vm15, %v3670_v54, %v1394_v50  ;;  %v1373_v3 = vsub.f32 1.5, %v1372_v57  ;;  %vm7982_vm5 = vcmask 589312   ;;  %855 = vadd.xlane.f32.xlu2 %v7985_v62  ;;  %v7986_v54 = vld [vmem:[#allocation60_spill] sm:$0xff]  ;;  %v778_v50 = vpop.xlane.xlu2 %777 }
 0x26f   :  { %v3346_v30 = vsel %vm7982_vm5, %v3345_v52, %v3344_v53  ;;  %v2906_v19 = vmul.f32 %v2778_v36, %v1348_v55  ;;  %v2527_v5 = vmul.f32 %v2399_v22, %v1398_v7  ;;  %v2397_v28 = vmul.f32 0.5, %v5686_v43  ;;  %v776_v52 = vpop.xlane.xlu1 %775 }
 0x270   :  { %v3036_v29 = vmul.f32 %v2908_v0, %v7984_v63  ;;  %v2654_v26 = vmul.f32 %v2526_v48, %v1388_v42  ;;  %v1374_v6 = vmul.f32 %v3672_v46, %v1373_v3  ;;  %v1411_v44 = vmul.f32 %v5723_v60, %v1410_v33  ;;  %943 = vadd.xlane.f32.xlu0 %v5340_v35  ;;  %v774_v0 = vpop.xlane.xlu0 %773 }
 0x271   :  { %v3034_v32 = vmul.f32 %v2906_v19, %v7986_v54  ;;  %v2655_v24 = vmul.f32 %v2527_v5, %v1398_v7  ;;  %vm1415_vm3 = vweird.f32 %v5699_v45  ;;  %v5758_v27 = vmax.f32 %v772_v11, 1e-24 }
 0x272   :  { %v3349_v22 = vperm.slane %v3035_v14, %v5425_v17  ;;  %v2782_v55 = vsub.f32 1.5, %v2654_v26  ;;  %v1378_v41 = vsel %vm1377_vm2, %v3672_v46, %v1374_v6  ;;  %v1412_v16 = vmul.f32 0.5, %v1411_v44 }
 0x273   :  { %v3347_v57 = vperm.slane %v3034_v32, %v5358_v37  ;;  %v2783_v33 = vsub.f32 1.5, %v2655_v24  ;;  %v2525_v10 = vmul.f32 %v2397_v28, %v1378_v41  ;;  %3675 = vrsqrt.f32 %v5758_v27  ;;  %v7993_v32 = vld [vmem:[#allocation66_spill] sm:$0xff] }
 0x274   :  { %v3351_v43 = vperm.slane %v3036_v29, %v5404_v40  ;;  %v2910_v61 = vmul.f32 %v2782_v55, %v1388_v42  ;;  %v1413_v11 = vsub.f32 1.5, %v1412_v16  ;;  %vm1416_vm8 = vweird.f32 %v5723_v60 }
 0x275   :  { %vm7987_vm13 = vcmask 654912   ;;  %v2911_v14 = vmul.f32 %v2783_v33, %v1398_v7  ;;  %v2653_v36 = vmul.f32 %v2525_v10, %v1378_v41  ;;  %v5767_v46 = vmax.f32 %v768_v12, 1e-24  ;;  %vm1417_vm15 = vmor %vm1415_vm3, %vm1416_vm8  ;;  %915 = vadd.xlane.f32.xlu1 %v5239_v13  ;;  %v7992_v13 = vld [vmem:[#allocation56_spill] sm:$0xff] }
 0x276   :  { %v3348_v35 = vsel %vm7987_vm13, %v3347_v57, %v3346_v30  ;;  %v5770_v53 = vmul.f32 0.5, %v5624_v47  ;;  %vm7988_vm4 = vcmask 720512   ;;  %v1414_v3 = vmul.f32 %v5723_v60, %v1413_v11  ;;  %v3874_v47 = vld [vmem:[#allocation2 + $0x3e8] sm:$0xff]  ;;  %v7990_v30 = vld [vmem:[#allocation65_spill] sm:$0xff]  ;;  %945 = vadd.xlane.f32.xlu2 %v5619_v8  ;;  %v784_v10 = vpop.xlane.xlu2 %783 }
 0x277   :  { %v3350_v48 = vsel %vm7988_vm4, %v3349_v22, %v3348_v35  ;;  %v5774_v19 = vmax.f32 %v776_v52, 1e-24  ;;  %vm7989_vm10 = vcmask 786112   ;;  %v2781_v5 = vsub.f32 1.5, %v2653_v36  ;;  %v782_v55 = vpop.xlane.xlu1 %781 }
 0x278   :  { %v3352_v42 = vsel %vm7989_vm10, %v3351_v43, %v3350_v48  ;;  %v2401_v7 = vmul.f32 0.5, %v5699_v45  ;;  %3677 = vrsqrt.f32 %v5767_v46  ;;  %v5782_v12 = vmul.f32 %v3874_v47, %v3874_v47  ;;  %885 = vadd.xlane.f32.xlu0 %v7992_v13 }
 0x279   :  { %v3038_v28 = vmul.f32 %v2910_v61, %v7990_v30  ;;  %v3039_v63 = vmul.f32 %v2911_v14, %v7991_v4  ;;  %v1418_v29 = vsel %vm1417_vm15, %v5723_v60, %v1414_v3  ;;  %v3676_v26 = vpop.eup %3675  ;;  %v5789_v6 = vadd.s32 4294967176, %v5097_v18  ;;  %v780_v14 = vpop.xlane.xlu0 %779 }
 0x27a   :  { %v2909_v45 = vmul.f32 %v2781_v5, %v1378_v41  ;;  %v2529_v44 = vmul.f32 %v2401_v7, %v1418_v29  ;;  %3679 = vrsqrt.f32 %v5774_v19  ;;  %v1243_v62 = vsub.f32 1.5, %v5770_v53  ;;  %v7995_v7 = vld [vmem:[#allocation38_spill] sm:$0xff] }
 0x27b   :  { %v1420_v54 = vmul.f32 %v3676_v26, %v5758_v27  ;;  %vm1425_vm12 = vweird.f32 %v5758_v27  ;;  %v2402_v60 = vmul.f32 0.5, %v5758_v27  ;;  %v5798_v52 = vmax.f32 %v778_v50, 1e-24 }
 0x27c   :  { %v3037_v8 = vmul.f32 %v2909_v45, %v7993_v32  ;;  %v2657_v24 = vmul.f32 %v2529_v44, %v1418_v29  ;;  %v5800_v22 = vmax.f32 %v774_v0, 1e-24  ;;  %v3355_v41 = vperm.slane %v3038_v28, %v5450_v38  ;;  %v7997_v45 = vld [vmem:[#allocation71_spill] sm:$0xff] }
 0x27d   :  { %v3357_v16 = vperm.slane %v3039_v63, %v5435_v15  ;;  %v1421_v57 = vmul.f32 %v3676_v26, %v1420_v54  ;;  %v5805_v33 = vmul.f32 0.5, %v5767_v46  ;;  %vm1426_vm5 = vweird.f32 %v3676_v26  ;;  %857 = vadd.xlane.f32.xlu1 %v7995_v7  ;;  %v7996_v63 = vld [vmem:[#allocation52_spill] sm:$0xff]  ;;  %v7998_v54 = vld [vmem:[#allocation22_spill] sm:$0xff] }
 0x27e   :  { %v3678_v43 = vpop.eup %3677  ;;  %v3353_v61 = vperm.slane %v3037_v8, %v5422_v9  ;;  %v2785_v11 = vsub.f32 1.5, %v2657_v24  ;;  %3681 = vrsqrt.f32 %v5798_v52  ;;  %vm1405_vm2 = vweird.f32 %v5767_v46  ;;  %887 = vadd.xlane.f32.xlu2 %v7996_v63  ;;  %vm1427_vm4 = vmor %vm1425_vm12, %vm1426_vm5 }
 0x27f   :  { %v1422_v50 = vmul.f32 0.5, %v1421_v57  ;;  %v1400_v0 = vmul.f32 %v3678_v43, %v5767_v46  ;;  %vm1445_vm3 = vweird.f32 %v5774_v19  ;;  %v5812_v35 = vmax.f32 %v782_v55, 1e-24 }
 0x280   :  { %v5814_v36 = vpop.eup %3679  ;;  %vm7994_vm8 = vcmask 851712   ;;  %v2913_v3 = vmul.f32 %v2785_v11, %v1418_v29  ;;  %3683 = vrsqrt.f32 %v5800_v22  ;;  %v5818_v5 = vmax.f32 %v784_v10, 1e-24  ;;  %827 = vadd.xlane.f32.xlu0 %v7998_v54 }
 0x281   :  { %v3354_v48 = vsel %vm7994_vm8, %v3353_v61, %v3352_v42  ;;  %v1423_v30 = vsub.f32 1.5, %v1422_v50  ;;  %v1401_v28 = vmul.f32 %v3678_v43, %v1400_v0  ;;  %v1440_v4 = vmul.f32 %v5814_v36, %v5774_v19 }
 0x282   :  { %v3356_v47 = vsel %vm7642_vm6, %v3355_v41, %v3354_v48  ;;  %v5826_v44 = vmul.f32 %v2913_v3, %v7997_v45  ;;  %v2404_v29 = vmul.f32 0.5, %v5774_v19  ;;  %v5832_v13 = vmax.f32 %v780_v14, 1e-24  ;;  %v7999_v45 = vld [vmem:[#allocation21_spill] sm:$0xff] }
 0x283   :  { %v5829_v42 = vsel %vm7641_vm7, %v3357_v16, %v3356_v47  ;;  %v1424_v32 = vmul.f32 %v3676_v26, %v1423_v30  ;;  %v1402_v8 = vmul.f32 0.5, %v1401_v28  ;;  %v1441_v24 = vmul.f32 %v5814_v36, %v1440_v4 }
 0x284   :  { %vm1455_vm13 = vweird.f32 %v5798_v52  ;;  %3685 = vrsqrt.f32 %v5812_v35  ;;  %v3682_v55 = vpop.eup %3681  ;;  %vm1406_vm10 = vweird.f32 %v3678_v43  ;;  %vm1446_vm15 = vweird.f32 %v5814_v36 }
 0x285   :  { %v5843_v41 = vmul.f32 0.5, %v5798_v52  ;;  %3687 = vrsqrt.f32 %v5818_v5  ;;  %v1428_v16 = vsel %vm1427_vm4, %v3676_v26, %v1424_v32  ;;  %v1403_v57 = vsub.f32 1.5, %v1402_v8  ;;  %vm1407_vm5 = vmor %vm1405_vm2, %vm1406_vm10  ;;  %947 = vadd.xlane.f32.xlu1 %v5615_v56 }
 0x286   :  { %v1442_v10 = vmul.f32 0.5, %v1441_v24  ;;  %v1450_v61 = vmul.f32 %v3682_v55, %v5798_v52  ;;  %v3684_v11 = vpop.eup %3683  ;;  %v3361_v50 = vperm.slane %v5826_v44, %v5097_v18  ;;  %v2530_v0 = vmul.f32 %v2402_v60, %v1428_v16  ;;  %829 = vadd.xlane.f32.xlu2 %v7999_v45  ;;  %vm1447_vm2 = vmor %vm1445_vm3, %vm1446_vm15 }
 0x287   :  { %v5850_v27 = vmul.f32 0.5, %v5800_v22  ;;  %v5853_v14 = vmul.f32 0.5, %v5812_v35  ;;  %v1404_v48 = vmul.f32 %v3678_v43, %v1403_v57  ;;  %v1430_v26 = vmul.f32 %v3684_v11, %v5800_v22 }
 0x288   :  { %v1443_v3 = vsub.f32 1.5, %v1442_v10  ;;  %v1451_v7 = vmul.f32 %v3682_v55, %v1450_v61  ;;  %vm1435_vm12 = vweird.f32 %v5800_v22  ;;  %v2658_v47 = vmul.f32 %v2530_v0, %v1428_v16  ;;  %917 = vadd.xlane.f32.xlu0 %v5235_v39  ;;  %v788_v22 = vpop.xlane.xlu1 %787 }
 0x289   :  { %vm1456_vm8 = vweird.f32 %v3682_v55  ;;  %vm1436_vm4 = vweird.f32 %v3684_v11  ;;  %vm1475_vm7 = vweird.f32 %v5812_v35  ;;  %3689 = vrsqrt.f32 %v5832_v13 }
 0x28a   :  { %v5863_v60 = vpop.eup %3685  ;;  %v1408_v30 = vsel %vm1407_vm5, %v3678_v43, %v1404_v48  ;;  %v1444_v28 = vmul.f32 %v5814_v36, %v1443_v3  ;;  %v1452_v4 = vmul.f32 0.5, %v1451_v7  ;;  %v1431_v63 = vmul.f32 %v3684_v11, %v1430_v26  ;;  %v8000_v7 = vld [vmem:[#allocation79_spill] sm:$0xff]  ;;  %vm1457_vm5 = vmor %vm1455_vm13, %vm1456_vm8 }
 0x28b   :  { %vm1485_vm6 = vweird.f32 %v5818_v5  ;;  %v5868_v46 = vpop.eup %3687  ;;  %v2786_v54 = vsub.f32 1.5, %v2658_v47  ;;  %v2528_v32 = vmul.f32 %v5805_v33, %v1408_v30  ;;  %v1470_v56 = vmul.f32 %v5863_v60, %v5812_v35 }
 0x28c   :  { %vm1476_vm10 = vweird.f32 %v5863_v60  ;;  %v1448_v43 = vsel %vm1447_vm2, %v5814_v36, %v1444_v28  ;;  %v1453_v8 = vsub.f32 1.5, %v1452_v4  ;;  %v1432_v24 = vmul.f32 0.5, %v1431_v63  ;;  %vm1437_vm2 = vmor %vm1435_vm12, %vm1436_vm4 }
 0x28d   :  { %v1480_v57 = vmul.f32 %v5868_v46, %v5818_v5  ;;  %v2914_v33 = vmul.f32 %v2786_v54, %v1428_v16  ;;  %v2656_v10 = vmul.f32 %v2528_v32, %v1408_v30  ;;  %v2532_v61 = vmul.f32 %v2404_v29, %v1448_v43  ;;  %vm1477_vm13 = vmor %vm1475_vm7, %vm1476_vm10 }
 0x28e   :  { %v1471_v19 = vmul.f32 %v5863_v60, %v1470_v56  ;;  %vm7643_vm3 = vcmask 1048512   ;;  %v1454_v0 = vmul.f32 %v3682_v55, %v1453_v8  ;;  %v1433_v48 = vsub.f32 1.5, %v1432_v24  ;;  %v8001_v8 = vld [vmem:[#allocation51_spill] sm:$0xff] }
 0x28f   :  { %v1481_v3 = vmul.f32 %v5868_v46, %v1480_v57  ;;  %vm1486_vm15 = vweird.f32 %v5868_v46  ;;  %v3690_v39 = vpop.eup %3689  ;;  %v3042_v36 = vmul.f32 %v2914_v33, %v8000_v7  ;;  %v2784_v26 = vsub.f32 1.5, %v2656_v10  ;;  %889 = vadd.xlane.f32.xlu1 %v8001_v8  ;;  %v8002_v33 = vld [vmem:[#allocation69_spill] sm:$0xff]  ;;  %v8003_v10 = vld [vmem:[#allocation72_spill] sm:$0xff] }
 0x290   :  { %v2660_v47 = vmul.f32 %v2532_v61, %v1448_v43  ;;  %v1472_v16 = vmul.f32 0.5, %v1471_v19  ;;  %v1458_v29 = vsel %vm1457_vm5, %v3682_v55, %v1454_v0  ;;  %v1434_v28 = vmul.f32 %v3684_v11, %v1433_v48  ;;  %919 = vadd.xlane.f32.xlu2 %v8002_v33  ;;  %v790_v0 = vpop.xlane.xlu2 %789  ;;  %v8004_v48 = vld [vmem:[#allocation34_spill] sm:$0xff]  ;;  %vm1487_vm8 = vmor %vm1485_vm6, %vm1486_vm15  ;;  %v8008_v33 = vld [vmem:[#allocation44_spill] sm:$0xff] }
 0x291   :  { %v1482_v4 = vmul.f32 0.5, %v1481_v3  ;;  %v1460_v63 = vmul.f32 %v3690_v39, %v5832_v13  ;;  %v3362_v45 = vperm.slane %v3042_v36, %v5131_v1  ;;  %v2912_v54 = vmul.f32 %v2784_v26, %v1408_v30  ;;  %859 = vadd.xlane.f32.xlu0 %v8004_v48  ;;  %v786_v36 = vpop.xlane.xlu0 %785 }
 0x292   :  { %v2788_v32 = vsub.f32 1.5, %v2660_v47  ;;  %v2533_v56 = vmul.f32 %v5843_v41, %v1458_v29  ;;  %v1438_v52 = vsel %vm1437_vm2, %v3684_v11, %v1434_v28  ;;  %v1473_v24 = vsub.f32 1.5, %v1472_v16 }
 0x293   :  { %v1483_v57 = vsub.f32 1.5, %v1482_v4  ;;  %v1461_v55 = vmul.f32 %v3690_v39, %v1460_v63  ;;  %v5901_v30 = vsel %vm3272_vm14, %v3362_v45, %v3361_v50  ;;  %v3040_v41 = vmul.f32 %v2912_v54, %v8003_v10  ;;  %v8006_v45 = vld [vmem:[#allocation77_spill] sm:$0xff] }
 0x294   :  { %v2916_v61 = vmul.f32 %v2788_v32, %v1448_v43  ;;  %v2661_v19 = vmul.f32 %v2533_v56, %v1458_v29  ;;  %v2531_v11 = vmul.f32 %v5850_v27, %v1438_v52  ;;  %v1474_v3 = vmul.f32 %v5863_v60, %v1473_v24  ;;  %v8009_v10 = vld [vmem:[#allocation85_spill] sm:$0xff] }
 0x295   :  { %v1484_v44 = vmul.f32 %v5868_v46, %v1483_v57  ;;  %v1462_v50 = vmul.f32 0.5, %v1461_v55  ;;  %vm1245_vm12 = vweird.f32 %v5417_v58  ;;  %v3359_v43 = vperm.slane %v3040_v41, %v5789_v6 }
 0x296   :  { %v2789_v7 = vsub.f32 1.5, %v2661_v19  ;;  %v2408_v27 = vmul.f32 0.5, %v5818_v5  ;;  %vm1466_vm4 = vweird.f32 %v3690_v39  ;;  %v2659_v26 = vmul.f32 %v2531_v11, %v1438_v52 }
 0x297   :  { %v1478_v35 = vsel %vm1477_vm13, %v5863_v60, %v1474_v3  ;;  %v1488_v47 = vsel %vm1487_vm8, %v5868_v46, %v1484_v44  ;;  %v1463_v16 = vsub.f32 1.5, %v1462_v50  ;;  %v5923_v28 = vsel %vm7643_vm3, %v3359_v43, %v5829_v42  ;;  %v8007_v42 = vld [vmem:[#allocation28_spill] sm:$0xff]  ;;  %v794_v3 = vpop.xlane.xlu1 %793  ;;  %v3875_v50 = vld [vmem:[#allocation2 + $0x3e0] sm:$0xff] }
 0x298   :  { %8005 = vst [vmem:[#allocation80_spill] sm:$0xff] %v5923_v28  ;;  %v2917_v4 = vmul.f32 %v2789_v7, %v1458_v29  ;;  %v2535_v63 = vmul.f32 %v5853_v14, %v1478_v35  ;;  %vm1465_vm7 = vweird.f32 %v5832_v13  ;;  %v3044_v54 = vmul.f32 %v2916_v61, %v8006_v45  ;;  %831 = vadd.xlane.f32.xlu1 %v8007_v42  ;;  %v796_v44 = vpop.xlane.xlu2 %795  ;;  %v3877_v7 = vld [vmem:[#allocation2 + $0x3f0] sm:$0xff] }
 0x299   :  { %v2787_v5 = vsub.f32 1.5, %v2659_v26  ;;  %v2536_v32 = vmul.f32 %v2408_v27, %v1488_v47  ;;  %v1464_v56 = vmul.f32 %v3690_v39, %v1463_v16  ;;  %vm1467_vm6 = vmor %vm1465_vm7, %vm1466_vm4  ;;  %v2406_v60 = vmul.f32 0.5, %v5832_v13  ;;  %861 = vadd.xlane.f32.xlu2 %v8008_v33  ;;  %949 = vadd.xlane.f32.xlu0 %v5606_v25  ;;  %v3876_v25 = vld [vmem:[#allocation2 + $0x3d8] sm:$0xff]  ;;  %v792_v16 = vpop.xlane.xlu0 %791  ;;  %v8012_v42 = vld [vmem:[#allocation75_spill] sm:$0xff] }
 0x29a   :  { %v2663_v8 = vmul.f32 %v2535_v63, %v1478_v35  ;;  %v5930_v46 = vmax.f32 %v788_v22, 1e-24  ;;  %v5932_v24 = vmax.f32 %v790_v0, 1e-24  ;;  %v5935_v55 = vmax.f32 %v786_v36, 1e-24 }
 0x29b   :  { %v2915_v29 = vmul.f32 %v2787_v5, %v1438_v52  ;;  %v2664_v14 = vmul.f32 %v2536_v32, %v1488_v47  ;;  %v1468_v57 = vsel %vm1467_vm6, %v3690_v39, %v1464_v56  ;;  %v3045_v41 = vmul.f32 %v2917_v4, %v8009_v10  ;;  %v8010_v52 = vld [vmem:[#allocation78_spill] sm:$0xff]  ;;  %v8011_v63 = vld [vmem:[#allocation83_spill] sm:$0xff] }
 0x29c   :  { %v2791_v61 = vsub.f32 1.5, %v2663_v8  ;;  %v2534_v19 = vmul.f32 %v2406_v60, %v1468_v57  ;;  %3691 = vrsqrt.f32 %v5930_v46  ;;  %v1244_v13 = vmul.f32 %v5456_v59, %v1243_v62 }
 0x29d   :  { %vm1246_vm10 = vweird.f32 %v5456_v59  ;;  %v3043_v39 = vmul.f32 %v2915_v29, %v8010_v52  ;;  %v2792_v22 = vsub.f32 1.5, %v2664_v14  ;;  %v3366_v0 = vperm.slane %v3044_v54, %v5122_v20 }
 0x29e   :  { %v2919_v48 = vmul.f32 %v2791_v61, %v1478_v35  ;;  %v2662_v11 = vmul.f32 %v2534_v19, %v1468_v57  ;;  %3693 = vrsqrt.f32 %v5932_v24  ;;  %v5948_v43 = vmul.f32 %v3875_v50, %v3875_v50  ;;  %vm1247_vm15 = vmor %vm1245_vm12, %vm1246_vm10 }
 0x29f   :  { %v700_v53 = vmul.f32 %v3876_v25, %v3876_v25  ;;  %v3364_v62 = vperm.slane %v3043_v39, %v5118_v34  ;;  %3695 = vrsqrt.f32 %v5935_v55  ;;  %v5952_v27 = vmul.f32 %v3877_v7, %v3877_v7 }
 0x2a0   :  { %v3368_v36 = vperm.slane %v3045_v41, %v5282_v49  ;;  %v2920_v26 = vmul.f32 %v2792_v22, %v1488_v47  ;;  %v2790_v35 = vsub.f32 1.5, %v2662_v11  ;;  %v3047_v45 = vmul.f32 %v2919_v48, %v8011_v63  ;;  %921 = vadd.xlane.f32.xlu1 %v8012_v42  ;;  %v8014_v41 = vld [vmem:[#allocation84_spill] sm:$0xff]  ;;  %v802_v63 = vpop.xlane.xlu2 %801 }
 0x2a1   :  { %v3365_v4 = vsel %vm3276_vm1, %v3364_v62, %v5901_v30  ;;  %v5962_v54 = vmax.f32 %v794_v3, 1e-24  ;;  %v5964_v5 = vmax.f32 %v796_v44, 1e-24  ;;  %v5967_v56 = vsel %vm1247_vm15, %v5456_v59, %v1244_v13  ;;  %951 = vadd.xlane.f32.xlu2 %v700_v53  ;;  %v8013_v59 = vld [vmem:[#allocation91_spill] sm:$0xff] }
 0x2a2   :  { %v3692_v32 = vpop.eup %3691  ;;  %v5970_v47 = vmul.f32 0.5, %v5417_v58  ;;  %v3367_v8 = vsel %vm3280_vm9, %v3366_v0, %v3365_v4  ;;  %v2918_v60 = vmul.f32 %v2790_v35, %v1468_v57  ;;  %vm1505_vm5 = vweird.f32 %v5930_v46  ;;  %v8015_v57 = vld [vmem:[#allocation62_spill] sm:$0xff] }
 0x2a3   :  { %v3369_v30 = vsel %vm7645_vm11, %v3368_v36, %v3367_v8  ;;  %v1500_v29 = vmul.f32 %v3692_v32, %v5930_v46  ;;  %v5977_v14 = vmax.f32 %v792_v16, 1e-24  ;;  %v3048_v10 = vmul.f32 %v2920_v26, %v8013_v59  ;;  %891 = vadd.xlane.f32.xlu0 %v8015_v57 }
 0x2a4   :  { %v3694_v33 = vpop.eup %3693  ;;  %v3046_v58 = vmul.f32 %v2918_v60, %v8014_v41  ;;  %v2410_v61 = vmul.f32 0.5, %v5930_v46  ;;  %3697 = vrsqrt.f32 %v5962_v54  ;;  %v3372_v13 = vperm.slane %v3047_v45, %v5291_v21  ;;  %v8018_v45 = vld [vmem:[#allocation58_spill] sm:$0xff]  ;;  %v800_v41 = vpop.xlane.xlu1 %799 }
 0x2a5   :  { %v3696_v19 = vpop.eup %3695  ;;  %v1501_v52 = vmul.f32 %v3692_v32, %v1500_v29  ;;  %v1510_v39 = vmul.f32 %v3694_v33, %v5932_v24  ;;  %3699 = vrsqrt.f32 %v5964_v5  ;;  %vm1515_vm2 = vweird.f32 %v5932_v24  ;;  %v8019_v29 = vld [vmem:[#allocation74_spill] sm:$0xff] }
 0x2a6   :  { %v3370_v22 = vperm.slane %v3046_v58, %v5272_v51  ;;  %v2411_v0 = vmul.f32 0.5, %v5932_v24  ;;  %v1490_v48 = vmul.f32 %v3696_v19, %v5935_v55  ;;  %vm1495_vm13 = vweird.f32 %v5935_v55  ;;  %v8020_v58 = vld [vmem:[#allocation40_spill] sm:$0xff] }
 0x2a7   :  { %v1502_v11 = vmul.f32 0.5, %v1501_v52  ;;  %v1511_v3 = vmul.f32 %v3694_v33, %v1510_v39  ;;  %3701 = vrsqrt.f32 %v5977_v14  ;;  %v3374_v44 = vperm.slane %v3048_v10, %v5368_v31 }
 0x2a8   :  { %vm8016_vm12 = vcmask 392512   ;;  %v1491_v25 = vmul.f32 %v3696_v19, %v1490_v48  ;;  %v2409_v53 = vmul.f32 0.5, %v5935_v55  ;;  %vm1506_vm8 = vweird.f32 %v3692_v32  ;;  %893 = vadd.xlane.f32.xlu1 %v8018_v45  ;;  %v8021_v55 = vld [vmem:[#allocation57_spill] sm:$0xff] }
 0x2a9   :  { %v3371_v50 = vsel %vm8016_vm12, %v3370_v22, %v3369_v30  ;;  %v1503_v7 = vsub.f32 1.5, %v1502_v11  ;;  %v1512_v36 = vmul.f32 0.5, %v1511_v3  ;;  %vm8017_vm4 = vcmask 523712   ;;  %923 = vadd.xlane.f32.xlu2 %v8019_v29  ;;  %vm1507_vm10 = vmor %vm1505_vm5, %vm1506_vm8 }
 0x2aa   :  { %v3373_v62 = vsel %vm7644_vm0, %v3372_v13, %v3371_v50  ;;  %v3698_v26 = vpop.eup %3697  ;;  %v1492_v16 = vmul.f32 0.5, %v1491_v25  ;;  %vm1535_vm7 = vweird.f32 %v5962_v54  ;;  %v6002_v4 = vmul.f32 0.5, %v5962_v54 }
 0x2ab   :  { %v5998_v35 = vsel %vm8017_vm4, %v3374_v44, %v3373_v62  ;;  %v3700_v8 = vpop.eup %3699  ;;  %v1504_v60 = vmul.f32 %v3692_v32, %v1503_v7  ;;  %v1513_v42 = vsub.f32 1.5, %v1512_v36  ;;  %vm1516_vm6 = vweird.f32 %v3694_v33  ;;  %863 = vadd.xlane.f32.xlu0 %v8020_v58 }
 0x2ac   :  { %v1530_v30 = vmul.f32 %v3698_v26, %v5962_v54  ;;  %v1493_v59 = vsub.f32 1.5, %v1492_v16  ;;  %vm1496_vm15 = vweird.f32 %v3696_v19  ;;  %v1540_v10 = vmul.f32 %v3700_v8, %v5964_v5  ;;  %vm1517_vm5 = vmor %vm1515_vm2, %vm1516_vm6 }
 0x2ad   :  { %vm1545_vm12 = vweird.f32 %v5964_v5  ;;  %v6013_v57 = vpop.eup %3701  ;;  %v1508_v13 = vsel %vm1507_vm10, %v3692_v32, %v1504_v60  ;;  %v1514_v52 = vmul.f32 %v3694_v33, %v1513_v42  ;;  %v6015_v22 = vmax.f32 %v802_v63, 1e-24  ;;  %vm1497_vm8 = vmor %vm1495_vm13, %vm1496_vm15 }
 0x2ae   :  { %v1531_v39 = vmul.f32 %v3698_v26, %v1530_v30  ;;  %v2538_v48 = vmul.f32 %v2410_v61, %v1508_v13  ;;  %v1494_v46 = vmul.f32 %v3696_v19, %v1493_v59  ;;  %v1541_v11 = vmul.f32 %v3700_v8, %v1540_v10  ;;  %v798_v10 = vpop.xlane.xlu0 %797 }
 0x2af   :  { %v1520_v3 = vmul.f32 %v6013_v57, %v5977_v14  ;;  %v1518_v44 = vsel %vm1517_vm5, %v3694_v33, %v1514_v52  ;;  %vm1536_vm4 = vweird.f32 %v3698_v26  ;;  %v6025_v50 = vmax.f32 %v800_v41, 1e-24 }
 0x2b0   :  { %v1532_v32 = vmul.f32 0.5, %v1531_v39  ;;  %v2666_v25 = vmul.f32 %v2538_v48, %v1508_v13  ;;  %v2539_v61 = vmul.f32 %v2411_v0, %v1518_v44  ;;  %v1498_v62 = vsel %vm1497_vm8, %v3696_v19, %v1494_v46  ;;  %895 = vadd.xlane.f32.xlu1 %v8021_v55  ;;  %v8022_v0 = vld [vmem:[#allocation70_spill] sm:$0xff]  ;;  %vm1537_vm13 = vmor %vm1535_vm7, %vm1536_vm4 }
 0x2b1   :  { %v1542_v7 = vmul.f32 0.5, %v1541_v11  ;;  %v2537_v24 = vmul.f32 %v2409_v53, %v1498_v62  ;;  %v1521_v16 = vmul.f32 %v6013_v57, %v1520_v3  ;;  %3703 = vrsqrt.f32 %v6015_v22  ;;  %925 = vadd.xlane.f32.xlu2 %v8022_v0 }
 0x2b2   :  { %v1533_v36 = vsub.f32 1.5, %v1532_v32  ;;  %v2794_v63 = vsub.f32 1.5, %v2666_v25  ;;  %v2667_v33 = vmul.f32 %v2539_v61, %v1518_v44  ;;  %vm1546_vm2 = vweird.f32 %v3700_v8 }
 0x2b3   :  { %v1543_v45 = vsub.f32 1.5, %v1542_v7  ;;  %v2665_v60 = vmul.f32 %v2537_v24, %v1498_v62  ;;  %v2414_v30 = vmul.f32 0.5, %v5964_v5  ;;  %v1522_v29 = vmul.f32 0.5, %v1521_v16  ;;  %953 = vadd.xlane.f32.xlu0 %v5948_v43  ;;  %vm1547_vm6 = vmor %vm1545_vm12, %vm1546_vm2  ;;  %v806_v7 = vpop.xlane.xlu1 %805 }
 0x2b4   :  { %v1534_v42 = vmul.f32 %v3698_v26, %v1533_v36  ;;  %v2922_v19 = vmul.f32 %v2794_v63, %v1508_v13  ;;  %v2795_v53 = vsub.f32 1.5, %v2667_v33  ;;  %3705 = vrsqrt.f32 %v6025_v50  ;;  %v8023_v13 = vld [vmem:[#allocation89_spill] sm:$0xff] }
 0x2b5   :  { %v1544_v59 = vmul.f32 %v3700_v8, %v1543_v45  ;;  %v2793_v41 = vsub.f32 1.5, %v2665_v60  ;;  %v1523_v52 = vsub.f32 1.5, %v1522_v29  ;;  %vm1526_vm10 = vweird.f32 %v6013_v57 }
 0x2b6   :  { %v1538_v58 = vsel %vm1537_vm13, %v3698_v26, %v1534_v42  ;;  %v3050_v39 = vmul.f32 %v2922_v19, %v8023_v13  ;;  %v2923_v48 = vmul.f32 %v2795_v53, %v1518_v44  ;;  %vm1525_vm7 = vweird.f32 %v5977_v14  ;;  %v8024_v44 = vld [vmem:[#allocation97_spill] sm:$0xff]  ;;  %v808_v19 = vpop.xlane.xlu2 %807 }
 0x2b7   :  { %v2541_v54 = vmul.f32 %v6002_v4, %v1538_v58  ;;  %v1548_v46 = vsel %vm1547_vm6, %v3700_v8, %v1544_v59  ;;  %v3704_v11 = vpop.eup %3703  ;;  %v2921_v3 = vmul.f32 %v2793_v41, %v1498_v62  ;;  %v1524_v43 = vmul.f32 %v6013_v57, %v1523_v52  ;;  %vm1527_vm15 = vmor %vm1525_vm7, %vm1526_vm10  ;;  %v8025_v4 = vld [vmem:[#allocation90_spill] sm:$0xff]  ;;  %v8029_v52 = vld [vmem:[#allocation95_spill] sm:$0xff] }
 0x2b8   :  { %v2542_v32 = vmul.f32 %v2414_v30, %v1548_v46  ;;  %v2412_v5 = vmul.f32 0.5, %v5977_v14  ;;  %v1570_v25 = vmul.f32 %v3704_v11, %v6015_v22  ;;  %v6047_v61 = vmax.f32 %v798_v10, 1e-24  ;;  %v8026_v14 = vld [vmem:[#allocation76_spill] sm:$0xff] }
 0x2b9   :  { %v2669_v26 = vmul.f32 %v2541_v54, %v1538_v58  ;;  %v3051_v24 = vmul.f32 %v2923_v48, %v8024_v44  ;;  %v3049_v8 = vmul.f32 %v2921_v3, %v8025_v4  ;;  %v1528_v62 = vsel %vm1527_vm15, %v6013_v57, %v1524_v43  ;;  %927 = vadd.xlane.f32.xlu1 %v8026_v14  ;;  %v3878_v48 = vld [vmem:[#allocation2 + $0x3f8] sm:$0xff] }
 0x2ba   :  { %v2670_v36 = vmul.f32 %v2542_v32, %v1548_v46  ;;  %v6052_v16 = vpop.eup %3705  ;;  %v3378_v63 = vperm.slane %v3050_v39, %v5358_v37  ;;  %v2540_v45 = vmul.f32 %v2412_v5, %v1528_v62  ;;  %v1571_v55 = vmul.f32 %v3704_v11, %v1570_v25  ;;  %957 = vadd.xlane.f32.xlu2 %v5952_v27  ;;  %v8032_v25 = vld [vmem:[#allocation96_spill] sm:$0xff] }
 0x2bb   :  { %v2797_v33 = vsub.f32 1.5, %v2669_v26  ;;  %v3376_v60 = vperm.slane %v3049_v8, %v5351_v23  ;;  %v2512_v30 = vmul.f32 %v5970_v47, %v5967_v56  ;;  %955 = vadd.xlane.f32.xlu0 %v5782_v12  ;;  %v3380_v53 = vperm.slane %v3051_v24, %v5425_v17  ;;  %v8031_v26 = vld [vmem:[#allocation103_spill] sm:$0xff]  ;;  %v812_v8 = vpop.xlane.xlu1 %811 }
 0x2bc   :  { %v2798_v42 = vsub.f32 1.5, %v2670_v36  ;;  %v2668_v0 = vmul.f32 %v2540_v45, %v1528_v62  ;;  %v1572_v57 = vmul.f32 0.5, %v1571_v55  ;;  %vm8027_vm12 = vcmask 589312  }
 0x2bd   :  { %v2925_v29 = vmul.f32 %v2797_v33, %v1538_v58  ;;  %v3377_v59 = vsel %vm8027_vm12, %v3376_v60, %v5998_v35  ;;  %vm1575_vm5 = vweird.f32 %v6015_v22  ;;  %3707 = vrsqrt.f32 %v6047_v61  ;;  %v804_v58 = vpop.xlane.xlu0 %803 }
 0x2be   :  { %vm8028_vm8 = vcmask 654912   ;;  %v2926_v10 = vmul.f32 %v2798_v42, %v1548_v46  ;;  %v2796_v41 = vsub.f32 1.5, %v2668_v0  ;;  %v1560_v47 = vmul.f32 %v6052_v16, %v6025_v50 }
 0x2bf   :  { %v3379_v27 = vsel %vm8028_vm8, %v3378_v63, %v3377_v59  ;;  %v3053_v13 = vmul.f32 %v2925_v29, %v8029_v52  ;;  %vm8030_vm4 = vcmask 720512   ;;  %v1573_v39 = vsub.f32 1.5, %v1572_v57 }
 0x2c0   :  { %v3381_v12 = vsel %vm8030_vm4, %v3380_v53, %v3379_v27  ;;  %vm1576_vm2 = vweird.f32 %v3704_v11  ;;  %v704_v35 = vmul.f32 %v3878_v48, %v3878_v48  ;;  %v2924_v54 = vmul.f32 %v2796_v41, %v1528_v62 }
 0x2c1   :  { %v6072_v3 = vmul.f32 %v2512_v30, %v5967_v56  ;;  %v1574_v32 = vmul.f32 %v3704_v11, %v1573_v39  ;;  %v6074_v43 = vmax.f32 %v806_v7, 1e-24  ;;  %v6076_v46 = vmax.f32 %v808_v19, 1e-24  ;;  %vm1577_vm13 = vmor %vm1575_vm5, %vm1576_vm2  ;;  %v834_v30 = vpop.xlane.xlu2 %833 }
 0x2c2   :  { %v3054_v5 = vmul.f32 %v2926_v10, %v8031_v26  ;;  %v3052_v44 = vmul.f32 %v2924_v54, %v8032_v25  ;;  %v1561_v24 = vmul.f32 %v6052_v16, %v1560_v47  ;;  %v2417_v4 = vmul.f32 0.5, %v6015_v22 }
 0x2c3   :  { %v3708_v36 = vpop.eup %3707  ;;  %v3384_v62 = vperm.slane %v3053_v13, %v5422_v9  ;;  %v1578_v63 = vsel %vm1577_vm13, %v3704_v11, %v1574_v32  ;;  %3709 = vrsqrt.f32 %v6074_v43  ;;  %v6086_v7 = vmax.f32 %v804_v58, 1e-24  ;;  %959 = vadd.xlane.f32.xlu0 %v704_v35 }
 0x2c4   :  { %v3382_v33 = vperm.slane %v3052_v44, %v5404_v40  ;;  %v2545_v45 = vmul.f32 %v2417_v4, %v1578_v63  ;;  %v1550_v55 = vmul.f32 %v3708_v36, %v6047_v61  ;;  %3711 = vrsqrt.f32 %v6076_v46 }
 0x2c5   :  { %v6091_v14 = vmax.f32 %v812_v8, 1e-24  ;;  %v3386_v22 = vperm.slane %v3054_v5, %v5450_v38  ;;  %vm8033_vm6 = vcmask 786112   ;;  %v2768_v29 = vsub.f32 1.5, %v6072_v3  ;;  %v810_v27 = vpop.xlane.xlu0 %809  ;;  %v838_v5 = vpop.xlane.xlu1 %837 }
 0x2c6   :  { %v3383_v60 = vsel %vm8033_vm6, %v3382_v33, %v3381_v12  ;;  %v2673_v42 = vmul.f32 %v2545_v45, %v1578_v63  ;;  %v1551_v11 = vmul.f32 %v3708_v36, %v1550_v55  ;;  %vm8034_vm10 = vcmask 851712  }
 0x2c7   :  { %v3385_v0 = vsel %vm8034_vm10, %v3384_v62, %v3383_v60  ;;  %v6097_v57 = vmul.f32 0.5, %v1561_v24  ;;  %3713 = vrsqrt.f32 %v6086_v7  ;;  %vm8035_vm7 = vcmask 917312  }
 0x2c8   :  { %v2801_v19 = vsub.f32 1.5, %v2673_v42  ;;  %v6101_v53 = vsel %vm8035_vm7, %v3386_v22, %v3385_v0  ;;  %v1552_v59 = vmul.f32 0.5, %v1551_v11  ;;  %vm1555_vm15 = vweird.f32 %v6047_v61 }
 0x2c9   :  { %v3710_v10 = vpop.eup %3709  ;;  %v2415_v41 = vmul.f32 0.5, %v6047_v61  ;;  %vm1595_vm12 = vweird.f32 %v6074_v43  ;;  %3715 = vrsqrt.f32 %v6091_v14  ;;  %v6107_v47 = vmax.f32 %v834_v30, 1e-24  ;;  %v8036_v61 = vld [vmem:[#allocation109_spill] sm:$0xff] }
 0x2ca   :  { %v1553_v58 = vsub.f32 1.5, %v1552_v59  ;;  %vm1556_vm5 = vweird.f32 %v3708_v36  ;;  %v1590_v52 = vmul.f32 %v3710_v10, %v6074_v43  ;;  %v2419_v13 = vmul.f32 0.5, %v6074_v43  ;;  %v3712_v12 = vpop.eup %3711 }
 0x2cb   :  { %v2929_v39 = vmul.f32 %v2801_v19, %v1578_v63  ;;  %vm1605_vm8 = vweird.f32 %v6076_v46  ;;  %3717 = vrsqrt.f32 %v6107_v47  ;;  %v6113_v48 = vmax.f32 %v810_v27, 1e-24  ;;  %vm1557_vm4 = vmor %vm1555_vm15, %vm1556_vm5 }
 0x2cc   :  { %v1554_v35 = vmul.f32 %v3708_v36, %v1553_v58  ;;  %v1591_v54 = vmul.f32 %v3710_v10, %v1590_v52  ;;  %v1600_v32 = vmul.f32 %v3712_v12, %v6076_v46  ;;  %v2420_v26 = vmul.f32 0.5, %v6076_v46 }
 0x2cd   :  { %v6117_v25 = vpop.eup %3713  ;;  %vm1596_vm2 = vweird.f32 %v3710_v10  ;;  %v6122_v44 = vmul.f32 0.5, %v6086_v7  ;;  %v6125_v24 = vmul.f32 0.5, %v6091_v14  ;;  %3719 = vrsqrt.f32 %v6113_v48 }
 0x2ce   :  { %v1558_v4 = vsel %vm1557_vm4, %v3708_v36, %v1554_v35  ;;  %v1592_v8 = vmul.f32 0.5, %v1591_v54  ;;  %v1601_v62 = vmul.f32 %v3712_v12, %v1600_v32  ;;  %vm1625_vm13 = vweird.f32 %v6091_v14  ;;  %vm1597_vm5 = vmor %vm1595_vm12, %vm1596_vm2 }
 0x2cf   :  { %v6130_v63 = vmul.f32 0.5, %v6107_v47  ;;  %v3716_v33 = vpop.eup %3715  ;;  %v6133_v45 = vmul.f32 %v2929_v39, %v8036_v61  ;;  %v2543_v55 = vmul.f32 %v2415_v41, %v1558_v4  ;;  %v1580_v22 = vmul.f32 %v6117_v25, %v6086_v7 }
 0x2d0   :  { %vm1585_vm6 = vweird.f32 %v6086_v7  ;;  %v6138_v60 = vmax.f32 %v838_v5, 1e-24  ;;  %v1593_v36 = vsub.f32 1.5, %v1592_v8  ;;  %v1602_v42 = vmul.f32 0.5, %v1601_v62 }
 0x2d1   :  { %vm1606_vm10 = vweird.f32 %v3712_v12  ;;  %v1620_v11 = vmul.f32 %v3716_v33, %v6091_v14  ;;  %vm1735_vm7 = vweird.f32 %v6107_v47  ;;  %v3718_v30 = vpop.eup %3717  ;;  %v2671_v0 = vmul.f32 %v2543_v55, %v1558_v4 }
 0x2d2   :  { %v1581_v19 = vmul.f32 %v6117_v25, %v1580_v22  ;;  %vm1586_vm15 = vweird.f32 %v6117_v25  ;;  %3721 = vrsqrt.f32 %v6138_v60  ;;  %v1594_v59 = vmul.f32 %v3710_v10, %v1593_v36  ;;  %vm1607_vm0 = vmor %vm1605_vm8, %vm1606_vm10  ;;  %v866_v36 = vpop.xlane.xlu2 %865 }
 0x2d3   :  { %v1603_v27 = vsub.f32 1.5, %v1602_v42  ;;  %v1621_v41 = vmul.f32 %v3716_v33, %v1620_v11  ;;  %v1730_v58 = vmul.f32 %v3718_v30, %v6107_v47  ;;  %v6146_v52 = vpop.eup %3719  ;;  %v2799_v39 = vsub.f32 1.5, %v2671_v0  ;;  %vm1587_vm8 = vmor %vm1585_vm6, %vm1586_vm15  ;;  %v8039_v47 = vld [vmem:[#allocation107_spill] sm:$0xff] }
 0x2d4   :  { %v1582_v35 = vmul.f32 0.5, %v1581_v19  ;;  %vm1626_vm4 = vweird.f32 %v3716_v33  ;;  %vm1736_vm3 = vweird.f32 %v3718_v30  ;;  %v1598_v54 = vsel %vm1597_vm5, %v3710_v10, %v1594_v59 }
 0x2d5   :  { %v1604_v32 = vmul.f32 %v3712_v12, %v1603_v27  ;;  %v1622_v5 = vmul.f32 0.5, %v1621_v41  ;;  %v1731_v8 = vmul.f32 %v3718_v30, %v1730_v58  ;;  %v2927_v62 = vmul.f32 %v2799_v39, %v1558_v4  ;;  %v8037_v4 = vld [vmem:[#allocation102_spill] sm:$0xff]  ;;  %vm1737_vm10 = vmor %vm1735_vm7, %vm1736_vm3 }
 0x2d6   :  { %v2547_v61 = vmul.f32 %v2419_v13, %v1598_v54  ;;  %v1583_v55 = vsub.f32 1.5, %v1582_v35  ;;  %v1610_v22 = vmul.f32 %v6146_v52, %v6113_v48  ;;  %vm1615_vm12 = vweird.f32 %v6113_v48 }
 0x2d7   :  { %v1608_v43 = vsel %vm1607_vm0, %v3712_v12, %v1604_v32  ;;  %v1623_v42 = vsub.f32 1.5, %v1622_v5  ;;  %v1732_v11 = vmul.f32 0.5, %v1731_v8  ;;  %vm1616_vm2 = vweird.f32 %v6146_v52  ;;  %vm1627_vm0 = vmor %vm1625_vm13, %vm1626_vm4 }
 0x2d8   :  { %v6158_v10 = vpop.eup %3721  ;;  %v3055_v13 = vmul.f32 %v2927_v62, %v8037_v4  ;;  %v2675_v0 = vmul.f32 %v2547_v61, %v1598_v54  ;;  %v2548_v19 = vmul.f32 %v2420_v26, %v1608_v43  ;;  %v1584_v46 = vmul.f32 %v6117_v25, %v1583_v55  ;;  %vm1617_vm3 = vmor %vm1615_vm12, %vm1616_vm2 }
 0x2d9   :  { %v1624_v12 = vmul.f32 %v3716_v33, %v1623_v42  ;;  %v1733_v59 = vsub.f32 1.5, %v1732_v11  ;;  %v1611_v27 = vmul.f32 %v6146_v52, %v1610_v22  ;;  %v1750_v41 = vmul.f32 %v6158_v10, %v6138_v60 }
 0x2da   :  { %v3388_v58 = vperm.slane %v3055_v13, %v5435_v15  ;;  %v2803_v39 = vsub.f32 1.5, %v2675_v0  ;;  %v2676_v35 = vmul.f32 %v2548_v19, %v1608_v43  ;;  %v1588_v26 = vsel %vm1587_vm8, %v6117_v25, %v1584_v46  ;;  %v836_v25 = vpop.xlane.xlu0 %835 }
 0x2db   :  { %v2546_v7 = vmul.f32 %v6122_v44, %v1588_v26  ;;  %v1628_v32 = vsel %vm1627_vm0, %v3716_v33, %v1624_v12  ;;  %v1734_v5 = vmul.f32 %v3718_v30, %v1733_v59  ;;  %v1612_v8 = vmul.f32 0.5, %v1611_v27 }
 0x2dc   :  { %vm8038_vm6 = vcmask 982912   ;;  %v2931_v61 = vmul.f32 %v2803_v39, %v1598_v54  ;;  %v2804_v55 = vsub.f32 1.5, %v2676_v35  ;;  %v2550_v22 = vmul.f32 %v6125_v24, %v1628_v32  ;;  %v840_v54 = vpop.xlane.xlu1 %839  ;;  %v8040_v39 = vld [vmem:[#allocation115_spill] sm:$0xff] }
 0x2dd   :  { %v6177_v62 = vsel %vm8038_vm6, %v3388_v58, %v6101_v53  ;;  %v2674_v14 = vmul.f32 %v2546_v7, %v1588_v26  ;;  %v1738_v42 = vsel %vm1737_vm10, %v3718_v30, %v1734_v5  ;;  %v1613_v11 = vsub.f32 1.5, %v1612_v8  ;;  %v8041_v8 = vld [vmem:[#allocation108_spill] sm:$0xff] }
 0x2de   :  { %v1751_v44 = vmul.f32 %v6158_v10, %v1750_v41  ;;  %v2932_v33 = vmul.f32 %v2804_v55, %v1608_v43  ;;  %v2678_v4 = vmul.f32 %v2550_v22, %v1628_v32  ;;  %v2561_v13 = vmul.f32 %v6130_v63, %v1738_v42  ;;  %v870_v63 = vpop.xlane.xlu2 %869 }
 0x2df   :  { %v2421_v53 = vmul.f32 0.5, %v6113_v48  ;;  %v2802_v0 = vsub.f32 1.5, %v2674_v14  ;;  %v1614_v24 = vmul.f32 %v6146_v52, %v1613_v11  ;;  %vm1755_vm13 = vweird.f32 %v6138_v60 }
 0x2e0   :  { %v1752_v19 = vmul.f32 0.5, %v1751_v44  ;;  %v3059_v46 = vmul.f32 %v2931_v61, %v8039_v47  ;;  %v2806_v12 = vsub.f32 1.5, %v2678_v4  ;;  %v2689_v30 = vmul.f32 %v2561_v13, %v1738_v42 }
 0x2e1   :  { %vm1756_vm7 = vweird.f32 %v6158_v10  ;;  %v2930_v43 = vmul.f32 %v2802_v0, %v1588_v26  ;;  %v1618_v59 = vsel %vm1617_vm3, %v6146_v52, %v1614_v24  ;;  %v6195_v41 = vmax.f32 %v866_v36, 1e-24 }
 0x2e2   :  { %v1753_v27 = vsub.f32 1.5, %v1752_v19  ;;  %v3392_v58 = vperm.slane %v6133_v45, %v5097_v18  ;;  %v3060_v35 = vmul.f32 %v2932_v33, %v8040_v39  ;;  %v2817_v7 = vsub.f32 1.5, %v2689_v30  ;;  %vm1757_vm15 = vmor %vm1755_vm13, %vm1756_vm7  ;;  %v868_v4 = vpop.xlane.xlu0 %867 }
 0x2e3   :  { %v2549_v5 = vmul.f32 %v2421_v53, %v1618_v59  ;;  %v3058_v61 = vmul.f32 %v2930_v43, %v8041_v8  ;;  %v2934_v48 = vmul.f32 %v2806_v12, %v1628_v32  ;;  %3723 = vrsqrt.f32 %v6195_v41  ;;  %v8042_v53 = vld [vmem:[#allocation113_spill] sm:$0xff]  ;;  %v8044_v43 = vld [vmem:[#allocation114_spill] sm:$0xff] }
 0x2e4   :  { %v1754_v55 = vmul.f32 %v6158_v10, %v1753_v27  ;;  %v3395_v26 = vperm.slane %v3059_v46, %v5118_v34  ;;  %v2945_v52 = vmul.f32 %v2817_v7, %v1738_v42  ;;  %v2435_v45 = vmul.f32 0.5, %v6138_v60  ;;  %v900_v24 = vpop.xlane.xlu1 %899  ;;  %v8043_v46 = vld [vmem:[#allocation138_spill] sm:$0xff] }
 0x2e5   :  { %v2677_v22 = vmul.f32 %v2549_v5, %v1618_v59  ;;  %v3393_v36 = vperm.slane %v3058_v61, %v5131_v1  ;;  %v6211_v32 = vmax.f32 %v836_v25, 1e-24  ;;  %v6213_v11 = vmax.f32 %v840_v54, 1e-24 }
 0x2e6   :  { %v1758_v14 = vsel %vm1757_vm15, %v6158_v10, %v1754_v55  ;;  %v3397_v42 = vperm.slane %v3060_v35, %v5122_v20  ;;  %v3062_v0 = vmul.f32 %v2934_v48, %v8042_v53  ;;  %v6222_v60 = vmul.f32 %v2768_v29, %v5967_v56  ;;  %v842_v29 = vpop.xlane.xlu2 %841 }
 0x2e7   :  { %v2805_v44 = vsub.f32 1.5, %v2677_v22  ;;  %v2563_v33 = vmul.f32 %v2435_v45, %v1758_v14  ;;  %v3394_v13 = vsel %vm3272_vm14, %v3393_v36, %v3392_v58  ;;  %3725 = vrsqrt.f32 %v6211_v32  ;;  %v8045_v22 = vld [vmem:[#allocation145_spill] sm:$0xff] }
 0x2e8   :  { %v3396_v10 = vsel %vm3276_vm1, %v3395_v26, %v3394_v13  ;;  %v6227_v12 = vmul.f32 %v2945_v52, %v8043_v46  ;;  %3727 = vrsqrt.f32 %v6213_v11  ;;  %vm1895_vm5 = vweird.f32 %v6195_v41 }
 0x2e9   :  { %v2933_v25 = vmul.f32 %v2805_v44, %v1618_v59  ;;  %v2691_v54 = vmul.f32 %v2563_v33, %v1758_v14  ;;  %v3724_v19 = vpop.eup %3723  ;;  %v3398_v30 = vsel %vm3280_vm9, %v3397_v42, %v3396_v10  ;;  %v3401_v59 = vperm.slane %v3062_v0, %v5272_v51 }
 0x2ea   :  { %v1890_v56 = vmul.f32 %v3724_v19, %v6195_v41  ;;  %v2449_v58 = vmul.f32 0.5, %v6195_v41  ;;  %v6236_v39 = vmax.f32 %v870_v63, 1e-24  ;;  %v6238_v35 = vmax.f32 %v868_v4, 1e-24  ;;  %v898_v0 = vpop.xlane.xlu0 %897 }
 0x2eb   :  { %v3061_v27 = vmul.f32 %v2933_v25, %v8044_v43  ;;  %v2819_v3 = vsub.f32 1.5, %v2691_v54  ;;  %v6242_v61 = vmul.f32 0.5, %v6211_v32  ;;  %v6247_v26 = vmax.f32 %v900_v24, 1e-24 }
 0x2ec   :  { %v1891_v8 = vmul.f32 %v3724_v19, %v1890_v56  ;;  %3729 = vrsqrt.f32 %v6236_v39  ;;  %v6249_v52 = vmax.f32 %v842_v29, 1e-24  ;;  %vm1745_vm4 = vweird.f32 %v6211_v32 }
 0x2ed   :  { %v3399_v7 = vperm.slane %v3061_v27, %v5282_v49  ;;  %v2947_v5 = vmul.f32 %v2819_v3, %v1758_v14  ;;  %v3726_v48 = vpop.eup %3725  ;;  %vm1896_vm12 = vweird.f32 %v3724_v19  ;;  %vm1765_vm2 = vweird.f32 %v6213_v11 }
 0x2ee   :  { %v1892_v36 = vmul.f32 0.5, %v1891_v8  ;;  %v1740_v14 = vmul.f32 %v3726_v48, %v6211_v32  ;;  %v3728_v44 = vpop.eup %3727  ;;  %v2436_v33 = vmul.f32 0.5, %v6213_v11  ;;  %3731 = vrsqrt.f32 %v6238_v35  ;;  %vm1897_vm6 = vmor %vm1895_vm5, %vm1896_vm12 }
 0x2ef   :  { %v3400_v63 = vsel %vm7645_vm11, %v3399_v7, %v3398_v30  ;;  %v6253_v45 = vmul.f32 %v2947_v5, %v8045_v22  ;;  %v1760_v13 = vmul.f32 %v3728_v44, %v6213_v11  ;;  %v6262_v53 = vmul.f32 0.5, %v6236_v39  ;;  %v902_v30 = vpop.xlane.xlu1 %901 }
 0x2f0   :  { %v1893_v4 = vsub.f32 1.5, %v1892_v36  ;;  %v1741_v42 = vmul.f32 %v3726_v48, %v1740_v14  ;;  %vm1746_vm8 = vweird.f32 %v3726_v48  ;;  %v6267_v25 = vmul.f32 0.5, %v6238_v35 }
 0x2f1   :  { %3733 = vrsqrt.f32 %v6247_v26  ;;  %v1761_v46 = vmul.f32 %v3728_v44, %v1760_v13  ;;  %vm1915_vm0 = vweird.f32 %v6236_v39  ;;  %vm1766_vm10 = vweird.f32 %v3728_v44  ;;  %vm1747_vm7 = vmor %vm1745_vm4, %vm1746_vm8 }
 0x2f2   :  { %v1894_v54 = vmul.f32 %v3724_v19, %v1893_v4  ;;  %v1742_v24 = vmul.f32 0.5, %v1741_v42  ;;  %3735 = vrsqrt.f32 %v6249_v52  ;;  %v3730_v43 = vpop.eup %3729  ;;  %v6276_v27 = vmul.f32 0.5, %v6247_v26  ;;  %vm1767_vm4 = vmor %vm1765_vm2, %vm1766_vm10 }
 0x2f3   :  { %v6278_v3 = vmax.f32 %v898_v0, 1e-24  ;;  %vm8046_vm13 = vcmask 392512   ;;  %v1762_v5 = vmul.f32 0.5, %v1761_v46  ;;  %v1910_v8 = vmul.f32 %v3730_v43, %v6236_v39 }
 0x2f4   :  { %v6281_v56 = vsel %vm8046_vm13, %v3401_v59, %v3400_v63  ;;  %v1898_v29 = vsel %vm1897_vm6, %v3724_v19, %v1894_v54  ;;  %v1743_v7 = vsub.f32 1.5, %v1742_v24  ;;  %v3732_v22 = vpop.eup %3731  ;;  %v6285_v14 = vmul.f32 0.5, %v6249_v52 }
 0x2f5   :  { %v2577_v36 = vmul.f32 %v2449_v58, %v1898_v29  ;;  %3737 = vrsqrt.f32 %v6278_v3  ;;  %v6288_v41 = vmax.f32 %v902_v30, 1e-24  ;;  %v1763_v42 = vsub.f32 1.5, %v1762_v5 }
 0x2f6   :  { %v1744_v4 = vmul.f32 %v3726_v48, %v1743_v7  ;;  %v1911_v13 = vmul.f32 %v3730_v43, %v1910_v8  ;;  %v1900_v59 = vmul.f32 %v3732_v22, %v6238_v35  ;;  %vm1905_vm3 = vweird.f32 %v6238_v35 }
 0x2f7   :  { %v6292_v19 = vpop.eup %3733  ;;  %v2705_v63 = vmul.f32 %v2577_v36, %v1898_v29  ;;  %vm1916_vm15 = vweird.f32 %v3730_v43  ;;  %vm1906_vm5 = vweird.f32 %v3732_v22  ;;  %vm2065_vm12 = vweird.f32 %v6247_v26 }
 0x2f8   :  { %v6299_v58 = vmul.f32 0.5, %v6278_v3  ;;  %v3736_v0 = vpop.eup %3735  ;;  %v1748_v54 = vsel %vm1747_vm7, %v3726_v48, %v1744_v4  ;;  %v1764_v24 = vmul.f32 %v3728_v44, %v1763_v42  ;;  %v1912_v46 = vmul.f32 0.5, %v1911_v13  ;;  %vm1917_vm8 = vmor %vm1915_vm0, %vm1916_vm15 }
 0x2f9   :  { %v1901_v30 = vmul.f32 %v3732_v22, %v1900_v59  ;;  %vm1775_vm6 = vweird.f32 %v6249_v52  ;;  %v2833_v7 = vsub.f32 1.5, %v2705_v63  ;;  %v2562_v5 = vmul.f32 %v6242_v61, %v1748_v54  ;;  %vm1907_vm0 = vmor %vm1905_vm3, %vm1906_vm5 }
 0x2fa   :  { %v2060_v32 = vmul.f32 %v6292_v19, %v6247_v26  ;;  %3739 = vrsqrt.f32 %v6288_v41  ;;  %v1768_v8 = vsel %vm1767_vm4, %v3728_v44, %v1764_v24  ;;  %v1913_v36 = vsub.f32 1.5, %v1912_v46 }
 0x2fb   :  { %v1902_v48 = vmul.f32 0.5, %v1901_v30  ;;  %v1770_v4 = vmul.f32 %v3736_v0, %v6249_v52  ;;  %v6310_v42 = vpop.eup %3737  ;;  %v2961_v13 = vmul.f32 %v2833_v7, %v1898_v29  ;;  %v2690_v59 = vmul.f32 %v2562_v5, %v1748_v54  ;;  %v930_v30 = vpop.xlane.xlu2 %929  ;;  %v8047_v5 = vld [vmem:[#allocation161_spill] sm:$0xff] }
 0x2fc   :  { %v2564_v63 = vmul.f32 %v2436_v33, %v1768_v8  ;;  %v2061_v61 = vmul.f32 %v6292_v19, %v2060_v32  ;;  %v1914_v47 = vmul.f32 %v3730_v43, %v1913_v36  ;;  %vm2066_vm2 = vweird.f32 %v6292_v19 }
 0x2fd   :  { %v1903_v11 = vsub.f32 1.5, %v1902_v48  ;;  %v1771_v10 = vmul.f32 %v3736_v0, %v1770_v4  ;;  %v2818_v55 = vsub.f32 1.5, %v2690_v59  ;;  %vm1776_vm10 = vweird.f32 %v3736_v0  ;;  %v8048_v59 = vld [vmem:[#allocation137_spill] sm:$0xff]  ;;  %vm2067_vm7 = vmor %vm2065_vm12, %vm2066_vm2 }
 0x2fe   :  { %v2692_v28 = vmul.f32 %v2564_v63, %v1768_v8  ;;  %v2062_v44 = vmul.f32 0.5, %v2061_v61  ;;  %v1918_v24 = vsel %vm1917_vm8, %v3730_v43, %v1914_v47  ;;  %v2050_v33 = vmul.f32 %v6310_v42, %v6278_v3  ;;  %vm1777_vm15 = vmor %vm1775_vm6, %vm1776_vm10 }
 0x2ff   :  { %v1904_v46 = vmul.f32 %v3732_v22, %v1903_v11  ;;  %v1772_v29 = vmul.f32 0.5, %v1771_v10  ;;  %vm2055_vm13 = vweird.f32 %v6278_v3  ;;  %v6323_v32 = vmul.f32 %v2961_v13, %v8047_v5 }
 0x300   :  { %v6320_v7 = vpop.eup %3739  ;;  %v2946_v36 = vmul.f32 %v2818_v55, %v1748_v54  ;;  %v2820_v48 = vsub.f32 1.5, %v2692_v28  ;;  %v2579_v39 = vmul.f32 %v6262_v53, %v1918_v24  ;;  %v2063_v10 = vsub.f32 1.5, %v2062_v44 }
 0x301   :  { %v1908_v47 = vsel %vm1907_vm0, %v3732_v22, %v1904_v46  ;;  %v1773_v43 = vsub.f32 1.5, %v1772_v29  ;;  %v2051_v4 = vmul.f32 %v6310_v42, %v2050_v33  ;;  %vm2056_vm3 = vweird.f32 %v6310_v42  ;;  %v8049_v22 = vld [vmem:[#allocation144_spill] sm:$0xff]  ;;  %v872_v33 = vpop.xlane.xlu0 %871 }
 0x302   :  { %v3074_v63 = vmul.f32 %v2946_v36, %v8048_v59  ;;  %v2948_v61 = vmul.f32 %v2820_v48, %v1768_v8  ;;  %v2707_v11 = vmul.f32 %v2579_v39, %v1918_v24  ;;  %v2578_v13 = vmul.f32 %v6267_v25, %v1908_v47  ;;  %vm2057_vm6 = vmor %vm2055_vm13, %vm2056_vm3 }
 0x303   :  { %v2064_v55 = vmul.f32 %v6292_v19, %v2063_v10  ;;  %v1774_v28 = vmul.f32 %v3736_v0, %v1773_v43  ;;  %v2052_v35 = vmul.f32 0.5, %v2051_v4  ;;  %v2070_v26 = vmul.f32 %v6320_v7, %v6288_v41  ;;  %v814_v4 = vpop.xlane.xlu1 %813 }
 0x304   :  { %v3424_v53 = vperm.slane %v3074_v63, %v5131_v1  ;;  %v3076_v54 = vmul.f32 %v2948_v61, %v8049_v22  ;;  %v2835_v44 = vsub.f32 1.5, %v2707_v11  ;;  %v2706_v8 = vmul.f32 %v2578_v13, %v1908_v47 }
 0x305   :  { %v2068_v25 = vsel %vm2067_vm7, %v6292_v19, %v2064_v55  ;;  %v1778_v46 = vsel %vm1777_vm15, %v3736_v0, %v1774_v28  ;;  %v2053_v29 = vsub.f32 1.5, %v2052_v35  ;;  %v8050_v5 = vperm.slane %v6227_v12, %v5097_v18  ;;  %v844_v55 = vpop.xlane.xlu2 %843  ;;  %v8053_v28 = vld [vmem:[#allocation166_spill] sm:$0xff] }
 0x306   :  { %v3428_v48 = vperm.slane %v3076_v54, %v5122_v20  ;;  %v2963_v39 = vmul.f32 %v2835_v44, %v1918_v24  ;;  %v2834_v10 = vsub.f32 1.5, %v2706_v8  ;;  %vm1565_vm5 = vweird.f32 %v6025_v50  ;;  %v8052_v24 = vld [vmem:[#allocation165_spill] sm:$0xff] }
 0x307   :  { %v3425_v36 = vsel %vm3272_vm14, %v3424_v53, %v8050_v5  ;;  %vm1566_vm12 = vweird.f32 %v6052_v16  ;;  %v8051_v52 = vperm.slane %v6253_v45, %v5118_v34  ;;  %v2594_v0 = vmul.f32 %v6276_v27, %v2068_v25 }
 0x308   :  { %v2565_v43 = vmul.f32 %v6285_v14, %v1778_v46  ;;  %v2054_v12 = vmul.f32 %v6310_v42, %v2053_v29  ;;  %v3091_v63 = vmul.f32 %v2963_v39, %v8052_v24  ;;  %v2962_v61 = vmul.f32 %v2834_v10, %v1908_v47  ;;  %vm1567_vm10 = vmor %vm1565_vm5, %vm1566_vm12 }
 0x309   :  { %v3427_v19 = vsel %vm3276_vm1, %v8051_v52, %v3425_v36  ;;  %v2071_v45 = vmul.f32 %v6320_v7, %v2070_v26  ;;  %v3454_v27 = vperm.slane %v6323_v32, %v5097_v18  ;;  %v2722_v11 = vmul.f32 %v2594_v0, %v2068_v25  ;;  %v8056_v0 = vld [vmem:[#allocation143_spill] sm:$0xff] }
 0x30a   :  { %v3429_v59 = vsel %vm3280_vm9, %v3428_v48, %v3427_v19  ;;  %v2693_v14 = vmul.f32 %v2565_v43, %v1778_v46  ;;  %v2058_v13 = vsel %vm2057_vm6, %v6310_v42, %v2054_v12  ;;  %v3090_v35 = vmul.f32 %v2962_v61, %v8053_v28  ;;  %v8055_v19 = vld [vmem:[#allocation180_spill] sm:$0xff]  ;;  %v8057_v61 = vld [vmem:[#allocation43_spill] sm:$0xff] }
 0x30b   :  { %v2593_v53 = vmul.f32 %v6299_v58, %v2058_v13  ;;  %v2072_v47 = vmul.f32 0.5, %v2071_v45  ;;  %vm2075_vm4 = vweird.f32 %v6288_v41  ;;  %v3457_v3 = vperm.slane %v3091_v63, %v5118_v34  ;;  %v904_v63 = vpop.xlane.xlu1 %903 }
 0x30c   :  { %v2850_v22 = vsub.f32 1.5, %v2722_v11  ;;  %v2821_v54 = vsub.f32 1.5, %v2693_v14  ;;  %vm2076_vm2 = vweird.f32 %v6320_v7  ;;  %v3455_v32 = vperm.slane %v3090_v35, %v5131_v1 }
 0x30d   :  { %v2721_v44 = vmul.f32 %v2593_v53, %v2058_v13  ;;  %v2073_v8 = vsub.f32 1.5, %v2072_v47  ;;  %v6376_v29 = vmax.f32 %v930_v30, 1e-24  ;;  %v6378_v5 = vmax.f32 %v872_v33, 1e-24  ;;  %vm2077_vm8 = vmor %vm2075_vm4, %vm2076_vm2  ;;  %v932_v33 = vpop.xlane.xlu0 %931  ;;  %v934_v28 = vpop.xlane.xlu2 %933 }
 0x30e   :  { %v2978_v42 = vmul.f32 %v2850_v22, %v2068_v25  ;;  %v2949_v26 = vmul.f32 %v2821_v54, %v1778_v46  ;;  %v6380_v58 = vmax.f32 %v814_v4, 1e-24  ;;  %v3456_v36 = vsel %vm3272_vm14, %v3455_v32, %v3454_v27 }
 0x30f   :  { %v2849_v48 = vsub.f32 1.5, %v2721_v44  ;;  %v2074_v39 = vmul.f32 %v6320_v7, %v2073_v8  ;;  %3741 = vrsqrt.f32 %v6376_v29  ;;  %v8054_v10 = vsub.f32 1.5, %v6097_v57 }
 0x310   :  { %v3106_v30 = vmul.f32 %v2978_v42, %v8055_v19  ;;  %v3077_v25 = vmul.f32 %v2949_v26, %v8056_v0  ;;  %v2467_v46 = vmul.f32 0.5, %v6288_v41  ;;  %v6397_v4 = vsel %vm3276_vm1, %v3457_v3, %v3456_v36 }
 0x311   :  { %v1564_v52 = vmul.f32 %v6052_v16, %v8054_v10  ;;  %v2977_v43 = vmul.f32 %v2849_v48, %v2058_v13  ;;  %v2078_v12 = vsel %vm2077_vm8, %v6320_v7, %v2074_v39  ;;  %3743 = vrsqrt.f32 %v6378_v5  ;;  %v8058_v7 = vld [vmem:[#allocation181_spill] sm:$0xff]  ;;  %v8059_v10 = vld [vmem:[#allocation179_spill] sm:$0xff] }
 0x312   :  { %v3430_v57 = vperm.slane %v3077_v25, %v5282_v49  ;;  %v2595_v24 = vmul.f32 %v2467_v46, %v2078_v12  ;;  %v6403_v45 = vmul.f32 %v6222_v60, %v8057_v61  ;;  %v3486_v41 = vperm.slane %v3106_v30, %v5131_v1 }
 0x313   :  { %v3105_v27 = vmul.f32 %v2977_v43, %v8058_v7  ;;  %3745 = vrsqrt.f32 %v6380_v58  ;;  %v6413_v11 = vsel %vm1567_vm10, %v6052_v16, %v1564_v52  ;;  %v6418_v60 = vmax.f32 %v844_v55, 1e-24 }
 0x314   :  { %v6416_v14 = vsel %vm7645_vm11, %v3430_v57, %v3429_v59  ;;  %v2723_v13 = vmul.f32 %v2595_v24, %v2078_v12  ;;  %vm2215_vm13 = vweird.f32 %v6376_v29  ;;  %v6422_v47 = vmax.f32 %v932_v33, 1e-24 }
 0x315   :  { %v3742_v35 = vpop.eup %3741  ;;  %v3485_v53 = vperm.slane %v3105_v27, %v5097_v18  ;;  %v6424_v3 = vmax.f32 %v904_v63, 1e-24  ;;  %v2481_v54 = vmul.f32 0.5, %v6376_v29  ;;  %3747 = vrsqrt.f32 %v6418_v60  ;;  %v874_v25 = vpop.xlane.xlu0 %873 }
 0x316   :  { %v2851_v22 = vsub.f32 1.5, %v2723_v13  ;;  %v2210_v16 = vmul.f32 %v3742_v35, %v6376_v29  ;;  %v2452_v32 = vmul.f32 0.5, %v6378_v5  ;;  %3749 = vrsqrt.f32 %v6422_v47 }
 0x317   :  { %v3744_v59 = vpop.eup %3743  ;;  %v3487_v55 = vsel %vm3272_vm14, %v3486_v41, %v3485_v53  ;;  %v6432_v44 = vmax.f32 %v934_v28, 1e-24  ;;  %vm1925_vm0 = vweird.f32 %v6378_v5  ;;  %vm1635_vm7 = vweird.f32 %v6380_v58 }
 0x318   :  { %v2979_v8 = vmul.f32 %v2851_v22, %v2078_v12  ;;  %v2211_v42 = vmul.f32 %v3742_v35, %v2210_v16  ;;  %v1920_v26 = vmul.f32 %v3744_v59, %v6378_v5  ;;  %vm2216_vm3 = vweird.f32 %v3742_v35 }
 0x319   :  { %v3746_v36 = vpop.eup %3745  ;;  %v2423_v48 = vmul.f32 0.5, %v6380_v58  ;;  %v6439_v39 = vmul.f32 0.5, %v6418_v60  ;;  %3751 = vrsqrt.f32 %v6424_v3  ;;  %vm1926_vm15 = vweird.f32 %v3744_v59  ;;  %vm2217_vm2 = vmor %vm2215_vm13, %vm2216_vm3 }
 0x31a   :  { %v3107_v52 = vmul.f32 %v2979_v8, %v8059_v10  ;;  %v2212_v19 = vmul.f32 0.5, %v2211_v42  ;;  %v1921_v30 = vmul.f32 %v3744_v59, %v1920_v26  ;;  %v1630_v0 = vmul.f32 %v3746_v36, %v6380_v58  ;;  %vm1927_vm13 = vmor %vm1925_vm0, %vm1926_vm15 }
 0x31b   :  { %vm1636_vm5 = vweird.f32 %v3746_v36  ;;  %vm1785_vm12 = vweird.f32 %v6418_v60  ;;  %v6446_v46 = vmul.f32 0.5, %v6422_v47  ;;  %3753 = vrsqrt.f32 %v6432_v44  ;;  %v3748_v33 = vpop.eup %3747 }
 0x31c   :  { %v3488_v43 = vperm.slane %v3107_v52, %v5118_v34  ;;  %v2213_v12 = vsub.f32 1.5, %v2212_v19  ;;  %v1922_v57 = vmul.f32 0.5, %v1921_v30  ;;  %v1631_v24 = vmul.f32 %v3746_v36, %v1630_v0  ;;  %v6450_v63 = vpop.eup %3749 }
 0x31d   :  { %v1780_v61 = vmul.f32 %v3748_v33, %v6418_v60  ;;  %vm1786_vm6 = vweird.f32 %v3748_v33  ;;  %v6454_v41 = vmul.f32 0.5, %v6424_v3  ;;  %v6456_v7 = vmax.f32 %v874_v25, 1e-24 }
 0x31e   :  { %v6459_v27 = vsel %vm3276_vm1, %v3488_v43, %v3487_v55  ;;  %v2214_v13 = vmul.f32 %v3742_v35, %v2213_v12  ;;  %v1923_v28 = vsub.f32 1.5, %v1922_v57  ;;  %v1632_v53 = vmul.f32 0.5, %v1631_v24  ;;  %vm1787_vm15 = vmor %vm1785_vm12, %vm1786_vm6 }
 0x31f   :  { %vm2085_vm4 = vweird.f32 %v6424_v3  ;;  %v3752_v22 = vpop.eup %3751  ;;  %v1781_v16 = vmul.f32 %v3748_v33, %v1780_v61  ;;  %v2220_v8 = vmul.f32 %v6450_v63, %v6422_v47  ;;  %vm2225_vm8 = vweird.f32 %v6422_v47 }
 0x320   :  { %vm2226_vm10 = vweird.f32 %v6450_v63  ;;  %3755 = vrsqrt.f32 %v6456_v7  ;;  %v2218_v55 = vsel %vm2217_vm2, %v3742_v35, %v2214_v13  ;;  %v1924_v42 = vmul.f32 %v3744_v59, %v1923_v28  ;;  %vm1637_vm2 = vmor %vm1635_vm7, %vm1636_vm5 }
 0x321   :  { %v1633_v26 = vsub.f32 1.5, %v1632_v53  ;;  %v2080_v10 = vmul.f32 %v3752_v22, %v6424_v3  ;;  %vm2235_vm11 = vweird.f32 %v6432_v44  ;;  %v3754_v52 = vpop.eup %3753  ;;  %v2609_v29 = vmul.f32 %v2481_v54, %v2218_v55  ;;  %vm2227_vm7 = vmor %vm2225_vm8, %vm2226_vm10 }
 0x322   :  { %v1782_v19 = vmul.f32 0.5, %v1781_v16  ;;  %v2221_v30 = vmul.f32 %v6450_v63, %v2220_v8  ;;  %vm2086_vm3 = vweird.f32 %v3752_v22  ;;  %v1928_v0 = vsel %vm1927_vm13, %v3744_v59, %v1924_v42 }
 0x323   :  { %v1634_v25 = vmul.f32 %v3746_v36, %v1633_v26  ;;  %v2081_v43 = vmul.f32 %v3752_v22, %v2080_v10  ;;  %v2230_v35 = vmul.f32 %v3754_v52, %v6432_v44  ;;  %v2737_v12 = vmul.f32 %v2609_v29, %v2218_v55  ;;  %vm2087_vm5 = vmor %vm2085_vm4, %vm2086_vm3 }
 0x324   :  { %v2580_v57 = vmul.f32 %v2452_v32, %v1928_v0  ;;  %v1783_v54 = vsub.f32 1.5, %v1782_v19  ;;  %v2222_v24 = vmul.f32 0.5, %v2221_v30  ;;  %vm2236_vm0 = vweird.f32 %v3754_v52  ;;  %v846_v30 = vpop.xlane.xlu1 %845 }
 0x325   :  { %v1638_v61 = vsel %vm1637_vm2, %v3746_v36, %v1634_v25  ;;  %v2082_v5 = vmul.f32 0.5, %v2081_v43  ;;  %v2231_v13 = vmul.f32 %v3754_v52, %v2230_v35  ;;  %v2865_v53 = vsub.f32 1.5, %v2737_v12  ;;  %vm2237_vm12 = vmor %vm2235_vm11, %vm2236_vm0 }
 0x326   :  { %v6480_v28 = vpop.eup %3755  ;;  %v2708_v59 = vmul.f32 %v2580_v57, %v1928_v0  ;;  %v2551_v16 = vmul.f32 %v2423_v48, %v1638_v61  ;;  %v1784_v8 = vmul.f32 %v3748_v33, %v1783_v54  ;;  %v2223_v32 = vsub.f32 1.5, %v2222_v24  ;;  %v816_v57 = vpop.xlane.xlu0 %815 }
 0x327   :  { %v2083_v42 = vsub.f32 1.5, %v2082_v5  ;;  %v2232_v58 = vmul.f32 0.5, %v2231_v13  ;;  %v1930_v26 = vmul.f32 %v6480_v28, %v6456_v7  ;;  %v2993_v36 = vmul.f32 %v2865_v53, %v2218_v55  ;;  %v8060_v13 = vld [vmem:[#allocation195_spill] sm:$0xff] }
 0x328   :  { %v2836_v10 = vsub.f32 1.5, %v2708_v59  ;;  %v2679_v29 = vmul.f32 %v2551_v16, %v1638_v61  ;;  %v1788_v19 = vsel %vm1787_vm15, %v3748_v33, %v1784_v8  ;;  %v2224_v48 = vmul.f32 %v6450_v63, %v2223_v32  ;;  %v8061_v59 = vld [vmem:[#allocation164_spill] sm:$0xff] }
 0x329   :  { %v2566_v25 = vmul.f32 %v6439_v39, %v1788_v19  ;;  %v2084_v60 = vmul.f32 %v3752_v22, %v2083_v42  ;;  %v2233_v43 = vsub.f32 1.5, %v2232_v58  ;;  %v2483_v33 = vmul.f32 0.5, %v6432_v44  ;;  %v876_v39 = vpop.xlane.xlu2 %875 }
 0x32a   :  { %v2964_v35 = vmul.f32 %v2836_v10, %v1928_v0  ;;  %v2807_v12 = vsub.f32 1.5, %v2679_v29  ;;  %v1931_v55 = vmul.f32 %v6480_v28, %v1930_v26  ;;  %v2228_v24 = vsel %vm2227_vm7, %v6450_v63, %v2224_v48  ;;  %v8063_v48 = vld [vmem:[#allocation151_spill] sm:$0xff] }
 0x32b   :  { %v2694_v54 = vmul.f32 %v2566_v25, %v1788_v19  ;;  %v2088_v5 = vsel %vm2087_vm5, %v3752_v22, %v2084_v60  ;;  %v2234_v47 = vmul.f32 %v3754_v52, %v2233_v43  ;;  %v3121_v53 = vmul.f32 %v2993_v36, %v8060_v13  ;;  %v8062_v22 = vld [vmem:[#allocation121_spill] sm:$0xff] }
 0x32c   :  { %v3092_v0 = vmul.f32 %v2964_v35, %v8061_v59  ;;  %v2935_v16 = vmul.f32 %v2807_v12, %v1638_v61  ;;  %v2610_v8 = vmul.f32 %v6446_v46, %v2228_v24  ;;  %v2596_v32 = vmul.f32 %v6454_v41, %v2088_v5 }
 0x32d   :  { %v2822_v3 = vsub.f32 1.5, %v2694_v54  ;;  %v2238_v42 = vsel %vm2237_vm12, %v3754_v52, %v2234_v47  ;;  %v1932_v58 = vmul.f32 0.5, %v1931_v55  ;;  %vm1935_vm6 = vweird.f32 %v6456_v7  ;;  %v936_v55 = vpop.xlane.xlu1 %935 }
 0x32e   :  { %v3459_v63 = vperm.slane %v3092_v0, %v5122_v20  ;;  %v3063_v26 = vmul.f32 %v2935_v16, %v8062_v22  ;;  %v2738_v10 = vmul.f32 %v2610_v8, %v2228_v24  ;;  %v2611_v36 = vmul.f32 %v2483_v33, %v2238_v42  ;;  %v8065_v0 = vld [vmem:[#allocation194_spill] sm:$0xff] }
 0x32f   :  { %v2950_v29 = vmul.f32 %v2822_v3, %v1788_v19  ;;  %v2724_v25 = vmul.f32 %v2596_v32, %v2088_v5  ;;  %v1933_v61 = vsub.f32 1.5, %v1932_v58  ;;  %vm1936_vm11 = vweird.f32 %v6480_v28 }
 0x330   :  { %v6511_v44 = vsel %vm3280_vm9, %v3459_v63, %v6397_v4  ;;  %v3403_v46 = vperm.slane %v3063_v26, %v5291_v21  ;;  %v2866_v41 = vsub.f32 1.5, %v2738_v10  ;;  %v2739_v52 = vmul.f32 %v2611_v36, %v2238_v42  ;;  %vm1937_vm8 = vmor %vm1935_vm6, %vm1936_vm11  ;;  %v8067_v63 = vld [vmem:[#allocation184_spill] sm:$0xff] }
 0x331   :  { %v3078_v60 = vmul.f32 %v2950_v29, %v8063_v48  ;;  %v2852_v43 = vsub.f32 1.5, %v2724_v25  ;;  %v1934_v35 = vmul.f32 %v6480_v28, %v1933_v61  ;;  %vm8064_vm4 = vcmask 458112  }
 0x332   :  { %v6519_v19 = vsel %vm8064_vm4, %v3403_v46, %v6281_v56  ;;  %v2994_v12 = vmul.f32 %v2866_v41, %v2228_v24  ;;  %v2867_v33 = vsub.f32 1.5, %v2739_v52  ;;  %v2453_v4 = vmul.f32 0.5, %v6456_v7  ;;  %v818_v56 = vpop.xlane.xlu2 %817  ;;  %v906_v24 = vpop.xlane.xlu0 %905  ;;  %v8069_v52 = vld [vmem:[#allocation169_spill] sm:$0xff] }
 0x333   :  { %v3432_v54 = vperm.slane %v3078_v60, %v5272_v51  ;;  %v2980_v47 = vmul.f32 %v2852_v43, %v2088_v5  ;;  %v1938_v13 = vsel %vm1937_vm8, %v6480_v28, %v1934_v35  ;;  %v6524_v59 = vmax.f32 %v846_v30, 1e-24 }
 0x334   :  { %v3122_v16 = vmul.f32 %v2994_v12, %v8065_v0  ;;  %v2995_v8 = vmul.f32 %v2867_v33, %v2238_v42  ;;  %v2581_v3 = vmul.f32 %v2453_v4, %v1938_v13  ;;  %v6527_v32 = vmax.f32 %v876_v39, 1e-24  ;;  %v8068_v42 = vld [vmem:[#allocation199_spill] sm:$0xff] }
 0x335   :  { %v2416_v58 = vmul.f32 0.5, %v6025_v50  ;;  %vm8066_vm10 = vcmask 392512   ;;  %v3108_v5 = vmul.f32 %v2980_v47, %v8067_v63  ;;  %3757 = vrsqrt.f32 %v6524_v59  ;;  %v878_v60 = vpop.xlane.xlu1 %877 }
 0x336   :  { %v6532_v7 = vsel %vm8066_vm10, %v3432_v54, %v6416_v14  ;;  %v3516_v28 = vperm.slane %v3121_v53, %v5097_v18  ;;  %v3517_v30 = vperm.slane %v3122_v16, %v5131_v1  ;;  %v3123_v22 = vmul.f32 %v2995_v8, %v8068_v42 }
 0x337   :  { %v2709_v39 = vmul.f32 %v2581_v3, %v1938_v13  ;;  %v2544_v26 = vmul.f32 %v2416_v58, %v6413_v11  ;;  %v3490_v10 = vperm.slane %v3108_v5, %v5122_v20  ;;  %3759 = vrsqrt.f32 %v6527_v32 }
 0x338   :  { %v3518_v50 = vsel %vm3272_vm14, %v3517_v30, %v3516_v28  ;;  %v3519_v14 = vperm.slane %v3123_v22, %v5118_v34  ;;  %v6544_v29 = vmax.f32 %v816_v57, 1e-24  ;;  %v6550_v1 = vmax.f32 %v936_v55, 1e-24 }
 0x339   :  { %v2837_v36 = vsub.f32 1.5, %v2709_v39  ;;  %v6548_v18 = vsel %vm3280_vm9, %v3490_v10, %v6459_v27  ;;  %v6552_v53 = vmax.f32 %v818_v56, 1e-24  ;;  %v6554_v25 = vmax.f32 %v906_v24, 1e-24 }
 0x33a   :  { %v3327_v61 = vperm.slane %v6403_v45, %v5789_v6  ;;  %v6559_v46 = vsel %vm3276_vm1, %v3519_v14, %v3518_v50  ;;  %3761 = vrsqrt.f32 %v6544_v29  ;;  %v6563_v41 = vmul.f32 %v2544_v26, %v6413_v11  ;;  %v908_v47 = vpop.xlane.xlu2 %907 }
 0x33b   :  { %v2965_v34 = vmul.f32 %v2837_v36, %v1938_v13  ;;  %v3758_v57 = vpop.eup %3757  ;;  %vm1795_vm14 = vweird.f32 %v6524_v59  ;;  %v2439_v27 = vmul.f32 0.5, %v6524_v59  ;;  %3763 = vrsqrt.f32 %v6550_v1  ;;  %v848_v13 = vpop.xlane.xlu0 %847 }
 0x33c   :  { %v1790_v45 = vmul.f32 %v3758_v57, %v6524_v59  ;;  %vm1945_vm1 = vweird.f32 %v6527_v32  ;;  %3765 = vrsqrt.f32 %v6552_v53  ;;  %v6573_v35 = vmul.f32 0.5, %v6527_v32 }
 0x33d   :  { %v3093_v48 = vmul.f32 %v2965_v34, %v8069_v52  ;;  %v3760_v43 = vpop.eup %3759  ;;  %v6576_v12 = vmul.f32 0.5, %v6544_v29  ;;  %v6579_v33 = vmul.f32 0.5, %v6550_v1  ;;  %3767 = vrsqrt.f32 %v6554_v25 }
 0x33e   :  { %v1791_v55 = vmul.f32 %v3758_v57, %v1790_v45  ;;  %vm1796_vm13 = vweird.f32 %v3758_v57  ;;  %v1940_v54 = vmul.f32 %v3760_v43, %v6527_v32  ;;  %vm1946_vm3 = vweird.f32 %v3760_v43 }
 0x33f   :  { %v3461_v4 = vperm.slane %v3093_v48, %v5282_v49  ;;  %v6585_v0 = vmul.f32 0.5, %v6552_v53  ;;  %v6587_v16 = vmax.f32 %v878_v60, 1e-24  ;;  %vm8070_vm2 = vcmask 1048512   ;;  %vm1797_vm8 = vmor %vm1795_vm14, %vm1796_vm13 }
 0x340   :  { %v6591_v8 = vsel %vm8070_vm2, %v3327_v61, %v5546_v2  ;;  %v3762_v3 = vpop.eup %3761  ;;  %vm8071_vm0 = vcmask 326912   ;;  %v1792_v24 = vmul.f32 0.5, %v1791_v55  ;;  %v1941_v58 = vmul.f32 %v3760_v43, %v1940_v54 }
 0x341   :  { %v6595_v56 = vsel %vm8071_vm0, %v3461_v4, %v6511_v44  ;;  %vm2245_vm15 = vweird.f32 %v6550_v1  ;;  %v6599_v63 = vmul.f32 0.5, %v6554_v25  ;;  %v3764_v5 = vpop.eup %3763  ;;  %v1640_v28 = vmul.f32 %v3762_v3, %v6544_v29  ;;  %vm1947_vm0 = vmor %vm1945_vm1, %vm1946_vm3 }
 0x342   :  { %vm1645_vm7 = vweird.f32 %v6544_v29  ;;  %vm1655_vm5 = vweird.f32 %v6552_v53  ;;  %3769 = vrsqrt.f32 %v6587_v16  ;;  %v6605_v2 = vmax.f32 %v908_v47, 1e-24  ;;  %v3766_v30 = vpop.eup %3765 }
 0x343   :  { %v6607_v44 = vmax.f32 %v848_v13, 1e-24  ;;  %v1793_v42 = vsub.f32 1.5, %v1792_v24  ;;  %v1942_v22 = vmul.f32 0.5, %v1941_v58  ;;  %vm1646_vm12 = vweird.f32 %v3762_v3  ;;  %v3768_v26 = vpop.eup %3767 }
 0x344   :  { %v2240_v39 = vmul.f32 %v3764_v5, %v6550_v1  ;;  %v1641_v10 = vmul.f32 %v3762_v3, %v1640_v28  ;;  %vm2246_vm6 = vweird.f32 %v3764_v5  ;;  %v1650_v50 = vmul.f32 %v3766_v30, %v6552_v53  ;;  %vm1647_vm14 = vmor %vm1645_vm7, %vm1646_vm12  ;;  %v8072_v53 = vld [vmem:[#allocation150_spill] sm:$0xff] }
 0x345   :  { %vm1656_vm11 = vweird.f32 %v3766_v30  ;;  %v1794_v14 = vmul.f32 %v3758_v57, %v1793_v42  ;;  %v1943_v36 = vsub.f32 1.5, %v1942_v22  ;;  %v2090_v34 = vmul.f32 %v3768_v26, %v6554_v25  ;;  %vm2247_vm13 = vmor %vm2245_vm15, %vm2246_vm6 }
 0x346   :  { %v2241_v61 = vmul.f32 %v3764_v5, %v2240_v39  ;;  %vm2095_vm4 = vweird.f32 %v6554_v25  ;;  %v1642_v52 = vmul.f32 0.5, %v1641_v10  ;;  %v1651_v48 = vmul.f32 %v3766_v30, %v1650_v50  ;;  %vm1657_vm3 = vmor %vm1655_vm5, %vm1656_vm11  ;;  %v820_v25 = vpop.xlane.xlu1 %819 }
 0x347   :  { %vm2096_vm10 = vweird.f32 %v3768_v26  ;;  %v6617_v45 = vmul.f32 0.5, %v6587_v16  ;;  %v1798_v60 = vsel %vm1797_vm8, %v3758_v57, %v1794_v14  ;;  %v1944_v4 = vmul.f32 %v3760_v43, %v1943_v36 }
 0x348   :  { %v2242_v55 = vmul.f32 0.5, %v2241_v61  ;;  %v2091_v54 = vmul.f32 %v3768_v26, %v2090_v34  ;;  %vm1955_vm2 = vweird.f32 %v6587_v16  ;;  %v3770_v47 = vpop.eup %3769  ;;  %v2567_v13 = vmul.f32 %v2439_v27, %v1798_v60  ;;  %vm2097_vm15 = vmor %vm2095_vm4, %vm2096_vm10 }
 0x349   :  { %v1643_v59 = vsub.f32 1.5, %v1642_v52  ;;  %v1652_v24 = vmul.f32 0.5, %v1651_v48  ;;  %3771 = vrsqrt.f32 %v6605_v2  ;;  %v1948_v58 = vsel %vm1947_vm0, %v3760_v43, %v1944_v4 }
 0x34a   :  { %v2243_v28 = vsub.f32 1.5, %v2242_v55  ;;  %v2092_v42 = vmul.f32 0.5, %v2091_v54  ;;  %v1950_v57 = vmul.f32 %v3770_v47, %v6587_v16  ;;  %v2695_v22 = vmul.f32 %v2567_v13, %v1798_v60 }
 0x34b   :  { %v2582_v39 = vmul.f32 %v6573_v35, %v1948_v58  ;;  %v1644_v10 = vmul.f32 %v3762_v3, %v1643_v59  ;;  %v1653_v50 = vsub.f32 1.5, %v1652_v24  ;;  %vm1956_vm1 = vweird.f32 %v3770_v47 }
 0x34c   :  { %v2244_v32 = vmul.f32 %v3764_v5, %v2243_v28  ;;  %v2093_v27 = vsub.f32 1.5, %v2092_v42  ;;  %v1951_v14 = vmul.f32 %v3770_v47, %v1950_v57  ;;  %v2823_v36 = vsub.f32 1.5, %v2695_v22  ;;  %vm1957_vm5 = vmor %vm1955_vm2, %vm1956_vm1 }
 0x34d   :  { %v2710_v61 = vmul.f32 %v2582_v39, %v1948_v58  ;;  %v1648_v43 = vsel %vm1647_vm14, %v3762_v3, %v1644_v10  ;;  %v1654_v34 = vmul.f32 %v3766_v30, %v1653_v50  ;;  %vm2105_vm7 = vweird.f32 %v6605_v2  ;;  %v8073_v10 = vld [vmem:[#allocation168_spill] sm:$0xff] }
 0x34e   :  { %v2552_v35 = vmul.f32 %v6576_v12, %v1648_v43  ;;  %v2248_v52 = vsel %vm2247_vm13, %v3764_v5, %v2244_v32  ;;  %v2094_v29 = vmul.f32 %v3768_v26, %v2093_v27  ;;  %v1952_v48 = vmul.f32 0.5, %v1951_v14 }
 0x34f   :  { %v3772_v4 = vpop.eup %3771  ;;  %v2951_v55 = vmul.f32 %v2823_v36, %v1798_v60  ;;  %v2838_v54 = vsub.f32 1.5, %v2710_v61  ;;  %v2612_v13 = vmul.f32 %v6579_v33, %v2248_v52  ;;  %v1658_v3 = vsel %vm1657_vm3, %v3766_v30, %v1654_v34 }
 0x350   :  { %v2680_v1 = vmul.f32 %v2552_v35, %v1648_v43  ;;  %v2553_v12 = vmul.f32 %v6585_v0, %v1658_v3  ;;  %v2098_v5 = vsel %vm2097_vm15, %v3768_v26, %v2094_v29  ;;  %v1953_v59 = vsub.f32 1.5, %v1952_v48  ;;  %v850_v35 = vpop.xlane.xlu2 %849  ;;  %v938_v29 = vpop.xlane.xlu0 %937  ;;  %v8075_v48 = vld [vmem:[#allocation120_spill] sm:$0xff] }
 0x351   :  { %v3079_v24 = vmul.f32 %v2951_v55, %v8072_v53  ;;  %v2966_v28 = vmul.f32 %v2838_v54, %v1948_v58  ;;  %v2740_v42 = vmul.f32 %v2612_v13, %v2248_v52  ;;  %v2597_v60 = vmul.f32 %v6599_v63, %v2098_v5 }
 0x352   :  { %v2808_v57 = vsub.f32 1.5, %v2680_v1  ;;  %v2681_v33 = vmul.f32 %v2553_v12, %v1658_v3  ;;  %v1954_v30 = vmul.f32 %v3770_v47, %v1953_v59  ;;  %v2100_v22 = vmul.f32 %v3772_v4, %v6605_v2  ;;  %v8078_v59 = vld [vmem:[#allocation119_spill] sm:$0xff] }
 0x353   :  { %v3434_v39 = vperm.slane %v3079_v24, %v5291_v21  ;;  %v3094_v0 = vmul.f32 %v2966_v28, %v8073_v10  ;;  %v2868_v26 = vsub.f32 1.5, %v2740_v42  ;;  %v2725_v50 = vmul.f32 %v2597_v60, %v2098_v5  ;;  %v8079_v42 = vld [vmem:[#allocation183_spill] sm:$0xff] }
 0x354   :  { %v2936_v58 = vmul.f32 %v2808_v57, %v1648_v43  ;;  %v2809_v32 = vsub.f32 1.5, %v2681_v33  ;;  %v1958_v27 = vsel %vm1957_vm5, %v3770_v47, %v1954_v30  ;;  %v2101_v63 = vmul.f32 %v3772_v4, %v2100_v22  ;;  %v8077_v43 = vld [vmem:[#allocation198_spill] sm:$0xff] }
 0x355   :  { %vm8074_vm12 = vcmask 458112   ;;  %v3463_v36 = vperm.slane %v3094_v0, %v5272_v51  ;;  %v2996_v61 = vmul.f32 %v2868_v26, %v2248_v52  ;;  %v2853_v34 = vsub.f32 1.5, %v2725_v50 }
 0x356   :  { %v6652_v14 = vsel %vm8074_vm12, %v3434_v39, %v6532_v7  ;;  %v3064_v55 = vmul.f32 %v2936_v58, %v8075_v48  ;;  %v2937_v54 = vmul.f32 %v2809_v32, %v1658_v3  ;;  %v2583_v16 = vmul.f32 %v6617_v45, %v1958_v27  ;;  %v8083_v58 = vld [vmem:[#allocation167_spill] sm:$0xff]  ;;  %vm8084_vm0 = vmmov %vm8074_vm12 }
 0x357   :  { %v2102_v13 = vmul.f32 0.5, %v2101_v63  ;;  %vm8076_vm6 = vcmask 392512   ;;  %v3124_v1 = vmul.f32 %v2996_v61, %v8077_v43  ;;  %v2981_v12 = vmul.f32 %v2853_v34, %v2098_v5 }
 0x358   :  { %v3464_v47 = vsel %vm8076_vm6, %v3463_v36, %v6595_v56  ;;  %vm2106_vm11 = vweird.f32 %v3772_v4  ;;  %v3405_v7 = vperm.slane %v3064_v55, %v5368_v31  ;;  %v3065_v52 = vmul.f32 %v2937_v54, %v8078_v59 }
 0x359   :  { %v2711_v53 = vmul.f32 %v2583_v16, %v1958_v27  ;;  %v2103_v24 = vsub.f32 1.5, %v2102_v13  ;;  %v3521_v28 = vperm.slane %v3124_v1, %v5122_v20  ;;  %v3109_v3 = vmul.f32 %v2981_v12, %v8079_v42  ;;  %vm2107_vm8 = vmor %vm2105_vm7, %vm2106_vm11 }
 0x35a   :  { %3773 = vrsqrt.f32 %v6607_v44  ;;  %vm8080_vm4 = vcmask 523712   ;;  %v3407_v56 = vperm.slane %v3065_v52, %v5351_v23  ;;  %v2800_v57 = vsub.f32 1.5, %v6563_v41  ;;  %v910_v41 = vpop.xlane.xlu1 %909 }
 0x35b   :  { %v3406_v45 = vsel %vm8080_vm4, %v3405_v7, %v6519_v19  ;;  %v2839_v60 = vsub.f32 1.5, %v2711_v53  ;;  %v2104_v5 = vmul.f32 %v3772_v4, %v2103_v24  ;;  %v6671_v33 = vsel %vm3280_vm9, %v3521_v28, %v6559_v46  ;;  %v8085_v7 = vld [vmem:[#allocation182_spill] sm:$0xff] }
 0x35c   :  { %v3492_v30 = vperm.slane %v3109_v3, %v5282_v49  ;;  %v2470_v20 = vmul.f32 0.5, %v6605_v2  ;;  %vm8081_vm10 = vcmask 589312   ;;  %v6681_v10 = vmax.f32 %v820_v25, 1e-24  ;;  %v880_v25 = vpop.xlane.xlu0 %879 }
 0x35d   :  { %v6679_v19 = vsel %vm8081_vm10, %v3407_v56, %v3406_v45  ;;  %v2967_v22 = vmul.f32 %v2839_v60, %v1958_v27  ;;  %v2108_v39 = vsel %vm2107_vm8, %v3772_v4, %v2104_v5  ;;  %vm8082_vm2 = vcmask 326912   ;;  %v940_v4 = vpop.xlane.xlu2 %939 }
 0x35e   :  { %v3493_v46 = vsel %vm8082_vm2, %v3492_v30, %v6548_v18  ;;  %v2598_v0 = vmul.f32 %v2470_v20, %v2108_v39  ;;  %v6685_v26 = vmax.f32 %v850_v35, 1e-24  ;;  %v6687_v50 = vmax.f32 %v938_v29, 1e-24 }
 0x35f   :  { %v3095_v32 = vmul.f32 %v2967_v22, %v8083_v58  ;;  %3775 = vrsqrt.f32 %v6681_v10  ;;  %v6693_v27 = vmul.f32 %v2800_v57, %v6413_v11  ;;  %vm1805_vm9 = vweird.f32 %v6607_v44 }
 0x360   :  { %v3774_v2 = vpop.eup %3773  ;;  %v2726_v63 = vmul.f32 %v2598_v0, %v2108_v39  ;;  %3777 = vrsqrt.f32 %v6685_v26  ;;  %v2440_v34 = vmul.f32 0.5, %v6607_v44  ;;  %v6700_v35 = vmax.f32 %v910_v41, 1e-24 }
 0x361   :  { %v3465_v18 = vperm.slane %v3095_v32, %v5291_v21  ;;  %v1800_v36 = vmul.f32 %v3774_v2, %v6607_v44  ;;  %3779 = vrsqrt.f32 %v6687_v50  ;;  %v6705_v55 = vmax.f32 %v940_v4, 1e-24 }
 0x362   :  { %v2854_v61 = vsub.f32 1.5, %v2726_v63  ;;  %v6707_v11 = vmax.f32 %v880_v25, 1e-24  ;;  %vm1665_vm14 = vweird.f32 %v6681_v10  ;;  %v6711_v16 = vmul.f32 0.5, %v6681_v10  ;;  %v852_v45 = vpop.xlane.xlu1 %851 }
 0x363   :  { %v6703_v29 = vsel %vm8084_vm0, %v3465_v18, %v3464_v47  ;;  %v1801_v48 = vmul.f32 %v3774_v2, %v1800_v36  ;;  %v6714_v13 = vmul.f32 0.5, %v6685_v26  ;;  %3781 = vrsqrt.f32 %v6700_v35 }
 0x364   :  { %v2982_v54 = vmul.f32 %v2854_v61, %v2108_v39  ;;  %vm1806_vm1 = vweird.f32 %v3774_v2  ;;  %vm1815_vm13 = vweird.f32 %v6685_v26  ;;  %v6719_v47 = vmul.f32 0.5, %v6687_v50 }
 0x365   :  { %v3776_v43 = vpop.eup %3775  ;;  %v1802_v1 = vmul.f32 0.5, %v1801_v48  ;;  %3783 = vrsqrt.f32 %v6705_v55  ;;  %v6725_v53 = vmul.f32 0.5, %v6700_v35  ;;  %v6730_v3 = vmul.f32 0.5, %v6705_v55  ;;  %vm1807_vm11 = vmor %vm1805_vm9, %vm1806_vm1 }
 0x366   :  { %v3778_v12 = vpop.eup %3777  ;;  %v3110_v59 = vmul.f32 %v2982_v54, %v8085_v7  ;;  %v1660_v52 = vmul.f32 %v3776_v43, %v6681_v10  ;;  %3785 = vrsqrt.f32 %v6707_v11  ;;  %vm1666_vm3 = vweird.f32 %v3776_v43 }
 0x367   :  { %v3780_v24 = vpop.eup %3779  ;;  %v1803_v28 = vsub.f32 1.5, %v1802_v1  ;;  %v1810_v42 = vmul.f32 %v3778_v12, %v6685_v26  ;;  %vm1816_vm15 = vweird.f32 %v3778_v12  ;;  %vm2255_vm7 = vweird.f32 %v6687_v50  ;;  %vm1667_vm9 = vmor %vm1665_vm14, %vm1666_vm3 }
 0x368   :  { %v3494_v56 = vperm.slane %v3110_v59, %v5272_v51  ;;  %v1661_v60 = vmul.f32 %v3776_v43, %v1660_v52  ;;  %v2250_v5 = vmul.f32 %v3780_v24, %v6687_v50  ;;  %vm2256_vm5 = vweird.f32 %v3780_v24  ;;  %vm1817_vm1 = vmor %vm1815_vm13, %vm1816_vm15 }
 0x369   :  { %v1804_v57 = vmul.f32 %v3774_v2, %v1803_v28  ;;  %v1811_v30 = vmul.f32 %v3778_v12, %v1810_v42  ;;  %vm2115_vm12 = vweird.f32 %v6700_v35  ;;  %v6737_v20 = vmul.f32 0.5, %v6707_v11  ;;  %v3782_v22 = vpop.eup %3781 }
 0x36a   :  { %v6740_v39 = vsel %vm8076_vm6, %v3494_v56, %v3493_v46  ;;  %v1662_v41 = vmul.f32 0.5, %v1661_v60  ;;  %v2251_v0 = vmul.f32 %v3780_v24, %v2250_v5  ;;  %vm2265_vm4 = vweird.f32 %v6705_v55  ;;  %vm2257_vm6 = vmor %vm2255_vm7, %vm2256_vm5 }
 0x36b   :  { %v6746_v58 = vmax.f32 %v852_v45, 1e-24  ;;  %v3784_v32 = vpop.eup %3783  ;;  %v1808_v63 = vsel %vm1807_vm11, %v3774_v2, %v1804_v57  ;;  %v1812_v4 = vmul.f32 0.5, %v1811_v30  ;;  %v2110_v25 = vmul.f32 %v3782_v22, %v6700_v35 }
 0x36c   :  { %vm2116_vm8 = vweird.f32 %v3782_v22  ;;  %v3786_v18 = vpop.eup %3785  ;;  %v2568_v36 = vmul.f32 %v2440_v34, %v1808_v63  ;;  %v1663_v46 = vsub.f32 1.5, %v1662_v41  ;;  %v2252_v61 = vmul.f32 0.5, %v2251_v0  ;;  %v882_v0 = vpop.xlane.xlu2 %881 }
 0x36d   :  { %v2260_v48 = vmul.f32 %v3784_v32, %v6705_v55  ;;  %v1813_v44 = vsub.f32 1.5, %v1812_v4  ;;  %v2111_v54 = vmul.f32 %v3782_v22, %v2110_v25  ;;  %vm2266_vm10 = vweird.f32 %v3784_v32  ;;  %vm2117_vm14 = vmor %vm2115_vm12, %vm2116_vm8 }
 0x36e   :  { %v1960_v1 = vmul.f32 %v3786_v18, %v6707_v11  ;;  %vm1965_vm2 = vweird.f32 %v6707_v11  ;;  %v2696_v7 = vmul.f32 %v2568_v36, %v1808_v63  ;;  %v1664_v59 = vmul.f32 %v3776_v43, %v1663_v46  ;;  %v822_v46 = vpop.xlane.xlu0 %821  ;;  %vm2267_vm13 = vmor %vm2265_vm4, %vm2266_vm10  ;;  %v8089_v11 = vld [vmem:[#allocation157_spill] sm:$0xff] }
 0x36f   :  { %v2253_v2 = vsub.f32 1.5, %v2252_v61  ;;  %v2261_v52 = vmul.f32 %v3784_v32, %v2260_v48  ;;  %v1814_v34 = vmul.f32 %v3778_v12, %v1813_v44  ;;  %v2112_v28 = vmul.f32 0.5, %v2111_v54 }
 0x370   :  { %v1961_v42 = vmul.f32 %v3786_v18, %v1960_v1  ;;  %vm1966_vm0 = vweird.f32 %v3786_v18  ;;  %v2824_v45 = vsub.f32 1.5, %v2696_v7  ;;  %v1668_v56 = vsel %vm1667_vm9, %v3776_v43, %v1664_v59 }
 0x371   :  { %v2254_v60 = vmul.f32 %v3780_v24, %v2253_v2  ;;  %v2262_v5 = vmul.f32 0.5, %v2261_v52  ;;  %v2554_v57 = vmul.f32 %v6711_v16, %v1668_v56  ;;  %v1818_v30 = vsel %vm1817_vm1, %v3778_v12, %v1814_v34  ;;  %v8086_v16 = vld [vmem:[#allocation149_spill] sm:$0xff]  ;;  %vm1967_vm3 = vmor %vm1965_vm2, %vm1966_vm0 }
 0x372   :  { %v2113_v10 = vsub.f32 1.5, %v2112_v28  ;;  %v1962_v41 = vmul.f32 0.5, %v1961_v42  ;;  %v2952_v4 = vmul.f32 %v2824_v45, %v1808_v63  ;;  %v2569_v25 = vmul.f32 %v6714_v13, %v1818_v30 }
 0x373   :  { %v2258_v43 = vsel %vm2257_vm6, %v3780_v24, %v2254_v60  ;;  %v2263_v36 = vsub.f32 1.5, %v2262_v5  ;;  %v2682_v26 = vmul.f32 %v2554_v57, %v1668_v56  ;;  %3787 = vrsqrt.f32 %v6746_v58  ;;  %v8088_v60 = vld [vmem:[#allocation127_spill] sm:$0xff]  ;;  %v942_v57 = vpop.xlane.xlu1 %941 }
 0x374   :  { %v2613_v61 = vmul.f32 %v6719_v47, %v2258_v43  ;;  %v2114_v48 = vmul.f32 %v3782_v22, %v2113_v10  ;;  %v1963_v44 = vsub.f32 1.5, %v1962_v41  ;;  %v3080_v12 = vmul.f32 %v2952_v4, %v8086_v16 }
 0x375   :  { %v2697_v54 = vmul.f32 %v2569_v25, %v1818_v30  ;;  %v2264_v50 = vmul.f32 %v3784_v32, %v2263_v36  ;;  %v2810_v63 = vsub.f32 1.5, %v2682_v26  ;;  %vm8087_vm15 = vcmask 523712   ;;  %v8091_v26 = vld [vmem:[#allocation101_spill] sm:$0xff] }
 0x376   :  { %v2741_v13 = vmul.f32 %v2613_v61, %v2258_v43  ;;  %v2118_v24 = vsel %vm2117_vm14, %v3782_v22, %v2114_v48  ;;  %v1964_v47 = vmul.f32 %v3786_v18, %v1963_v44  ;;  %v3436_v1 = vperm.slane %v3080_v12, %v5368_v31  ;;  %v912_v16 = vpop.xlane.xlu0 %911  ;;  %vm8100_vm2 = vmmov %vm8087_vm15 }
 0x377   :  { %v2825_v7 = vsub.f32 1.5, %v2697_v54  ;;  %v2599_v59 = vmul.f32 %v6725_v53, %v2118_v24  ;;  %v2268_v2 = vsel %vm2267_vm13, %v3784_v32, %v2264_v50  ;;  %v2938_v35 = vmul.f32 %v2810_v63, %v1668_v56 }
 0x378   :  { %v2869_v52 = vsub.f32 1.5, %v2741_v13  ;;  %v2614_v34 = vmul.f32 %v6730_v3, %v2268_v2  ;;  %v1968_v22 = vsel %vm1967_vm3, %v3786_v18, %v1964_v47  ;;  %v3437_v55 = vsel %vm8087_vm15, %v3436_v1, %v6652_v14  ;;  %v8090_v18 = vld [vmem:[#allocation197_spill] sm:$0xff]  ;;  %v8094_v13 = vld [vmem:[#allocation187_spill] sm:$0xff] }
 0x379   :  { %v2953_v28 = vmul.f32 %v2825_v7, %v1818_v30  ;;  %v2727_v42 = vmul.f32 %v2599_v59, %v2118_v24  ;;  %v2584_v45 = vmul.f32 %v6737_v20, %v1968_v22  ;;  %v3066_v5 = vmul.f32 %v2938_v35, %v8088_v60  ;;  %v3788_v10 = vpop.eup %3787  ;;  %v824_v20 = vpop.xlane.xlu2 %823 }
 0x37a   :  { %v2997_v53 = vmul.f32 %v2869_v52, %v2258_v43  ;;  %v2742_v32 = vmul.f32 %v2614_v34, %v2268_v2  ;;  %v6783_v25 = vmax.f32 %v882_v0, 1e-24  ;;  %v1820_v36 = vmul.f32 %v3788_v10, %v6746_v58 }
 0x37b   :  { %v3081_v41 = vmul.f32 %v2953_v28, %v8089_v11  ;;  %v2855_v56 = vsub.f32 1.5, %v2727_v42  ;;  %v2712_v4 = vmul.f32 %v2584_v45, %v1968_v22  ;;  %v3409_v3 = vperm.slane %v3066_v5, %v5358_v37 }
 0x37c   :  { %v3125_v14 = vmul.f32 %v2997_v53, %v8090_v18  ;;  %v2870_v30 = vsub.f32 1.5, %v2742_v32  ;;  %v3056_v43 = vmul.f32 %v6693_v27, %v8091_v26  ;;  %vm8092_vm7 = vcmask 654912  }
 0x37d   :  { %v3438_v61 = vperm.slane %v3081_v41, %v5351_v23  ;;  %v2983_v48 = vmul.f32 %v2855_v56, %v2118_v24  ;;  %v2840_v44 = vsub.f32 1.5, %v2712_v4  ;;  %v6793_v0 = vsel %vm8092_vm7, %v3409_v3, %v6679_v19  ;;  %v8096_v24 = vld [vmem:[#allocation202_spill] sm:$0xff]  ;;  %v8097_v19 = vld [vmem:[#allocation172_spill] sm:$0xff] }
 0x37e   :  { %v3523_v12 = vperm.slane %v3125_v14, %v5282_v49  ;;  %v2998_v54 = vmul.f32 %v2870_v30, %v2268_v2  ;;  %v1821_v50 = vmul.f32 %v3788_v10, %v1820_v36  ;;  %vm8093_vm5 = vcmask 589312   ;;  %v854_v3 = vpop.xlane.xlu0 %853 }
 0x37f   :  { %v6797_v63 = vsel %vm8093_vm5, %v3438_v61, %v3437_v55  ;;  %v3111_v47 = vmul.f32 %v2983_v48, %v8094_v13  ;;  %v2968_v1 = vmul.f32 %v2840_v44, %v1968_v22  ;;  %3789 = vrsqrt.f32 %v6783_v25 }
 0x380   :  { %vm8095_vm12 = vcmask 326912   ;;  %v3126_v7 = vmul.f32 %v2998_v54, %v8096_v24  ;;  %v1822_v59 = vmul.f32 0.5, %v1821_v50  ;;  %vm1825_vm11 = vweird.f32 %v6746_v58 }
 0x381   :  { %v3524_v27 = vsel %vm8095_vm12, %v3523_v12, %v6671_v33  ;;  %v3496_v49 = vperm.slane %v3111_v47, %v5291_v21  ;;  %v3096_v2 = vmul.f32 %v2968_v1, %v8097_v19  ;;  %vm1826_vm4 = vweird.f32 %v3788_v10  ;;  %v914_v11 = vpop.xlane.xlu2 %913  ;;  %v8102_v19 = vld [vmem:[#allocation156_spill] sm:$0xff] }
 0x382   :  { %v6807_v35 = vmax.f32 %v822_v46, 1e-24  ;;  %v3525_v52 = vperm.slane %v3126_v7, %v5272_v51  ;;  %v1823_v34 = vsub.f32 1.5, %v1822_v59  ;;  %v6810_v22 = vmax.f32 %v942_v57, 1e-24  ;;  %v884_v51 = vpop.xlane.xlu1 %883  ;;  %vm1827_vm9 = vmor %vm1825_vm11, %vm1826_vm4 }
 0x383   :  { %v6812_v55 = vmax.f32 %v824_v20, 1e-24  ;;  %vm8098_vm8 = vcmask 458112   ;;  %v3467_v28 = vperm.slane %v3096_v2, %v5368_v31  ;;  %v3390_v42 = vperm.slane %v3056_v43, %v5789_v6 }
 0x384   :  { %v6816_v33 = vsel %vm8098_vm8, %v3496_v49, %v6740_v39  ;;  %3791 = vrsqrt.f32 %v6807_v35  ;;  %vm8099_vm10 = vcmask 392512   ;;  %v1824_v45 = vmul.f32 %v3788_v10, %v1823_v34 }
 0x385   :  { %v6822_v46 = vsel %vm8099_vm10, %v3525_v52, %v3524_v27  ;;  %3793 = vrsqrt.f32 %v6810_v22  ;;  %v3790_v60 = vpop.eup %3789  ;;  %v6827_v5 = vsel %vm8100_vm2, %v3467_v28, %v6703_v29  ;;  %v2442_v39 = vmul.f32 0.5, %v6746_v58 }
 0x386   :  { %3795 = vrsqrt.f32 %v6812_v55  ;;  %v1828_v53 = vsel %vm1827_vm9, %v3788_v10, %v1824_v45  ;;  %v1970_v32 = vmul.f32 %v3790_v60, %v6783_v25  ;;  %vm1975_vm0 = vweird.f32 %v6783_v25 }
 0x387   :  { %v2457_v57 = vmul.f32 0.5, %v6783_v25  ;;  %v2570_v41 = vmul.f32 %v2442_v39, %v1828_v53  ;;  %v6838_v29 = vmul.f32 0.5, %v6807_v35  ;;  %v6840_v56 = vmax.f32 %v912_v16, 1e-24 }
 0x388   :  { %v6842_v4 = vmax.f32 %v884_v51, 1e-24  ;;  %v1971_v58 = vmul.f32 %v3790_v60, %v1970_v32  ;;  %vm1976_vm1 = vweird.f32 %v3790_v60  ;;  %v6845_v10 = vmul.f32 0.5, %v6810_v22 }
 0x389   :  { %vm8101_vm6 = vcmask 1048512   ;;  %v2698_v30 = vmul.f32 %v2570_v41, %v1828_v53  ;;  %vm2275_vm14 = vweird.f32 %v6810_v22  ;;  %v6853_v36 = vmul.f32 0.5, %v6812_v55  ;;  %vm1977_vm12 = vmor %vm1975_vm0, %vm1976_vm1 }
 0x38a   :  { %v6849_v18 = vsel %vm8101_vm6, %v3390_v42, %v6177_v62  ;;  %v3792_v14 = vpop.eup %3791  ;;  %3797 = vrsqrt.f32 %v6840_v56  ;;  %v6856_v20 = vmax.f32 %v914_v11, 1e-24  ;;  %v1972_v43 = vmul.f32 0.5, %v1971_v58 }
 0x38b   :  { %v3794_v26 = vpop.eup %3793  ;;  %v1670_v61 = vmul.f32 %v3792_v14, %v6807_v35  ;;  %vm1675_vm13 = vweird.f32 %v6807_v35  ;;  %vm1685_vm3 = vweird.f32 %v6812_v55  ;;  %3799 = vrsqrt.f32 %v6842_v4 }
 0x38c   :  { %v6862_v62 = vmax.f32 %v854_v3, 1e-24  ;;  %v3796_v48 = vpop.eup %3795  ;;  %v2826_v44 = vsub.f32 1.5, %v2698_v30  ;;  %vm1676_vm15 = vweird.f32 %v3792_v14  ;;  %v2270_v16 = vmul.f32 %v3794_v26, %v6810_v22 }
 0x38d   :  { %v6866_v12 = vmul.f32 0.5, %v6840_v56  ;;  %v1973_v54 = vsub.f32 1.5, %v1972_v43  ;;  %v1671_v50 = vmul.f32 %v3792_v14, %v1670_v61  ;;  %vm2276_vm7 = vweird.f32 %v3794_v26  ;;  %vm1677_vm2 = vmor %vm1675_vm13, %vm1676_vm15 }
 0x38e   :  { %v1680_v13 = vmul.f32 %v3796_v48, %v6812_v55  ;;  %v2954_v47 = vmul.f32 %v2826_v44, %v1828_v53  ;;  %v2271_v1 = vmul.f32 %v3794_v26, %v2270_v16  ;;  %vm1686_vm5 = vweird.f32 %v3796_v48  ;;  %vm2277_vm0 = vmor %vm2275_vm14, %vm2276_vm7 }
 0x38f   :  { %3801 = vrsqrt.f32 %v6856_v20  ;;  %v1974_v27 = vmul.f32 %v3790_v60, %v1973_v54  ;;  %v1672_v24 = vmul.f32 0.5, %v1671_v50  ;;  %v6871_v59 = vmul.f32 0.5, %v6842_v4  ;;  %vm1687_vm6 = vmor %vm1685_vm3, %vm1686_vm5 }
 0x390   :  { %v1681_v7 = vmul.f32 %v3796_v48, %v1680_v13  ;;  %v3798_v49 = vpop.eup %3797  ;;  %v3082_v2 = vmul.f32 %v2954_v47, %v8102_v19  ;;  %v2272_v52 = vmul.f32 0.5, %v2271_v1  ;;  %v6878_v34 = vmul.f32 0.5, %v6856_v20 }
 0x391   :  { %3803 = vrsqrt.f32 %v6862_v62  ;;  %v6881_v28 = vpop.eup %3799  ;;  %v1978_v42 = vsel %vm1977_vm12, %v3790_v60, %v1974_v27  ;;  %v1673_v45 = vsub.f32 1.5, %v1672_v24  ;;  %v2120_v39 = vmul.f32 %v3798_v49, %v6840_v56  ;;  %v6913_v24 = vpop.xlane.xlu1 %825 }
 0x392   :  { %v1682_v51 = vmul.f32 0.5, %v1681_v7  ;;  %vm2125_vm11 = vweird.f32 %v6840_v56  ;;  %vm1985_vm4 = vweird.f32 %v6842_v4  ;;  %v3440_v25 = vperm.slane %v3082_v2, %v5358_v37 }
 0x393   :  { %v2585_v53 = vmul.f32 %v2457_v57, %v1978_v42  ;;  %v2273_v32 = vsub.f32 1.5, %v2272_v52  ;;  %vm2126_vm8 = vweird.f32 %v3798_v49  ;;  %v1674_v11 = vmul.f32 %v3792_v14, %v1673_v45  ;;  %v8104_v45 = vld [vmem:[#allocation171_spill] sm:$0xff] }
 0x394   :  { %v1683_v41 = vsub.f32 1.5, %v1682_v51  ;;  %v2121_v3 = vmul.f32 %v3798_v49, %v2120_v39  ;;  %v1980_v58 = vmul.f32 %v6881_v28, %v6842_v4  ;;  %vm8103_vm10 = vcmask 654912   ;;  %vm2127_vm13 = vmor %vm2125_vm11, %vm2126_vm8 }
 0x395   :  { %v6889_v60 = vpop.eup %3801  ;;  %v6893_v30 = vsel %vm8103_vm10, %v3440_v25, %v6797_v63  ;;  %v2713_v43 = vmul.f32 %v2585_v53, %v1978_v42  ;;  %v2274_v57 = vmul.f32 %v3794_v26, %v2273_v32  ;;  %vm1986_vm9 = vweird.f32 %v6881_v28 }
 0x396   :  { %v1678_v61 = vsel %vm1677_vm2, %v3792_v14, %v1674_v11  ;;  %v1684_v44 = vmul.f32 %v3796_v48, %v1683_v41  ;;  %v2122_v16 = vmul.f32 0.5, %v2121_v3  ;;  %v1981_v54 = vmul.f32 %v6881_v28, %v1980_v58  ;;  %vm1987_vm3 = vmor %vm1985_vm4, %vm1986_vm9 }
 0x397   :  { %vm2135_vm1 = vweird.f32 %v6856_v20  ;;  %v6904_v63 = vpop.eup %3803  ;;  %v2841_v50 = vsub.f32 1.5, %v2713_v43  ;;  %v2555_v35 = vmul.f32 %v6838_v29, %v1678_v61  ;;  %v2278_v13 = vsel %vm2277_vm0, %v3794_v26, %v2274_v57 }
 0x398   :  { %v2130_v22 = vmul.f32 %v6889_v60, %v6856_v20  ;;  %v2615_v14 = vmul.f32 %v6845_v10, %v2278_v13  ;;  %v1688_v47 = vsel %vm1687_vm6, %v3796_v48, %v1684_v44  ;;  %v2123_v1 = vsub.f32 1.5, %v2122_v16  ;;  %v8106_v16 = vld [vmem:[#allocation126_spill] sm:$0xff] }
 0x399   :  { %v1982_v27 = vmul.f32 0.5, %v1981_v54  ;;  %v2969_v7 = vmul.f32 %v2841_v50, %v1978_v42  ;;  %v2683_v19 = vmul.f32 %v2555_v35, %v1678_v61  ;;  %v2556_v2 = vmul.f32 %v6853_v36, %v1688_v47  ;;  %v856_v42 = vpop.xlane.xlu2 %855  ;;  %v944_v35 = vpop.xlane.xlu0 %943 }
 0x39a   :  { %v2131_v29 = vmul.f32 %v6889_v60, %v2130_v22  ;;  %v2743_v26 = vmul.f32 %v2615_v14, %v2278_v13  ;;  %v2124_v52 = vmul.f32 %v3798_v49, %v2123_v1  ;;  %vm2136_vm14 = vweird.f32 %v6889_v60  ;;  %v8108_v1 = vld [vmem:[#allocation125_spill] sm:$0xff] }
 0x39b   :  { %v1983_v55 = vsub.f32 1.5, %v1982_v27  ;;  %v3097_v51 = vmul.f32 %v2969_v7, %v8104_v45  ;;  %v2811_v39 = vsub.f32 1.5, %v2683_v19  ;;  %v2684_v10 = vmul.f32 %v2556_v2, %v1688_v47  ;;  %vm2137_vm7 = vmor %vm2135_vm1, %vm2136_vm14  ;;  %v916_v2 = vpop.xlane.xlu1 %915 }
 0x39c   :  { %v2132_v48 = vmul.f32 0.5, %v2131_v29  ;;  %v2871_v25 = vsub.f32 1.5, %v2743_v26  ;;  %v2128_v53 = vsel %vm2127_vm13, %v3798_v49, %v2124_v52  ;;  %v1830_v32 = vmul.f32 %v6904_v63, %v6862_v62 }
 0x39d   :  { %v1984_v36 = vmul.f32 %v6881_v28, %v1983_v55  ;;  %v3469_v11 = vperm.slane %v3097_v51, %v5351_v23  ;;  %v2939_v41 = vmul.f32 %v2811_v39, %v1678_v61  ;;  %v2812_v3 = vsub.f32 1.5, %v2684_v10  ;;  %v8112_v51 = vld [vmem:[#allocation186_spill] sm:$0xff] }
 0x39e   :  { %v2600_v58 = vmul.f32 %v6866_v12, %v2128_v53  ;;  %v2999_v56 = vmul.f32 %v2871_v25, %v2278_v13  ;;  %v2133_v49 = vsub.f32 1.5, %v2132_v48  ;;  %v1831_v57 = vmul.f32 %v6904_v63, %v1830_v32  ;;  %v8107_v12 = vld [vmem:[#allocation201_spill] sm:$0xff] }
 0x39f   :  { %v1988_v43 = vsel %vm1987_vm3, %v6881_v28, %v1984_v36  ;;  %vm8105_vm15 = vcmask 589312   ;;  %v3067_v54 = vmul.f32 %v2939_v41, %v8106_v16  ;;  %v2940_v61 = vmul.f32 %v2812_v3, %v1688_v47  ;;  %v8113_v3 = vld [vmem:[#allocation170_spill] sm:$0xff] }
 0x3a0   :  { %v3470_v44 = vsel %vm8105_vm15, %v3469_v11, %v6827_v5  ;;  %v2728_v50 = vmul.f32 %v2600_v58, %v2128_v53  ;;  %v3127_v22 = vmul.f32 %v2999_v56, %v8107_v12  ;;  %v2586_v14 = vmul.f32 %v6871_v59, %v1988_v43  ;;  %vm8117_vm1 = vmmov %vm8105_vm15 }
 0x3a1   :  { %v2134_v4 = vmul.f32 %v6889_v60, %v2133_v49  ;;  %v1832_v13 = vmul.f32 0.5, %v1831_v57  ;;  %v3411_v28 = vperm.slane %v3067_v54, %v5425_v17  ;;  %v3068_v27 = vmul.f32 %v2940_v61, %v8108_v1  ;;  %v946_v10 = vpop.xlane.xlu2 %945 }
 0x3a2   :  { %v2856_v7 = vsub.f32 1.5, %v2728_v50  ;;  %vm1835_vm5 = vweird.f32 %v6862_v62  ;;  %v3527_v5 = vperm.slane %v3127_v22, %v5291_v21  ;;  %v2714_v47 = vmul.f32 %v2586_v14, %v1988_v43 }
 0x3a3   :  { %v2138_v59 = vsel %vm2137_vm7, %v6889_v60, %v2134_v4  ;;  %v1833_v19 = vsub.f32 1.5, %v1832_v13  ;;  %vm8109_vm12 = vcmask 720512   ;;  %v3413_v26 = vperm.slane %v3068_v27, %v5404_v40  ;;  %v8118_v13 = vld [vmem:[#allocation155_spill] sm:$0xff] }
 0x3a4   :  { %v3412_v29 = vsel %vm8109_vm12, %v3411_v28, %v6793_v0  ;;  %v2984_v52 = vmul.f32 %v2856_v7, %v2128_v53  ;;  %v2601_v55 = vmul.f32 %v6878_v34, %v2138_v59  ;;  %vm8110_vm11 = vcmask 458112   ;;  %vm8119_vm13 = vmmov %vm8109_vm12 }
 0x3a5   :  { %v6954_v20 = vsel %vm8110_vm11, %v3527_v5, %v6822_v46  ;;  %v2842_v45 = vsub.f32 1.5, %v2714_v47  ;;  %v1834_v21 = vmul.f32 %v6904_v63, %v1833_v19  ;;  %vm1836_vm4 = vweird.f32 %v6904_v63 }
 0x3a6   :  { %vm8111_vm8 = vcmask 786112   ;;  %v3112_v39 = vmul.f32 %v2984_v52, %v8112_v51  ;;  %v2729_v0 = vmul.f32 %v2601_v55, %v2138_v59  ;;  %vm1837_vm10 = vmor %vm1835_vm5, %vm1836_vm4  ;;  %v2443_v34 = vmul.f32 0.5, %v6862_v62 }
 0x3a7   :  { %v6959_v60 = vsel %vm8111_vm8, %v3413_v26, %v3412_v29  ;;  %v2970_v48 = vmul.f32 %v2842_v45, %v1988_v43  ;;  %v1838_v46 = vsel %vm1837_vm10, %v6904_v63, %v1834_v21  ;;  %v6967_v25 = vmax.f32 %v6913_v24, 1e-24  ;;  %v886_v24 = vpop.xlane.xlu0 %885  ;;  %v8115_v43 = vld [vmem:[#allocation185_spill] sm:$0xff] }
 0x3a8   :  { %v6969_v53 = vmax.f32 %v856_v42, 1e-24  ;;  %v3498_v36 = vperm.slane %v3112_v39, %v5368_v31  ;;  %v2857_v32 = vsub.f32 1.5, %v2729_v0  ;;  %v2571_v11 = vmul.f32 %v2443_v34, %v1838_v46 }
 0x3a9   :  { %v6972_v41 = vmax.f32 %v944_v35, 1e-24  ;;  %v3098_v58 = vmul.f32 %v2970_v48, %v8113_v3  ;;  %3805 = vrsqrt.f32 %v6967_v25  ;;  %vm8114_vm2 = vcmask 523712   ;;  %v888_v7 = vpop.xlane.xlu2 %887 }
 0x3aa   :  { %v3499_v62 = vsel %vm8114_vm2, %v3498_v36, %v6816_v33  ;;  %v2985_v56 = vmul.f32 %v2857_v32, %v2138_v59  ;;  %v2699_v63 = vmul.f32 %v2571_v11, %v1838_v46  ;;  %3807 = vrsqrt.f32 %v6969_v53  ;;  %v858_v33 = vpop.xlane.xlu1 %857 }
 0x3ab   :  { %v3471_v42 = vperm.slane %v3098_v58, %v5358_v37  ;;  %3809 = vrsqrt.f32 %v6972_v41  ;;  %vm8116_vm9 = vcmask 654912   ;;  %v6985_v54 = vmax.f32 %v916_v2, 1e-24 }
 0x3ac   :  { %v3113_v49 = vmul.f32 %v2985_v56, %v8115_v43  ;;  %v2827_v57 = vsub.f32 1.5, %v2699_v63  ;;  %v6987_v61 = vmax.f32 %v946_v10, 1e-24  ;;  %vm1695_vm0 = vweird.f32 %v6967_v25 }
 0x3ad   :  { %v6983_v16 = vsel %vm8116_vm9, %v3471_v42, %v3470_v44  ;;  %v2429_v22 = vmul.f32 0.5, %v6967_v25  ;;  %3811 = vrsqrt.f32 %v6985_v54  ;;  %v6993_v14 = vmax.f32 %v886_v24, 1e-24 }
 0x3ae   :  { %v3500_v50 = vperm.slane %v3113_v49, %v5351_v23  ;;  %v2955_v35 = vmul.f32 %v2827_v57, %v1838_v46  ;;  %v7000_v27 = vmax.f32 %v858_v33, 1e-24  ;;  %vm1845_vm6 = vweird.f32 %v6969_v53 }
 0x3af   :  { %v3806_v12 = vpop.eup %3805  ;;  %v2444_v59 = vmul.f32 0.5, %v6969_v53  ;;  %3813 = vrsqrt.f32 %v6987_v61  ;;  %vm2285_vm14 = vweird.f32 %v6972_v41  ;;  %v2488_v52 = vmul.f32 0.5, %v6972_v41  ;;  %v828_v39 = vpop.xlane.xlu0 %827 }
 0x3b0   :  { %v3808_v4 = vpop.eup %3807  ;;  %v6996_v44 = vsel %vm8117_vm1, %v3500_v50, %v3499_v62  ;;  %v3083_v28 = vmul.f32 %v2955_v35, %v8118_v13  ;;  %v1690_v1 = vmul.f32 %v3806_v12, %v6967_v25  ;;  %3815 = vrsqrt.f32 %v6993_v14 }
 0x3b1   :  { %v3810_v5 = vpop.eup %3809  ;;  %v1840_v47 = vmul.f32 %v3808_v4, %v6969_v53  ;;  %v7011_v55 = vmax.f32 %v888_v7, 1e-24  ;;  %vm2145_vm3 = vweird.f32 %v6985_v54  ;;  %3817 = vrsqrt.f32 %v7000_v27 }
 0x3b2   :  { %v3442_v19 = vperm.slane %v3083_v28, %v5425_v17  ;;  %v1691_v2 = vmul.f32 %v3806_v12, %v1690_v1  ;;  %v2280_v29 = vmul.f32 %v3810_v5, %v6972_v41  ;;  %vm1696_vm15 = vweird.f32 %v3806_v12 }
 0x3b3   :  { %v1841_v26 = vmul.f32 %v3808_v4, %v1840_v47  ;;  %v3812_v0 = vpop.eup %3811  ;;  %vm1846_vm7 = vweird.f32 %v3808_v4  ;;  %v2474_v10 = vmul.f32 0.5, %v6985_v54  ;;  %vm2295_vm5 = vweird.f32 %v6987_v61  ;;  %vm1697_vm11 = vmor %vm1695_vm0, %vm1696_vm15 }
 0x3b4   :  { %v7015_v45 = vsel %vm8119_vm13, %v3442_v19, %v6893_v30  ;;  %v1692_v21 = vmul.f32 0.5, %v1691_v2  ;;  %v2281_v51 = vmul.f32 %v3810_v5, %v2280_v29  ;;  %v2140_v36 = vmul.f32 %v3812_v0, %v6985_v54  ;;  %vm1847_vm10 = vmor %vm1845_vm6, %vm1846_vm7 }
 0x3b5   :  { %v1842_v34 = vmul.f32 0.5, %v1841_v26  ;;  %v7023_v30 = vmul.f32 0.5, %v6987_v61  ;;  %v3814_v32 = vpop.eup %3813  ;;  %vm2286_vm12 = vweird.f32 %v3810_v5  ;;  %3819 = vrsqrt.f32 %v7011_v55 }
 0x3b6   :  { %v1693_v48 = vsub.f32 1.5, %v1692_v21  ;;  %v2282_v46 = vmul.f32 0.5, %v2281_v51  ;;  %v7026_v3 = vmax.f32 %v828_v39, 1e-24  ;;  %v2141_v56 = vmul.f32 %v3812_v0, %v2140_v36  ;;  %v7029_v24 = vpop.eup %3815  ;;  %vm2287_vm2 = vmor %vm2285_vm14, %vm2286_vm12 }
 0x3b7   :  { %v1843_v11 = vsub.f32 1.5, %v1842_v34  ;;  %v2290_v63 = vmul.f32 %v3814_v32, %v6987_v61  ;;  %vm2146_vm4 = vweird.f32 %v3812_v0  ;;  %vm2296_vm8 = vweird.f32 %v3814_v32  ;;  %v7037_v49 = vpop.eup %3817 }
 0x3b8   :  { %v1694_v58 = vmul.f32 %v3806_v12, %v1693_v48  ;;  %v2283_v62 = vsub.f32 1.5, %v2282_v46  ;;  %v7035_v43 = vmul.f32 0.5, %v6993_v14  ;;  %v2142_v50 = vmul.f32 0.5, %v2141_v56  ;;  %vm2147_vm1 = vmor %vm2145_vm3, %vm2146_vm4 }
 0x3b9   :  { %v1844_v42 = vmul.f32 %v3808_v4, %v1843_v11  ;;  %v2291_v35 = vmul.f32 %v3814_v32, %v2290_v63  ;;  %v1990_v25 = vmul.f32 %v7029_v24, %v6993_v14  ;;  %3821 = vrsqrt.f32 %v7026_v3  ;;  %vm2297_vm6 = vmor %vm2295_vm5, %vm2296_vm8 }
 0x3ba   :  { %v1698_v57 = vsel %vm1697_vm11, %v3806_v12, %v1694_v58  ;;  %v2284_v33 = vmul.f32 %v3810_v5, %v2283_v62  ;;  %v2143_v7 = vsub.f32 1.5, %v2142_v50  ;;  %vm1995_vm9 = vweird.f32 %v6993_v14  ;;  %v948_v62 = vpop.xlane.xlu1 %947 }
 0x3bb   :  { %v2557_v13 = vmul.f32 %v2429_v22, %v1698_v57  ;;  %v1848_v28 = vsel %vm1847_vm10, %v3808_v4, %v1844_v42  ;;  %v2292_v47 = vmul.f32 0.5, %v2291_v35  ;;  %v7049_v53 = vpop.eup %3819  ;;  %v1991_v4 = vmul.f32 %v7029_v24, %v1990_v25 }
 0x3bc   :  { %v2572_v1 = vmul.f32 %v2444_v59, %v1848_v28  ;;  %v2288_v12 = vsel %vm2287_vm2, %v3810_v5, %v2284_v33  ;;  %v1850_v41 = vmul.f32 %v7037_v49, %v7000_v27  ;;  %v2144_v29 = vmul.f32 %v3812_v0, %v2143_v7  ;;  %v8120_v33 = vld [vmem:[#allocation133_spill] sm:$0xff] }
 0x3bd   :  { %v2685_v19 = vmul.f32 %v2557_v13, %v1698_v57  ;;  %v2616_v22 = vmul.f32 %v2488_v52, %v2288_v12  ;;  %v2293_v26 = vsub.f32 1.5, %v2292_v47  ;;  %vm1996_vm0 = vweird.f32 %v7029_v24 }
 0x3be   :  { %v2700_v2 = vmul.f32 %v2572_v1, %v1848_v28  ;;  %v1992_v21 = vmul.f32 0.5, %v1991_v4  ;;  %v1851_v51 = vmul.f32 %v7037_v49, %v1850_v41  ;;  %v2148_v39 = vsel %vm2147_vm1, %v3812_v0, %v2144_v29  ;;  %vm1997_vm3 = vmor %vm1995_vm9, %vm1996_vm0  ;;  %v830_v41 = vpop.xlane.xlu2 %829 }
 0x3bf   :  { %v2813_v59 = vsub.f32 1.5, %v2685_v19  ;;  %v2744_v5 = vmul.f32 %v2616_v22, %v2288_v12  ;;  %v2294_v34 = vmul.f32 %v3814_v32, %v2293_v26  ;;  %v2000_v48 = vmul.f32 %v7049_v53, %v7011_v55  ;;  %v7061_v46 = vpop.eup %3821 }
 0x3c0   :  { %v2828_v52 = vsub.f32 1.5, %v2700_v2  ;;  %v2602_v58 = vmul.f32 %v2474_v10, %v2148_v39  ;;  %v1993_v54 = vsub.f32 1.5, %v1992_v21  ;;  %v1852_v42 = vmul.f32 0.5, %v1851_v51 }
 0x3c1   :  { %v2941_v36 = vmul.f32 %v2813_v59, %v1698_v57  ;;  %v2872_v11 = vsub.f32 1.5, %v2744_v5  ;;  %v2298_v63 = vsel %vm2297_vm6, %v3814_v32, %v2294_v34  ;;  %v2001_v0 = vmul.f32 %v7049_v53, %v2000_v48  ;;  %v8121_v57 = vld [vmem:[#allocation160_spill] sm:$0xff] }
 0x3c2   :  { %v2956_v56 = vmul.f32 %v2828_v52, %v1848_v28  ;;  %vm1855_vm14 = vweird.f32 %v7000_v27  ;;  %vm1856_vm13 = vweird.f32 %v7037_v49  ;;  %v1994_v13 = vmul.f32 %v7029_v24, %v1993_v54  ;;  %v8122_v28 = vld [vmem:[#allocation200_spill] sm:$0xff]  ;;  %v890_v52 = vpop.xlane.xlu1 %889 }
 0x3c3   :  { %v3069_v50 = vmul.f32 %v2941_v36, %v8120_v33  ;;  %v3000_v35 = vmul.f32 %v2872_v11, %v2288_v12  ;;  %v1853_v61 = vsub.f32 1.5, %v1852_v42  ;;  %v2002_v25 = vmul.f32 0.5, %v2001_v0  ;;  %vm1857_vm7 = vmor %vm1855_vm14, %vm1856_vm13 }
 0x3c4   :  { %v3084_v10 = vmul.f32 %v2956_v56, %v8121_v57  ;;  %v2730_v7 = vmul.f32 %v2602_v58, %v2148_v39  ;;  %v2617_v47 = vmul.f32 %v7023_v30, %v2298_v63  ;;  %v1998_v19 = vsel %vm1997_vm3, %v7029_v24, %v1994_v13 }
 0x3c5   :  { %v3415_v1 = vperm.slane %v3069_v50, %v5422_v9  ;;  %v3128_v32 = vmul.f32 %v3000_v35, %v8122_v28  ;;  %v1854_v22 = vmul.f32 %v7037_v49, %v1853_v61  ;;  %v2003_v4 = vsub.f32 1.5, %v2002_v25 }
 0x3c6   :  { %v3444_v12 = vperm.slane %v3084_v10, %v5404_v40  ;;  %vm8123_vm15 = vcmask 851712   ;;  %v2445_v14 = vmul.f32 0.5, %v7000_v27  ;;  %vm2005_vm5 = vweird.f32 %v7011_v55  ;;  %v8127_v10 = vld [vmem:[#allocation190_spill] sm:$0xff] }
 0x3c7   :  { %v7084_v2 = vsel %vm8123_vm15, %v3415_v1, %v6959_v60  ;;  %v3529_v29 = vperm.slane %v3128_v32, %v5368_v31  ;;  %vm8124_vm12 = vcmask 786112   ;;  %v2587_v24 = vmul.f32 %v7035_v43, %v1998_v19 }
 0x3c8   :  { %v7095_v30 = vsel %vm8124_vm12, %v3444_v12, %v7015_v45  ;;  %v1858_v60 = vsel %vm1857_vm7, %v7037_v49, %v1854_v22  ;;  %v2004_v26 = vmul.f32 %v7049_v53, %v2003_v4  ;;  %vm8125_vm11 = vcmask 523712   ;;  %v918_v49 = vpop.xlane.xlu0 %917 }
 0x3c9   :  { %v7102_v31 = vsel %vm8125_vm11, %v3529_v29, %v6954_v20  ;;  %v2858_v59 = vsub.f32 1.5, %v2730_v7  ;;  %v2745_v5 = vmul.f32 %v2617_v47, %v2298_v63  ;;  %v2573_v21 = vmul.f32 %v2445_v14, %v1858_v60  ;;  %v8129_v14 = vld [vmem:[#allocation205_spill] sm:$0xff] }
 0x3ca   :  { %v2715_v27 = vmul.f32 %v2587_v24, %v1998_v19  ;;  %vm2006_vm4 = vweird.f32 %v7049_v53  ;;  %v1700_v45 = vmul.f32 %v7061_v46, %v7026_v3  ;;  %v2460_v43 = vmul.f32 0.5, %v7011_v55  ;;  %v8126_v55 = vld [vmem:[#allocation175_spill] sm:$0xff]  ;;  %v832_v29 = vpop.xlane.xlu1 %831 }
 0x3cb   :  { %v2701_v51 = vmul.f32 %v2573_v21, %v1858_v60  ;;  %vm2007_vm8 = vmor %vm2005_vm5, %vm2006_vm4  ;;  %v7110_v36 = vmax.f32 %v948_v62, 1e-24  ;;  %v2986_v11 = vmul.f32 %v2858_v59, %v2148_v39  ;;  %v2873_v58 = vsub.f32 1.5, %v2745_v5  ;;  %v920_v62 = vpop.xlane.xlu2 %919 }
 0x3cc   :  { %v2843_v34 = vsub.f32 1.5, %v2715_v27  ;;  %v2008_v48 = vsel %vm2007_vm8, %v7049_v53, %v2004_v26  ;;  %v1701_v20 = vmul.f32 %v7061_v46, %v1700_v45  ;;  %vm1706_vm10 = vweird.f32 %v7061_v46 }
 0x3cd   :  { %v2588_v54 = vmul.f32 %v2460_v43, %v2008_v48  ;;  %3823 = vrsqrt.f32 %v7110_v36  ;;  %v2829_v0 = vsub.f32 1.5, %v2701_v51  ;;  %v7115_v57 = vmax.f32 %v830_v41, 1e-24 }
 0x3ce   :  { %v2971_v56 = vmul.f32 %v2843_v34, %v1998_v19  ;;  %v1702_v42 = vmul.f32 0.5, %v1701_v20  ;;  %v7117_v53 = vmax.f32 %v918_v49, 1e-24  ;;  %v7120_v39 = vmul.f32 %v2986_v11, %v8127_v10  ;;  %v8131_v34 = vld [vmem:[#allocation174_spill] sm:$0xff] }
 0x3cf   :  { %v2716_v33 = vmul.f32 %v2588_v54, %v2008_v48  ;;  %v3001_v13 = vmul.f32 %v2873_v58, %v2298_v63  ;;  %vm1705_vm2 = vweird.f32 %v7026_v3  ;;  %3825 = vrsqrt.f32 %v7115_v57 }
 0x3d0   :  { %v3099_v50 = vmul.f32 %v2971_v56, %v8126_v55  ;;  %v1703_v35 = vsub.f32 1.5, %v1702_v42  ;;  %v7126_v28 = vmax.f32 %v890_v52, 1e-24  ;;  %vm1707_vm9 = vmor %vm1705_vm2, %vm1706_vm10  ;;  %v2430_v32 = vmul.f32 0.5, %v7026_v3  ;;  %v860_v41 = vpop.xlane.xlu0 %859 }
 0x3d1   :  { %v2844_v61 = vsub.f32 1.5, %v2716_v33  ;;  %3827 = vrsqrt.f32 %v7117_v53  ;;  %v7130_v7 = vmax.f32 %v920_v62, 1e-24  ;;  %vm8128_vm0 = vcmask 720512  }
 0x3d2   :  { %v3473_v25 = vperm.slane %v3099_v50, %v5425_v17  ;;  %v1704_v1 = vmul.f32 %v7061_v46, %v1703_v35  ;;  %v2957_v12 = vmul.f32 %v2829_v0, %v1858_v60  ;;  %v3502_v3 = vperm.slane %v7120_v39, %v5358_v37  ;;  %v8130_v60 = vld [vmem:[#allocation159_spill] sm:$0xff] }
 0x3d3   :  { %v3824_v47 = vpop.eup %3823  ;;  %v7141_v24 = vmul.f32 %v3001_v13, %v8129_v14  ;;  %v2972_v26 = vmul.f32 %v2844_v61, %v2008_v48  ;;  %3829 = vrsqrt.f32 %v7126_v28  ;;  %vm2305_vm1 = vweird.f32 %v7110_v36 }
 0x3d4   :  { %v7134_v63 = vsel %vm8128_vm0, %v3473_v25, %v6983_v16  ;;  %v1708_v19 = vsel %vm1707_vm9, %v7061_v46, %v1704_v1  ;;  %v2300_v4 = vmul.f32 %v3824_v47, %v7110_v36  ;;  %v2490_v16 = vmul.f32 0.5, %v7110_v36 }
 0x3d5   :  { %v2558_v22 = vmul.f32 %v2430_v32, %v1708_v19  ;;  %3831 = vrsqrt.f32 %v7130_v7  ;;  %v3826_v46 = vpop.eup %3825  ;;  %v7148_v5 = vmul.f32 %v2957_v12, %v8130_v60  ;;  %v7150_v27 = vmax.f32 %v860_v41, 1e-24 }
 0x3d6   :  { %v2301_v59 = vmul.f32 %v3824_v47, %v2300_v4  ;;  %v7152_v45 = vmax.f32 %v832_v29, 1e-24  ;;  %v1710_v49 = vmul.f32 %v3826_v46, %v7115_v57  ;;  %vm1715_vm6 = vweird.f32 %v7115_v57 }
 0x3d7   :  { %v2686_v21 = vmul.f32 %v2558_v22, %v1708_v19  ;;  %v3828_v51 = vpop.eup %3827  ;;  %v2431_v52 = vmul.f32 0.5, %v7115_v57  ;;  %v7158_v48 = vmul.f32 %v2972_v26, %v8131_v34  ;;  %vm2155_vm14 = vweird.f32 %v7117_v53 }
 0x3d8   :  { %v2302_v43 = vmul.f32 0.5, %v2301_v59  ;;  %v2150_v20 = vmul.f32 %v3828_v51, %v7117_v53  ;;  %v2475_v11 = vmul.f32 0.5, %v7117_v53  ;;  %3833 = vrsqrt.f32 %v7150_v27 }
 0x3d9   :  { %vm2306_vm13 = vweird.f32 %v3824_v47  ;;  %v1711_v54 = vmul.f32 %v3826_v46, %v1710_v49  ;;  %vm2015_vm3 = vweird.f32 %v7126_v28  ;;  %v3830_v56 = vpop.eup %3829  ;;  %v2814_v42 = vsub.f32 1.5, %v2686_v21 }
 0x3da   :  { %v2303_v58 = vsub.f32 1.5, %v2302_v43  ;;  %v2151_v0 = vmul.f32 %v3828_v51, %v2150_v20  ;;  %v2461_v33 = vmul.f32 0.5, %v7126_v28  ;;  %3835 = vrsqrt.f32 %v7152_v45  ;;  %vm2307_vm7 = vmor %vm2305_vm1, %vm2306_vm13 }
 0x3db   :  { %v3832_v55 = vpop.eup %3831  ;;  %v1712_v35 = vmul.f32 0.5, %v1711_v54  ;;  %v2010_v62 = vmul.f32 %v3830_v56, %v7126_v28  ;;  %vm2165_vm15 = vweird.f32 %v7130_v7  ;;  %vm1716_vm5 = vweird.f32 %v3826_v46 }
 0x3dc   :  { %v2304_v50 = vmul.f32 %v3824_v47, %v2303_v58  ;;  %v2152_v10 = vmul.f32 0.5, %v2151_v0  ;;  %v2160_v13 = vmul.f32 %v3832_v55, %v7130_v7  ;;  %v2476_v61 = vmul.f32 0.5, %v7130_v7  ;;  %vm1717_vm10 = vmor %vm1715_vm6, %vm1716_vm5 }
 0x3dd   :  { %v1713_v1 = vsub.f32 1.5, %v1712_v35  ;;  %vm2156_vm12 = vweird.f32 %v3828_v51  ;;  %v2011_v32 = vmul.f32 %v3830_v56, %v2010_v62  ;;  %v2942_v22 = vmul.f32 %v2814_v42, %v1708_v19  ;;  %v950_v62 = vpop.xlane.xlu0 %949 }
 0x3de   :  { %v2308_v25 = vsel %vm2307_vm7, %v3824_v47, %v2304_v50  ;;  %v3834_v12 = vpop.eup %3833  ;;  %v2153_v41 = vsub.f32 1.5, %v2152_v10  ;;  %v2161_v29 = vmul.f32 %v3832_v55, %v2160_v13  ;;  %vm2016_vm11 = vweird.f32 %v3830_v56  ;;  %vm2157_vm9 = vmor %vm2155_vm14, %vm2156_vm12 }
 0x3df   :  { %v2618_v4 = vmul.f32 %v2490_v16, %v2308_v25  ;;  %v1714_v14 = vmul.f32 %v3826_v46, %v1713_v1  ;;  %v2012_v26 = vmul.f32 0.5, %v2011_v32  ;;  %v1860_v36 = vmul.f32 %v3834_v12, %v7150_v27  ;;  %v862_v16 = vpop.xlane.xlu2 %861  ;;  %vm2017_vm0 = vmor %vm2015_vm3, %vm2016_vm11 }
 0x3e0   :  { %vm1865_vm4 = vweird.f32 %v7150_v27  ;;  %vm1725_vm8 = vweird.f32 %v7152_v45  ;;  %v3836_v59 = vpop.eup %3835  ;;  %v2154_v47 = vmul.f32 %v3828_v51, %v2153_v41  ;;  %v2162_v19 = vmul.f32 0.5, %v2161_v29 }
 0x3e1   :  { %v2746_v60 = vmul.f32 %v2618_v4, %v2308_v25  ;;  %vm2166_vm2 = vweird.f32 %v3832_v55  ;;  %v1718_v21 = vsel %vm1717_vm10, %v3826_v46, %v1714_v14  ;;  %v2013_v43 = vsub.f32 1.5, %v2012_v26 }
 0x3e2   :  { %v1861_v49 = vmul.f32 %v3834_v12, %v1860_v36  ;;  %v1720_v34 = vmul.f32 %v3836_v59, %v7152_v45  ;;  %v2559_v58 = vmul.f32 %v2431_v52, %v1718_v21  ;;  %v2158_v54 = vsel %vm2157_vm9, %v3828_v51, %v2154_v47  ;;  %vm2167_vm6 = vmor %vm2165_vm15, %vm2166_vm2  ;;  %v8132_v36 = vld [vmem:[#allocation132_spill] sm:$0xff] }
 0x3e3   :  { %v2874_v20 = vsub.f32 1.5, %v2746_v60  ;;  %v2163_v42 = vsub.f32 1.5, %v2162_v19  ;;  %v2603_v0 = vmul.f32 %v2475_v11, %v2158_v54  ;;  %v2014_v57 = vmul.f32 %v3830_v56, %v2013_v43  ;;  %v922_v19 = vpop.xlane.xlu1 %921 }
 0x3e4   :  { %v1862_v50 = vmul.f32 0.5, %v1861_v49  ;;  %v1721_v35 = vmul.f32 %v3836_v59, %v1720_v34  ;;  %v2687_v13 = vmul.f32 %v2559_v58, %v1718_v21  ;;  %vm1866_vm1 = vweird.f32 %v3834_v12 }
 0x3e5   :  { %v3002_v10 = vmul.f32 %v2874_v20, %v2308_v25  ;;  %v2164_v53 = vmul.f32 %v3832_v55, %v2163_v42  ;;  %v2731_v46 = vmul.f32 %v2603_v0, %v2158_v54  ;;  %v2018_v1 = vsel %vm2017_vm0, %v3830_v56, %v2014_v57  ;;  %vm1867_vm13 = vmor %vm1865_vm4, %vm1866_vm1  ;;  %v8133_v20 = vld [vmem:[#allocation204_spill] sm:$0xff] }
 0x3e6   :  { %v1863_v51 = vsub.f32 1.5, %v1862_v50  ;;  %v1722_v52 = vmul.f32 0.5, %v1721_v35  ;;  %v2815_v11 = vsub.f32 1.5, %v2687_v13  ;;  %v2589_v32 = vmul.f32 %v2461_v33, %v2018_v1  ;;  %v892_v50 = vpop.xlane.xlu0 %891 }
 0x3e7   :  { %v2168_v4 = vsel %vm2167_vm6, %v3832_v55, %v2164_v53  ;;  %vm1726_vm14 = vweird.f32 %v3836_v59  ;;  %v2859_v25 = vsub.f32 1.5, %v2731_v46  ;;  %v2446_v56 = vmul.f32 0.5, %v7150_v27  ;;  %v952_v34 = vpop.xlane.xlu2 %951 }
 0x3e8   :  { %v2604_v41 = vmul.f32 %v2476_v61, %v2168_v4  ;;  %v1864_v29 = vmul.f32 %v3834_v12, %v1863_v51  ;;  %v1723_v14 = vsub.f32 1.5, %v1722_v52  ;;  %v2943_v28 = vmul.f32 %v2815_v11, %v1718_v21  ;;  %vm1727_vm3 = vmor %vm1725_vm8, %vm1726_vm14 }
 0x3e9   :  { %v2717_v26 = vmul.f32 %v2589_v32, %v2018_v1  ;;  %v7193_v7 = vmax.f32 %v862_v16, 1e-24  ;;  %v3070_v60 = vmul.f32 %v2942_v22, %v8132_v36  ;;  %v2987_v43 = vmul.f32 %v2859_v25, %v2158_v54  ;;  %v8134_v54 = vld [vmem:[#allocation131_spill] sm:$0xff]  ;;  %v8145_v36 = vld [vmem:[#allocation158_spill] sm:$0xff] }
 0x3ea   :  { %v2732_v47 = vmul.f32 %v2604_v41, %v2168_v4  ;;  %v1868_v33 = vsel %vm1867_vm13, %v3834_v12, %v1864_v29  ;;  %v1724_v55 = vmul.f32 %v3836_v59, %v1723_v14  ;;  %v2432_v21 = vmul.f32 0.5, %v7152_v45  ;;  %v8143_v41 = vld [vmem:[#allocation188_spill] sm:$0xff] }
 0x3eb   :  { %v2845_v61 = vsub.f32 1.5, %v2717_v26  ;;  %v2574_v49 = vmul.f32 %v2446_v56, %v1868_v33  ;;  %v3130_v27 = vmul.f32 %v3002_v10, %v8133_v20  ;;  %3837 = vrsqrt.f32 %v7193_v7  ;;  %v8135_v10 = vld [vmem:[#allocation189_spill] sm:$0xff] }
 0x3ec   :  { %v2860_v16 = vsub.f32 1.5, %v2732_v47  ;;  %v1728_v58 = vsel %vm1727_vm3, %v3836_v59, %v1724_v55  ;;  %v3531_v12 = vperm.slane %v7141_v24, %v5351_v23  ;;  %v3446_v22 = vperm.slane %v7148_v5, %v5422_v9 }
 0x3ed   :  { %v3071_v42 = vmul.f32 %v2943_v28, %v8134_v54  ;;  %v2702_v0 = vmul.f32 %v2574_v49, %v1868_v33  ;;  %v3475_v57 = vperm.slane %v7158_v48, %v5404_v40  ;;  %v2560_v45 = vmul.f32 %v2432_v21, %v1728_v58 }
 0x3ee   :  { %v3417_v35 = vperm.slane %v3070_v60, %v5450_v38  ;;  %v3115_v59 = vmul.f32 %v2987_v43, %v8135_v10  ;;  %v2973_v13 = vmul.f32 %v2845_v61, %v2018_v1  ;;  %v3533_v46 = vperm.slane %v3130_v27, %v5358_v37  ;;  %v864_v20 = vpop.xlane.xlu0 %863 }
 0x3ef   :  { %v2830_v53 = vsub.f32 1.5, %v2702_v0  ;;  %v2988_v23 = vmul.f32 %v2860_v16, %v2168_v4  ;;  %v7212_v24 = vmax.f32 %v950_v62, 1e-24  ;;  %v7214_v5 = vmax.f32 %v922_v19, 1e-24  ;;  %v924_v56 = vpop.xlane.xlu2 %923 }
 0x3f0   :  { %vm8136_vm15 = vcmask 654912   ;;  %vm8137_vm7 = vcmask 589312   ;;  %vm8138_vm5 = vcmask 851712   ;;  %v3419_v52 = vperm.slane %v3071_v42, %v5435_v15 }
 0x3f1   :  { %v3503_v48 = vsel %vm8136_vm15, %v3502_v3, %v6996_v44  ;;  %v3532_v51 = vsel %vm8137_vm7, %v3531_v12, %v7102_v31  ;;  %v7225_v1 = vsel %vm8138_vm5, %v3446_v22, %v7095_v30  ;;  %v3838_v11 = vpop.eup %3837  ;;  %v2958_v62 = vmul.f32 %v2830_v53, %v1868_v33  ;;  %v8140_v31 = vld [vmem:[#allocation173_spill] sm:$0xff]  ;;  %vm8142_vm4 = vmmov %vm8136_vm15 }
 0x3f2   :  { %v2688_v32 = vmul.f32 %v2560_v45, %v1728_v58  ;;  %3839 = vrsqrt.f32 %v7212_v24  ;;  %v7229_v4 = vmax.f32 %v952_v34, 1e-24  ;;  %vm8139_vm12 = vcmask 786112  }
 0x3f3   :  { %v7233_v37 = vsel %vm8139_vm12, %v3475_v57, %v7134_v63  ;;  %v3504_v44 = vperm.slane %v3115_v59, %v5425_v17  ;;  %v7237_v39 = vmul.f32 %v2973_v13, %v8140_v31  ;;  %v1870_v30 = vmul.f32 %v3838_v11, %v7193_v7  ;;  %v894_v63 = vpop.xlane.xlu1 %893 }
 0x3f4   :  { %vm8141_vm11 = vcmask 917312   ;;  %v7243_v25 = vsel %vm8142_vm4, %v3533_v46, %v3532_v51  ;;  %v7246_v29 = vmul.f32 %v2988_v23, %v8143_v41  ;;  %3841 = vrsqrt.f32 %v7214_v5 }
 0x3f5   :  { %v3418_v3 = vsel %vm8141_vm11, %v3417_v35, %v7084_v2  ;;  %vm8144_vm8 = vcmask 982912   ;;  %v1871_v28 = vmul.f32 %v3838_v11, %v1870_v30  ;;  %vm1875_vm10 = vweird.f32 %v7193_v7 }
 0x3f6   :  { %v7250_v14 = vsel %vm8144_vm8, %v3419_v52, %v3418_v3  ;;  %v2447_v26 = vmul.f32 0.5, %v7193_v7  ;;  %v7255_v2 = vmul.f32 %v2958_v62, %v8145_v36  ;;  %v2816_v60 = vsub.f32 1.5, %v2688_v32 }
 0x3f7   :  { %3843 = vrsqrt.f32 %v7229_v4  ;;  %v7258_v47 = vmax.f32 %v892_v50, 1e-24  ;;  %vm8146_vm2 = vcmask 720512   ;;  %v3477_v55 = vperm.slane %v7237_v39, %v5422_v9 }
 0x3f8   :  { %v7261_v33 = vsel %vm8146_vm2, %v3504_v44, %v3503_v48  ;;  %v1872_v19 = vmul.f32 0.5, %v1871_v28  ;;  %v7265_v43 = vmax.f32 %v894_v63, 1e-24  ;;  %v3840_v61 = vpop.eup %3839  ;;  %v3506_v49 = vperm.slane %v7246_v29, %v5404_v40  ;;  %v8152_v29 = vld [vmem:[#allocation203_spill] sm:$0xff] }
 0x3f9   :  { %v2491_v21 = vmul.f32 0.5, %v7212_v24  ;;  %3845 = vrsqrt.f32 %v7258_v47  ;;  %v7271_v34 = vmax.f32 %v924_v56, 1e-24  ;;  %vm1876_vm9 = vweird.f32 %v3838_v11 }
 0x3fa   :  { %v1873_v27 = vsub.f32 1.5, %v1872_v19  ;;  %v2310_v16 = vmul.f32 %v3840_v61, %v7212_v24  ;;  %vm2315_vm0 = vweird.f32 %v7212_v24  ;;  %3847 = vrsqrt.f32 %v7265_v43  ;;  %v3842_v12 = vpop.eup %3841  ;;  %vm1877_vm6 = vmor %vm1875_vm10, %vm1876_vm9 }
 0x3fb   :  { %v3448_v22 = vperm.slane %v7255_v2, %v5450_v38  ;;  %v7278_v54 = vmul.f32 %v2816_v60, %v1728_v58  ;;  %vm2175_vm1 = vweird.f32 %v7214_v5  ;;  %3849 = vrsqrt.f32 %v7271_v34  ;;  %v7317_v60 = vpop.xlane.xlu0 %953 }
 0x3fc   :  { %v1874_v42 = vmul.f32 %v3838_v11, %v1873_v27  ;;  %v2311_v0 = vmul.f32 %v3840_v61, %v2310_v16  ;;  %v2170_v57 = vmul.f32 %v3842_v12, %v7214_v5  ;;  %v2477_v45 = vmul.f32 0.5, %v7214_v5 }
 0x3fd   :  { %v3844_v50 = vpop.eup %3843  ;;  %vm2325_vm14 = vweird.f32 %v7229_v4  ;;  %v2492_v35 = vmul.f32 0.5, %v7229_v4  ;;  %v7289_v58 = vmul.f32 0.5, %v7258_v47  ;;  %v7291_v10 = vmax.f32 %v864_v20, 1e-24 }
 0x3fe   :  { %v7293_v59 = vsel %vm1877_vm6, %v3838_v11, %v1874_v42  ;;  %v2312_v13 = vmul.f32 0.5, %v2311_v0  ;;  %v2171_v53 = vmul.f32 %v3842_v12, %v2170_v57  ;;  %v2320_v46 = vmul.f32 %v3844_v50, %v7229_v4 }
 0x3ff   :  { %v3846_v23 = vpop.eup %3845  ;;  %v2575_v48 = vmul.f32 %v2447_v26, %v7293_v59  ;;  %vm2316_vm13 = vweird.f32 %v3840_v61  ;;  %v7298_v7 = vmul.f32 0.5, %v7265_v43  ;;  %3851 = vrsqrt.f32 %v7291_v10 }
 0x400   :  { %v3848_v51 = vpop.eup %3847  ;;  %v2313_v52 = vsub.f32 1.5, %v2312_v13  ;;  %v2172_v62 = vmul.f32 0.5, %v2171_v53  ;;  %v2321_v32 = vmul.f32 %v3844_v50, %v2320_v46  ;;  %v2020_v11 = vmul.f32 %v3846_v23, %v7258_v47  ;;  %vm2317_vm11 = vmor %vm2315_vm0, %vm2316_vm13 }
 0x401   :  { %vm2025_vm3 = vweird.f32 %v7258_v47  ;;  %vm2035_vm15 = vweird.f32 %v7265_v43  ;;  %v7304_v44 = vpop.eup %3849  ;;  %vm2176_vm7 = vweird.f32 %v3842_v12  ;;  %vm2326_vm5 = vweird.f32 %v3844_v50 }
 0x402   :  { %v2030_v31 = vmul.f32 %v3848_v51, %v7265_v43  ;;  %v7308_v30 = vmul.f32 0.5, %v7271_v34  ;;  %v2314_v3 = vmul.f32 %v3840_v61, %v2313_v52  ;;  %v2173_v41 = vsub.f32 1.5, %v2172_v62  ;;  %vm2177_vm8 = vmor %vm2175_vm1, %vm2176_vm7 }
 0x403   :  { %v2322_v63 = vmul.f32 0.5, %v2321_v32  ;;  %v2021_v28 = vmul.f32 %v3846_v23, %v2020_v11  ;;  %vm2185_vm12 = vweird.f32 %v7271_v34  ;;  %v2703_v26 = vmul.f32 %v2575_v48, %v7293_v59  ;;  %vm2327_vm2 = vmor %vm2325_vm14, %vm2326_vm5  ;;  %v956_v43 = vpop.xlane.xlu0 %955 }
 0x404   :  { %vm2026_vm4 = vweird.f32 %v3846_v23  ;;  %v2031_v56 = vmul.f32 %v3848_v51, %v2030_v31  ;;  %v2180_v36 = vmul.f32 %v7304_v44, %v7271_v34  ;;  %v2318_v19 = vsel %vm2317_vm11, %v3840_v61, %v2314_v3  ;;  %v896_v3 = vpop.xlane.xlu1 %895 }
 0x405   :  { %v2174_v20 = vmul.f32 %v3842_v12, %v2173_v41  ;;  %v2323_v27 = vsub.f32 1.5, %v2322_v63  ;;  %v2022_v16 = vmul.f32 0.5, %v2021_v28  ;;  %v3852_v42 = vpop.eup %3851  ;;  %v2619_v0 = vmul.f32 %v2491_v21, %v2318_v19  ;;  %vm2027_vm9 = vmor %vm2025_vm3, %vm2026_vm4 }
 0x406   :  { %v2032_v57 = vmul.f32 0.5, %v2031_v56  ;;  %vm2036_vm10 = vweird.f32 %v3848_v51  ;;  %v2181_v24 = vmul.f32 %v7304_v44, %v2180_v36  ;;  %v1880_v48 = vmul.f32 %v3852_v42, %v7291_v10 }
 0x407   :  { %v2178_v13 = vsel %vm2177_vm8, %v3842_v12, %v2174_v20  ;;  %v2324_v53 = vmul.f32 %v3844_v50, %v2323_v27  ;;  %v2023_v46 = vsub.f32 1.5, %v2022_v16  ;;  %v2831_v52 = vsub.f32 1.5, %v2703_v26  ;;  %vm2037_vm1 = vmor %vm2035_vm15, %vm2036_vm10  ;;  %v926_v16 = vpop.xlane.xlu2 %925 }
 0x408   :  { %v2747_v61 = vmul.f32 %v2619_v0, %v2318_v19  ;;  %v2605_v62 = vmul.f32 %v2477_v45, %v2178_v13  ;;  %v2033_v21 = vsub.f32 1.5, %v2032_v57  ;;  %v2182_v11 = vmul.f32 0.5, %v2181_v24 }
 0x409   :  { %v2328_v32 = vsel %vm2327_vm2, %v3844_v50, %v2324_v53  ;;  %v2024_v5 = vmul.f32 %v3846_v23, %v2023_v46  ;;  %v1881_v31 = vmul.f32 %v3852_v42, %v1880_v48  ;;  %vm2186_vm0 = vweird.f32 %v7304_v44 }
 0x40a   :  { %v2875_v41 = vsub.f32 1.5, %v2747_v61  ;;  %v2733_v63 = vmul.f32 %v2605_v62, %v2178_v13  ;;  %v2620_v12 = vmul.f32 %v2492_v35, %v2328_v32  ;;  %v2034_v28 = vmul.f32 %v3848_v51, %v2033_v21  ;;  %vm2187_vm14 = vmor %vm2185_vm12, %vm2186_vm0 }
 0x40b   :  { %v2028_v45 = vsel %vm2027_vm9, %v3846_v23, %v2024_v5  ;;  %v2183_v26 = vsub.f32 1.5, %v2182_v11  ;;  %v1882_v4 = vmul.f32 0.5, %v1881_v31  ;;  %v7335_v20 = vmax.f32 %v896_v3, 1e-24  ;;  %v8154_v5 = vld [vmem:[#allocation208_spill] sm:$0xff] }
 0x40c   :  { %v2861_v56 = vsub.f32 1.5, %v2733_v63  ;;  %v2748_v36 = vmul.f32 %v2620_v12, %v2328_v32  ;;  %v2590_v50 = vmul.f32 %v7289_v58, %v2028_v45  ;;  %v2038_v35 = vsel %vm2037_vm1, %v3848_v51, %v2034_v28  ;;  %v928_v63 = vpop.xlane.xlu1 %927 }
 0x40d   :  { %v2184_v47 = vmul.f32 %v7304_v44, %v2183_v26  ;;  %v1883_v27 = vsub.f32 1.5, %v1882_v4  ;;  %vm1886_vm6 = vweird.f32 %v3852_v42  ;;  %v2959_v23 = vmul.f32 %v2831_v52, %v7293_v59 }
 0x40e   :  { %v2876_v0 = vsub.f32 1.5, %v2748_v36  ;;  %v2718_v57 = vmul.f32 %v2590_v50, %v2028_v45  ;;  %vm1885_vm13 = vweird.f32 %v7291_v10  ;;  %v3003_v58 = vmul.f32 %v2875_v41, %v2318_v19  ;;  %v8150_v19 = vld [vmem:[#allocation163_spill] sm:$0xff] }
 0x40f   :  { %v2591_v51 = vmul.f32 %v7298_v7, %v2038_v35  ;;  %v2188_v24 = vsel %vm2187_vm14, %v7304_v44, %v2184_v47  ;;  %v1884_v53 = vmul.f32 %v3852_v42, %v1883_v27  ;;  %v2989_v46 = vmul.f32 %v2861_v56, %v2178_v13  ;;  %vm1887_vm3 = vmor %vm1885_vm13, %vm1886_vm6 }
 0x410   :  { %v3004_v48 = vmul.f32 %v2876_v0, %v2328_v32  ;;  %v2846_v61 = vsub.f32 1.5, %v2718_v57  ;;  %v2448_v59 = vmul.f32 0.5, %v7291_v10  ;;  %v2606_v34 = vmul.f32 %v7308_v30, %v2188_v24  ;;  %v8149_v10 = vld [vmem:[#allocation139_spill] sm:$0xff]  ;;  %v8156_v0 = vld [vmem:[#allocation177_spill] sm:$0xff] }
 0x411   :  { %v2719_v52 = vmul.f32 %v2591_v51, %v2038_v35  ;;  %v1888_v62 = vsel %vm1887_vm3, %v3852_v42, %v1884_v53  ;;  %3853 = vrsqrt.f32 %v7335_v20  ;;  %vm8147_vm15 = vcmask 851712  }
 0x412   :  { %v7355_v7 = vsel %vm8147_vm15, %v3477_v55, %v7233_v37  ;;  %vm8148_vm7 = vcmask 786112   ;;  %v7366_v30 = vmul.f32 %v7278_v54, %v8149_v10  ;;  %v7369_v42 = vmul.f32 %v2959_v23, %v8150_v19  ;;  %v8153_v55 = vld [vmem:[#allocation193_spill] sm:$0xff] }
 0x413   :  { %v7362_v44 = vsel %vm8148_vm7, %v3506_v49, %v7261_v33  ;;  %v2974_v13 = vmul.f32 %v2846_v61, %v2028_v45  ;;  %v2847_v21 = vsub.f32 1.5, %v2719_v52  ;;  %v2734_v39 = vmul.f32 %v2606_v34, %v2188_v24  ;;  %v8155_v45 = vld [vmem:[#allocation178_spill] sm:$0xff] }
 0x414   :  { %v2576_v32 = vmul.f32 %v2448_v59, %v1888_v62  ;;  %vm8151_vm5 = vcmask 917312   ;;  %v7379_v33 = vmul.f32 %v3003_v58, %v8152_v29  ;;  %v7382_v49 = vmul.f32 %v2989_v46, %v8153_v55  ;;  %v8157_v46 = vld [vmem:[#allocation192_spill] sm:$0xff]  ;;  %v8158_v52 = vld [vmem:[#allocation162_spill] sm:$0xff] }
 0x415   :  { %v7376_v37 = vsel %vm8151_vm5, %v3448_v22, %v7225_v1  ;;  %v7384_v54 = vmax.f32 %v926_v16, 1e-24  ;;  %v7387_v11 = vmul.f32 %v3004_v48, %v8154_v5  ;;  %v2862_v31 = vsub.f32 1.5, %v2734_v39 }
 0x416   :  { %v2704_v3 = vmul.f32 %v2576_v32, %v1888_v62  ;;  %v7390_v41 = vmax.f32 %v7317_v60, 1e-24  ;;  %v3421_v1 = vperm.slane %v7366_v30, %v5789_v6  ;;  %v3450_v2 = vperm.slane %v7369_v42, %v5435_v15  ;;  %v958_v60 = vpop.xlane.xlu2 %957 }
 0x417   :  { %v2975_v22 = vmul.f32 %v2847_v21, %v2038_v35  ;;  %3855 = vrsqrt.f32 %v7384_v54  ;;  %v3854_v12 = vpop.eup %3853  ;;  %v7398_v28 = vmul.f32 %v2974_v13, %v8155_v45  ;;  %v2990_v26 = vmul.f32 %v2862_v31, %v2188_v24  ;;  %v960_v35 = vpop.xlane.xlu0 %959 }
 0x418   :  { %v2832_v4 = vsub.f32 1.5, %v2704_v3  ;;  %3857 = vrsqrt.f32 %v7390_v41  ;;  %v3508_v36 = vperm.slane %v7382_v49, %v5422_v9  ;;  %v2040_v50 = vmul.f32 %v3854_v12, %v7335_v20 }
 0x419   :  { %vm2045_vm12 = vweird.f32 %v7335_v20  ;;  %v2464_v16 = vmul.f32 0.5, %v7335_v20  ;;  %v7410_v23 = vmax.f32 %v928_v63, 1e-24  ;;  %v7413_v57 = vmul.f32 %v2975_v22, %v8156_v0 }
 0x41a   :  { %v2960_v27 = vmul.f32 %v2832_v4, %v1888_v62  ;;  %v2041_v58 = vmul.f32 %v3854_v12, %v2040_v50  ;;  %v7415_v51 = vmax.f32 %v958_v60, 1e-24  ;;  %v7417_v24 = vmax.f32 %v956_v43, 1e-24 }
 0x41b   :  { %v3479_v53 = vperm.slane %v7398_v28, %v5450_v38  ;;  %v7422_v48 = vmul.f32 %v2990_v26, %v8157_v46  ;;  %3859 = vrsqrt.f32 %v7410_v23  ;;  %v7425_v61 = vmax.f32 %v960_v35, 1e-24 }
 0x41c   :  { %v7428_v34 = vmul.f32 %v2960_v27, %v8158_v52  ;;  %v2042_v62 = vmul.f32 0.5, %v2041_v58  ;;  %vm2195_vm11 = vweird.f32 %v7384_v54  ;;  %3861 = vrsqrt.f32 %v7415_v51 }
 0x41d   :  { %v3856_v59 = vpop.eup %3855  ;;  %vm2046_vm4 = vweird.f32 %v3854_v12  ;;  %v2479_v19 = vmul.f32 0.5, %v7384_v54  ;;  %v2493_v13 = vmul.f32 0.5, %v7390_v41  ;;  %v3481_v21 = vperm.slane %v7413_v57, %v5435_v15 }
 0x41e   :  { %v3858_v43 = vpop.eup %3857  ;;  %v2190_v10 = vmul.f32 %v3856_v59, %v7384_v54  ;;  %v2043_v39 = vsub.f32 1.5, %v2042_v62  ;;  %vm2335_vm8 = vweird.f32 %v7390_v41  ;;  %3863 = vrsqrt.f32 %v7417_v24  ;;  %vm2047_vm9 = vmor %vm2045_vm12, %vm2046_vm4 }
 0x41f   :  { %v2330_v32 = vmul.f32 %v3858_v43, %v7390_v41  ;;  %v7443_v5 = vmul.f32 0.5, %v7410_v23  ;;  %3865 = vrsqrt.f32 %v7425_v61  ;;  %v3452_v31 = vperm.slane %v7428_v34, %v5789_v6 }
 0x420   :  { %v2191_v55 = vmul.f32 %v3856_v59, %v2190_v10  ;;  %v2044_v3 = vmul.f32 %v3854_v12, %v2043_v39  ;;  %vm2196_vm10 = vweird.f32 %v3856_v59  ;;  %vm2205_vm2 = vweird.f32 %v7410_v23 }
 0x421   :  { %v2331_v22 = vmul.f32 %v3858_v43, %v2330_v32  ;;  %v3860_v63 = vpop.eup %3859  ;;  %vm2336_vm0 = vweird.f32 %v3858_v43  ;;  %vm2355_vm1 = vweird.f32 %v7415_v51  ;;  %v2495_v26 = vmul.f32 0.5, %v7415_v51  ;;  %vm2197_vm15 = vmor %vm2195_vm11, %vm2196_vm10 }
 0x422   :  { %v2192_v45 = vmul.f32 0.5, %v2191_v55  ;;  %v7455_v4 = vmul.f32 0.5, %v7417_v24  ;;  %v3862_v60 = vpop.eup %3861  ;;  %v2048_v50 = vsel %vm2047_vm9, %v3854_v12, %v2044_v3  ;;  %v2200_v27 = vmul.f32 %v3860_v63, %v7410_v23  ;;  %vm2337_vm12 = vmor %vm2335_vm8, %vm2336_vm0 }
 0x423   :  { %v2332_v35 = vmul.f32 0.5, %v2331_v22  ;;  %v7459_v0 = vmul.f32 0.5, %v7425_v61  ;;  %v2592_v58 = vmul.f32 %v2464_v16, %v2048_v50  ;;  %v2350_v46 = vmul.f32 %v3862_v60, %v7415_v51 }
 0x424   :  { %v2193_v20 = vsub.f32 1.5, %v2192_v45  ;;  %vm8159_vm6 = vcmask 1048512   ;;  %v3864_v62 = vpop.eup %3863  ;;  %v2201_v12 = vmul.f32 %v3860_v63, %v2200_v27  ;;  %vm2206_vm14 = vweird.f32 %v3860_v63 }
 0x425   :  { %v7467_v52 = vsel %vm8159_vm6, %v3421_v1, %v7250_v14  ;;  %v2333_v10 = vsub.f32 1.5, %v2332_v35  ;;  %vm8160_vm13 = vcmask 982912   ;;  %v3866_v39 = vpop.eup %3865  ;;  %v2720_v32 = vmul.f32 %v2592_v58, %v2048_v50  ;;  %vm2207_vm8 = vmor %vm2205_vm2, %vm2206_vm14 }
 0x426   :  { %v3451_v16 = vsel %vm8160_vm13, %v3450_v2, %v7376_v37  ;;  %v2194_v55 = vmul.f32 %v3856_v59, %v2193_v20  ;;  %v2351_v3 = vmul.f32 %v3862_v60, %v2350_v46  ;;  %v2340_v22 = vmul.f32 %v3864_v62, %v7417_v24  ;;  %vm8165_vm14 = vmmov %vm8160_vm13 }
 0x427   :  { %vm2345_vm3 = vweird.f32 %v7417_v24  ;;  %v2334_v14 = vmul.f32 %v3858_v43, %v2333_v10  ;;  %v2202_v30 = vmul.f32 0.5, %v2201_v12  ;;  %vm2356_vm7 = vweird.f32 %v3862_v60 }
 0x428   :  { %v2360_v1 = vmul.f32 %v3866_v39, %v7425_v61  ;;  %vm2365_vm5 = vweird.f32 %v7425_v61  ;;  %v2848_v42 = vsub.f32 1.5, %v2720_v32  ;;  %v2198_v37 = vsel %vm2197_vm15, %v3856_v59, %v2194_v55  ;;  %v8161_v59 = vld [vmem:[#allocation176_spill] sm:$0xff]  ;;  %vm2357_vm10 = vmor %vm2355_vm1, %vm2356_vm7 }
 0x429   :  { %v2352_v2 = vmul.f32 0.5, %v2351_v3  ;;  %v2341_v45 = vmul.f32 %v3864_v62, %v2340_v22  ;;  %vm3547_vm4 = vcmask 1041409   ;;  %v2607_v35 = vmul.f32 %v2479_v19, %v2198_v37  ;;  %vm8162_vm1 = vmmov %vm8159_vm6 }
 0x42a   :  { %v2338_v27 = vsel %vm2337_vm12, %v3858_v43, %v2334_v14  ;;  %v2203_v54 = vsub.f32 1.5, %v2202_v30  ;;  %v2361_v58 = vmul.f32 %v3866_v39, %v2360_v1  ;;  %v2976_v20 = vmul.f32 %v2848_v42, %v2048_v50  ;;  %vm8166_vm13 = vmmov %vm8162_vm1 }
 0x42b   :  { %v2621_v46 = vmul.f32 %v2493_v13, %v2338_v27  ;;  %v2353_v10 = vsub.f32 1.5, %v2352_v2  ;;  %v2342_v12 = vmul.f32 0.5, %v2341_v45  ;;  %v2735_v47 = vmul.f32 %v2607_v35, %v2198_v37 }
 0x42c   :  { %v2204_v56 = vmul.f32 %v3860_v63, %v2203_v54  ;;  %vm2346_vm11 = vweird.f32 %v3864_v62  ;;  %v2362_v32 = vmul.f32 0.5, %v2361_v58  ;;  %v3104_v55 = vmul.f32 %v2976_v20, %v8161_v59 }
 0x42d   :  { %v2749_v29 = vmul.f32 %v2621_v46, %v2338_v27  ;;  %v2354_v41 = vmul.f32 %v3862_v60, %v2353_v10  ;;  %v2343_v19 = vsub.f32 1.5, %v2342_v12  ;;  %v2863_v43 = vsub.f32 1.5, %v2735_v47  ;;  %vm2347_vm2 = vmor %vm2345_vm3, %vm2346_vm11 }
 0x42e   :  { %v2208_v3 = vsel %vm2207_vm8, %v3860_v63, %v2204_v56  ;;  %v2363_v13 = vsub.f32 1.5, %v2362_v32  ;;  %vm2366_vm9 = vweird.f32 %v3866_v39  ;;  %v3483_v50 = vperm.slane %v3104_v55, %v5789_v6  ;;  %vm8174_vm11 = vmmov %vm8165_vm14 }
 0x42f   :  { %v2877_v22 = vsub.f32 1.5, %v2749_v29  ;;  %v2608_v14 = vmul.f32 %v7443_v5, %v2208_v3  ;;  %v2358_v30 = vsel %vm2357_vm10, %v3862_v60, %v2354_v41  ;;  %v2991_v1 = vmul.f32 %v2863_v43, %v2198_v37  ;;  %vm2367_vm0 = vmor %vm2365_vm5, %vm2366_vm9  ;;  %v8164_v5 = vld [vmem:[#allocation191_spill] sm:$0xff] }
 0x430   :  { %v2623_v42 = vmul.f32 %v2495_v26, %v2358_v30  ;;  %v2344_v23 = vmul.f32 %v3864_v62, %v2343_v19  ;;  %v2364_v56 = vmul.f32 %v3866_v39, %v2363_v13  ;;  %v3453_v51 = vsel %vm8162_vm1, %v3452_v31, %v3451_v16  ;;  %vm8177_vm10 = vmmov %vm8162_vm1 }
 0x431   :  { %v3005_v47 = vmul.f32 %v2877_v22, %v2338_v27  ;;  %v2736_v63 = vmul.f32 %v2608_v14, %v2208_v3  ;;  %vm8163_vm6 = vcmask 917312   ;;  %v3119_v24 = vmul.f32 %v2991_v1, %v8164_v5  ;;  %v8170_v27 = vld [vmem:[#allocation196_spill] sm:$0xff] }
 0x432   :  { %v3480_v29 = vsel %vm8163_vm6, %v3479_v53, %v7355_v7  ;;  %v2751_v26 = vmul.f32 %v2623_v42, %v2358_v30  ;;  %v2348_v60 = vsel %vm2347_vm2, %v3864_v62, %v2344_v23  ;;  %v2368_v37 = vsel %vm2367_vm0, %v3866_v39, %v2364_v56  ;;  %v8168_v53 = vld [vmem:[#allocation80_spill] sm:$0xff]  ;;  %v8169_v62 = vld [vmem:[#allocation207_spill] sm:$0xff]  ;;  %vm8172_vm5 = vmmov %vm8163_vm6 }
 0x433   :  { %v2864_v2 = vsub.f32 1.5, %v2736_v63  ;;  %v2622_v61 = vmul.f32 %v7455_v4, %v2348_v60  ;;  %v2624_v45 = vmul.f32 %v7459_v0, %v2368_v37  ;;  %v3482_v34 = vsel %vm8165_vm14, %v3481_v21, %v3480_v29  ;;  %vm8183_vm1 = vmmov %vm8172_vm5 }
 0x434   :  { %v2879_v31 = vsub.f32 1.5, %v2751_v26  ;;  %v3484_v28 = vsel %vm8166_vm13, %v3483_v50, %v3482_v34  ;;  %vm8167_vm3 = vcmask 851712   ;;  %v3548_v4 = vsel %vm3547_vm4, %v8168_v53, %v6591_v8  ;;  %v8173_v8 = vld [vmem:[#allocation26_spill] sm:$0xff]  ;;  %vm8184_vm14 = vmmov %vm8174_vm11 }
 0x435   :  { %v3509_v7 = vsel %vm8167_vm3, %v3508_v36, %v7362_v44  ;;  %v3133_v0 = vmul.f32 %v3005_v47, %v8169_v62  ;;  %v2992_v16 = vmul.f32 %v2864_v2, %v2208_v3  ;;  %v2750_v39 = vmul.f32 %v2622_v61, %v2348_v60  ;;  %v8176_v3 = vld [vmem:[#allocation20_spill] sm:$0xff]  ;;  %vm8182_vm0 = vmmov %vm8167_vm3 }
 0x436   :  { %v2752_v57 = vmul.f32 %v2624_v45, %v2368_v37  ;;  %v3512_v21 = vperm.slane %v3119_v24, %v5435_v15  ;;  %v3007_v35 = vmul.f32 %v2879_v31, %v2358_v30  ;;  %vm3549_vm15 = vcmask 1042434   ;;  %vm8185_vm13 = vmmov %vm8177_vm10 }
 0x437   :  { %vm3551_vm7 = vcmask 1043459   ;;  %v3120_v54 = vmul.f32 %v2992_v16, %v8170_v27  ;;  %v2878_v58 = vsub.f32 1.5, %v2750_v39  ;;  %v8171_v44 = vperm.slane %v7422_v48, %v5450_v38  ;;  %v8175_v48 = vld [vmem:[#allocation206_spill] sm:$0xff] }
 0x438   :  { %v2880_v49 = vsub.f32 1.5, %v2752_v57  ;;  %v3135_v20 = vmul.f32 %v3007_v35, %v8173_v8  ;;  %v3550_v46 = vsel %vm3549_vm15, %v6849_v18, %v3548_v4  ;;  %vm3553_vm12 = vcmask 1044484  }
 0x439   :  { %v3511_v36 = vsel %vm8172_vm5, %v8171_v44, %v3509_v7  ;;  %vm3555_vm4 = vcmask 1045509   ;;  %v3514_v10 = vperm.slane %v3120_v54, %v5789_v6  ;;  %v3006_v12 = vmul.f32 %v2878_v58, %v2348_v60 }
 0x43a   :  { %v3008_v32 = vmul.f32 %v2880_v49, %v2368_v37  ;;  %v3552_v59 = vsel %vm3551_vm7, %v7467_v52, %v3550_v46  ;;  %v3539_v55 = vperm.slane %v3133_v0, %v5422_v9  ;;  %v3513_v41 = vsel %vm8174_vm11, %v3512_v21, %v3511_v36 }
 0x43b   :  { %v3554_v19 = vsel %vm3553_vm12, %v3453_v51, %v3552_v59  ;;  %vm3557_vm8 = vcmask 1046534   ;;  %v3134_v43 = vmul.f32 %v3006_v12, %v8175_v48  ;;  %v3515_v18 = vsel %vm8177_vm10, %v3514_v10, %v3513_v41 }
 0x43c   :  { %v3136_v13 = vmul.f32 %v3008_v32, %v8176_v3  ;;  %v3556_v50 = vsel %vm3555_vm4, %v3484_v28, %v3554_v19  ;;  %v8178_v22 = vperm.slane %v7379_v33, %v5425_v17  ;;  %vm8179_vm9 = vcmask 720512   ;;  %v3138_v17 = vld [vmem:[#allocation7] sm:$0xff]  ;;  %v3137_v33 = vld [vmem:[#allocation5] sm:$0xff] }
 0x43d   :  { %v3543_v52 = vperm.slane %v3135_v20, %v5435_v15  ;;  %v3558_v9 = vsel %vm3557_vm8, %v3515_v18, %v3556_v50  ;;  %v3541_v30 = vperm.slane %v3134_v43, %v5450_v38  ;;  %v8180_v42 = vperm.slane %v7387_v11, %v5404_v40 }
 0x43e   :  { %v3536_v14 = vsel %vm8179_vm9, %v8178_v22, %v7243_v25  ;;  %v3545_v1 = vperm.slane %v3136_v13, %v5789_v6  ;;  %vm8181_vm2 = vcmask 786112   ;;  %vm3559_vm6 = vcmask 1047559  }
 0x43f   :  { %v3538_v23 = vsel %vm8181_vm2, %v8180_v42, %v3536_v14 }
 0x440   :  { %v3540_v56 = vsel %vm8182_vm0, %v3539_v55, %v3538_v23 }
 0x441   :  { %v3542_v47 = vsel %vm8183_vm1, %v3541_v30, %v3540_v56 }
 0x442   :  { %v3544_v25 = vsel %vm8184_vm14, %v3543_v52, %v3542_v47 }
 0x443   :  { %v3546_v15 = vsel %vm8185_vm13, %v3545_v1, %v3544_v25 }
 0x444   :  { %v3560_v63 = vsel %vm3559_vm6, %v3546_v15, %v3558_v9 }
 0x445   :  { %v3562_v38 = vmul.f32 %v3560_v63, %v3138_v17 }
 0x447   :  { %v3563_v51 = vsub.f32 %v3137_v33, %v3562_v38 }
 0x449   :  { %v3565_v6 = vand.u32 2147483647, %v3563_v51  ;;  %v3564_v26 = vmax.f32 %v3563_v51, 0.0 }
 0x44b   :  { %v3566_v29 = vsub.f32 0.0, %v3565_v6 }
 0x44d   :  { %v3567_v5 = vmul.f32 1.442695, %v3566_v29 }
 0x44f   :  { %3867 = vpow2.f32 %v3567_v5 }
 0x455   :  { %v3868_v40 = vpop.eup %3867 }
 0x456   :  { %v3569_v11 = vadd.f32 1.0, %v3868_v40 }
 0x458   :  { %3869 = vlog2.f32 %v3569_v11 }
 0x45e   :  { %v3870_v24 = vpop.eup %3869 }
 0x45f   :  { %v3571_v60 = vmul.f32 0.6931472, %v3870_v24 }
 0x461   :  { %v3572_v37 = vadd.f32 %v3571_v60, %v3564_v26 }
 0x463   :  { %3573 = vadd.xlane.f32.xlu1 %v3572_v37 }
 0x4d6   :  { %v3574_v2 = vpop.xlane.xlu1 %3573 }
 0x4d7   :  { %v3575_v61 = vrot.slane %v3574_v2, 4 }
 0x4d9   :  { %v3576_v45 = vadd.f32 %v3575_v61, %v3574_v2 }
 0x4db   :  { %v3577_v34 = vrot.slane %v3576_v45, 2 }
 0x4dd   :  { %v3578_v31 = vadd.f32 %v3577_v34, %v3576_v45 }
 0x4df   :  { %v3579_v28 = vrot.slane %v3578_v31, 1 }
 0x4e1   :  { %v3580_v7 = vadd.f32 %v3579_v28, %v3578_v31 }
 0x4e3   :  { %3602 = vpush %v3580_v7 }
 0x514   :  { %s3603_s9 = spop %3602 }
 0x515   :  { %v3582_v53 = vstv %s3603_s9 }
 0x516   :  { %3583 = vst [vmem:[#allocation8] sm:$0xff] %v3582_v53 }
 0x517   :  { %3594 = dma.vmem_to_hbm [thread:$0]  %s3590_s8, 128, %s3592_s6, [#allocation4]  }
 0x518   :  { %3979 = dma.done.wait [#allocation4], 128  }
 0x519   :  { %3980 = vsyncadd [#allocation4], 4294967168 }
 0x51a   :  { %3599 = vsyncpa [#allocation3], 1 }
 0x51b   :  { %3600 = vsyncpa [#allocation6], 1 }
 0x51c   :  { %3601 = vsyncpa [#allocation4], 1 }

</bundles_post_ra>
